<compile_context>
chip_gen: v7x
topology: tpu7x:2x2x1
jax: 0.10.0
libtpu: 0.0.40
codegen_flags: <defaults>
</compile_context>

<pallas_src>
import functools
import math

import jax
import jax.numpy as jnp
from jax import lax
from jax.experimental import pallas as pl
from jax.experimental.pallas import tpu as pltpu


# ----------------------------- hardware-aware config ---------------------------- #

def _compute_vmem_limit():
    """Generation-aware scoped-VMEM limit: ~75% of physical, capped at 100 MiB."""
    try:
        cap = int(pltpu.get_tpu_info().vmem_capacity_bytes)
    except Exception:  # noqa: BLE001 - fall back to a safe default everywhere
        cap = 64 * 1024 * 1024
    return max(min(cap * 3 // 4, 100 * 1024 * 1024), 32 * 1024 * 1024)


_VMEM_LIMIT = _compute_vmem_limit()


def _probe_single_buffer():
    """True iff pl.Buffered(1) specs work with pallas_call on this JAX/TPU build."""
    if not hasattr(pl, "Buffered"):
        return False

    def _k(x_ref, o_ref):
        o_ref[...] = x_ref[...] + 1.0

    try:
        spec = pl.BlockSpec((8, 128), lambda i: (0, 0), pipeline_mode=pl.Buffered(1))
        y = pl.pallas_call(
            _k,
            out_shape=jax.ShapeDtypeStruct((8, 128), jnp.float32),
            grid=(2,),
            in_specs=[spec],
            out_specs=pl.BlockSpec((8, 128), lambda i: (0, 0)),
        )(jnp.zeros((8, 128), jnp.float32))
        jax.block_until_ready(y)
        return True
    except Exception:  # noqa: BLE001 - any failure means "not supported here"
        return False


_SINGLE_BUFFER = _probe_single_buffer()


def _wspec(shape, index_map):
    """BlockSpec for constant-index weights: single-buffered when supported."""
    if _SINGLE_BUFFER:
        return pl.BlockSpec(shape, index_map, pipeline_mode=pl.Buffered(1))
    return pl.BlockSpec(shape, index_map)


def _round_up(x, m):
    return (x + m - 1) // m * m


def _pick_row_tile(n, desired):
    """Largest sublane-aligned tile <= desired that divides n (else n itself)."""
    if desired >= n:
        return n
    for t in range(desired - desired % 8, 7, -8):
        if n % t == 0:
            return t
    return n  # TODO(synk): n not a multiple of 8 -> untiled; pad upstream if huge.


def _pick_col_tile(n, desired):
    """Largest lane-aligned (x128) tile <= desired that divides n (else n itself)."""
    if desired >= n:
        return n
    best = None
    t = 128
    while t <= desired:
        if n % t == 0:
            best = t
        t += 128
    return best if best is not None else n


# ----------------------------- shared math helpers ------------------------------ #

def _ln(x, g, b, eps):
    """LayerNorm over the last dim (f32). g/b are (1, D)."""
    mu = jnp.mean(x, axis=-1, keepdims=True)
    var = jnp.mean(jnp.square(x - mu), axis=-1, keepdims=True)
    return (x - mu) * lax.rsqrt(var + eps) * g + b


def _gelu(x):
    # tanh-approximate GELU.
    # TODO(synk): PyTorch F.gelu defaults to the erf form; difference is ~1e-3 relative.
    return 0.5 * x * (1.0 + jnp.tanh(0.7978845608028654 * (x + 0.044715 * x * x * x)))


def _bf16_dot(a_f32, w_bf16):
    """bf16 x bf16 MXU matmul with f32 accumulation."""
    return jnp.dot(a_f32.astype(jnp.bfloat16), w_bf16, preferred_element_type=jnp.float32)


# --------------------------- fused attention sublayer ---------------------------- #
# grid = (B ["parallel"], T//tq ["arbitrary"]).  At the first query tile of each batch
# item, K/V for the whole source sequence are projected with full-width (D,D) matmuls
# into persistent bf16 VMEM scratch.  Every query tile then does: LN -> full-width Q
# projection -> per-head scores/softmax/PV (static lane slices) -> lane concat ->
# single full-width output projection folded with the residual.

def _attn_body(xq_ref, src_ref, wq_ref, bq_ref, wk_ref, bk_ref, wv_ref, bv_ref,
               wo_ref, bo_ref, g_ref, be_ref, pad_ref, o_ref, k_s, v_s,
               causal_bias, *, n_heads, eps, ln_kv):
    D = xq_ref.shape[-1]
    dh = D // n_heads
    scale = 1.0 / math.sqrt(dh)

    # K/V projected once per batch item (first query tile) into persistent scratch.
    @pl.when(pl.program_id(1) == 0)
    def _():
        src = src_ref[0]                                           # (Tk, D) f32
        if ln_kv:
            src = _ln(src, g_ref[...], be_ref[...], eps)
        sb = src.astype(jnp.bfloat16)
        k_s[...] = (jnp.dot(sb, wk_ref[...], preferred_element_type=jnp.float32)
                    + bk_ref[...]).astype(jnp.bfloat16)
        v_s[...] = (jnp.dot(sb, wv_ref[...], preferred_element_type=jnp.float32)
                    + bv_ref[...]).astype(jnp.bfloat16)

    x = xq_ref[0]                                                  # (tq, D) f32 residual
    xn = _ln(x, g_ref[...], be_ref[...], eps)
    q = jnp.dot(xn.astype(jnp.bfloat16), wq_ref[...],
                preferred_element_type=jnp.float32) + bq_ref[...]  # (tq, D) full-width
    qb = q.astype(jnp.bfloat16)
    pad = pad_ref[0]                                               # (1, Tk)

    # Only the inherently per-head score/softmax/PV path is per-head; the big
    # projections above/below use full (D, D) MXU shapes.
    ctx_parts = []
    for h in range(n_heads):
        lo, hi = h * dh, (h + 1) * dh
        k_h = k_s[:, lo:hi]                                        # (Tk, dh) bf16
        v_h = v_s[:, lo:hi]
        s = lax.dot_general(qb[:, lo:hi], k_h,
                            dimension_numbers=(((1,), (1,)), ((), ())),
                            preferred_element_type=jnp.float32) * scale   # (tq, Tk)
        s = s + pad
        if causal_bias is not None:
            s = s + causal_bias
        s = s - jnp.max(s, axis=-1, keepdims=True)
        p = jnp.exp(s)
        p = p * pl.reciprocal(jnp.sum(p, axis=-1, keepdims=True), approx=True)
        ctx_parts.append(jnp.dot(p.astype(jnp.bfloat16), v_h,
                                 preferred_element_type=jnp.float32))     # (tq, dh)

    ctx = jnp.concatenate(ctx_parts, axis=-1).astype(jnp.bfloat16)        # (tq, D)
    o_ref[0] = x + bo_ref[...] + jnp.dot(ctx, wo_ref[...],
                                         preferred_element_type=jnp.float32)


def _self_attn_kernel(xq_ref, src_ref, causal_ref,
                      wq_ref, bq_ref, wk_ref, bk_ref, wv_ref, bv_ref,
                      wo_ref, bo_ref, g_ref, be_ref, pad_ref,
                      o_ref, k_s, v_s, *, n_heads, eps):
    _attn_body(xq_ref, src_ref, wq_ref, bq_ref, wk_ref, bk_ref, wv_ref, bv_ref,
               wo_ref, bo_ref, g_ref, be_ref, pad_ref, o_ref, k_s, v_s,
               causal_ref[...], n_heads=n_heads, eps=eps, ln_kv=True)


def _cross_attn_kernel(xq_ref, src_ref,
                       wq_ref, bq_ref, wk_ref, bk_ref, wv_ref, bv_ref,
                       wo_ref, bo_ref, g_ref, be_ref, pad_ref,
                       o_ref, k_s, v_s, *, n_heads, eps):
    _attn_body(xq_ref, src_ref, wq_ref, bq_ref, wk_ref, bk_ref, wv_ref, bv_ref,
               wo_ref, bo_ref, g_ref, be_ref, pad_ref, o_ref, k_s, v_s,
               None, n_heads=n_heads, eps=eps, ln_kv=False)


def _attn_weight_specs(D):
    w = lambda: _wspec((D, D), lambda b, i: (0, 0))
    v = lambda: _wspec((1, D), lambda b, i: (0, 0))
    # wq, bq, wk, bk, wv, bv, wo, bo, ln_gamma, ln_beta
    return [w(), v(), w(), v(), w(), v(), w(), v(), v(), v()]


def self_attention_sublayer(x, ap, g, be, pad_bias, causal_bias, *,
                            n_heads, q_tile=256, eps=1e-6):
    B, T, D = x.shape
    tq = _pick_row_tile(T, q_tile)
    return pl.pallas_call(
        functools.partial(_self_attn_kernel, n_heads=n_heads, eps=eps),
        out_shape=jax.ShapeDtypeStruct((B, T, D), jnp.float32),
        grid_spec=pltpu.PrefetchScalarGridSpec(
            num_scalar_prefetch=0, grid=(B, T // tq),
            in_specs=[pl.BlockSpec((1, tq, D), lambda b, i: (b, i, 0)),   # query rows
                      pl.BlockSpec((1, T, D), lambda b, i: (b, 0, 0)),    # full seq for K/V
                      pl.BlockSpec((tq, T), lambda b, i: (i, 0))]         # causal bias rows
                     + _attn_weight_specs(D)
                     + [pl.BlockSpec((1, 1, T), lambda b, i: (b, 0, 0))],  # pad bias
            out_specs=pl.BlockSpec((1, tq, D), lambda b, i: (b, i, 0)),
            scratch_shapes=[pltpu.VMEM((T, D), jnp.bfloat16),
                            pltpu.VMEM((T, D), jnp.bfloat16)]),
        compiler_params=pltpu.CompilerParams(
            dimension_semantics=("parallel", "arbitrary"),
            vmem_limit_bytes=_VMEM_LIMIT),
    )(x, x, causal_bias, ap["wq"], ap["bq"], ap["wk"], ap["bk"], ap["wv"], ap["bv"],
      ap["wo"], ap["bo"], g, be, pad_bias)


def cross_attention_sublayer(x, kv, ap, g, be, pad_bias, *,
                             n_heads, q_tile=256, eps=1e-6):
    B, T, D = x.shape
    S = kv.shape[1]
    tq = _pick_row_tile(T, q_tile)
    return pl.pallas_call(
        functools.partial(_cross_attn_kernel, n_heads=n_heads, eps=eps),
        out_shape=jax.ShapeDtypeStruct((B, T, D), jnp.float32),
        grid_spec=pltpu.PrefetchScalarGridSpec(
            num_scalar_prefetch=0, grid=(B, T // tq),
            in_specs=[pl.BlockSpec((1, tq, D), lambda b, i: (b, i, 0)),
                      pl.BlockSpec((1, S, D), lambda b, i: (b, 0, 0))]
                     + _attn_weight_specs(D)
                     + [pl.BlockSpec((1, 1, S), lambda b, i: (b, 0, 0))],
            out_specs=pl.BlockSpec((1, tq, D), lambda b, i: (b, i, 0)),
            scratch_shapes=[pltpu.VMEM((S, D), jnp.bfloat16),
                            pltpu.VMEM((S, D), jnp.bfloat16)]),
        compiler_params=pltpu.CompilerParams(
            dimension_semantics=("parallel", "arbitrary"),
            vmem_limit_bytes=_VMEM_LIMIT),
    )(x, kv, ap["wq"], ap["bq"], ap["wk"], ap["bk"], ap["wv"], ap["bv"],
      ap["wo"], ap["bo"], g, be, pad_bias)


# ------------------------------ fused FFN sublayer -------------------------------- #
# grid = (rows ["parallel"], F tiles ["arbitrary"]).  The output block (tr, D) stays
# resident across the F axis and accumulates y += gelu(xn @ w1_j + b1_j) @ w2_j;
# at j == 0 it is initialised with the residual + final bias and LN(x) is cached.

def _ffn_kernel(x_ref, g_ref, be_ref, w1_ref, b1_ref, w2_ref, b2_ref,
                o_ref, xn_s, *, eps):
    @pl.when(pl.program_id(1) == 0)
    def _():
        x = x_ref[...]
        xn_s[...] = _ln(x, g_ref[...], be_ref[...], eps)
        o_ref[...] = x + b2_ref[...]

    h = _gelu(_bf16_dot(xn_s[...], w1_ref[...]) + b1_ref[...])
    o_ref[...] += _bf16_dot(h, w2_ref[...])


def ffn_sublayer(x2d, g, be, w1, b1, w2, b2, *, row_tile=256, ff_tile=2048, eps=1e-6):
    N, D = x2d.shape
    F = w1.shape[1]
    tr = _pick_row_tile(N, row_tile)
    tf = _pick_col_tile(F, ff_tile)
    return pl.pallas_call(
        functools.partial(_ffn_kernel, eps=eps),
        out_shape=jax.ShapeDtypeStruct((N, D), jnp.float32),
        grid_spec=pltpu.PrefetchScalarGridSpec(
            num_scalar_prefetch=0, grid=(N // tr, F // tf),
            in_specs=[pl.BlockSpec((tr, D), lambda i, j: (i, 0)),
                      _wspec((1, D), lambda i, j: (0, 0)),
                      _wspec((1, D), lambda i, j: (0, 0)),
                      pl.BlockSpec((D, tf), lambda i, j: (0, j)),
                      pl.BlockSpec((1, tf), lambda i, j: (0, j)),
                      pl.BlockSpec((tf, D), lambda i, j: (j, 0)),
                      _wspec((1, D), lambda i, j: (0, 0))],
            out_specs=pl.BlockSpec((tr, D), lambda i, j: (i, 0)),
            scratch_shapes=[pltpu.VMEM((tr, D), jnp.float32)]),
        compiler_params=pltpu.CompilerParams(
            dimension_semantics=("parallel", "arbitrary"),
            vmem_limit_bytes=_VMEM_LIMIT),
    )(x2d, g, be, w1, b1, w2, b2)


# --------------- fused output head: final-LN + vocab matmul + log-softmax ---------- #
# grid = (rows ["parallel"], 2 phases ["arbitrary"], vocab tiles ["arbitrary"]).
# Phase 0 computes the online LSE only (no logits stored); phase 1 recomputes the tile
# logits and stores logits - lse directly, so the (N, V) tensor is written exactly once
# and never re-read.  The logp output index map (i, j*p) keeps the phase-0 block
# resident so no garbage is ever written back.  The final-LN activation is emitted
# as a second output (needed for the module's second return value).

def _head_kernel(x_ref, g_ref, be_ref, w_ref, b_ref,
                 logp_ref, ln_ref, xn_s, m_s, l_s, *, eps):
    phase = pl.program_id(1)
    j = pl.program_id(2)

    @pl.when((phase == 0) & (j == 0))
    def _():
        xn = _ln(x_ref[...], g_ref[...], be_ref[...], eps)
        xn_s[...] = xn
        ln_ref[...] = xn
        m_s[...] = jnp.full(m_s.shape, -jnp.inf, jnp.float32)
        l_s[...] = jnp.zeros(l_s.shape, jnp.float32)

    z = _bf16_dot(xn_s[...], w_ref[...]) + b_ref[...]

    @pl.when(phase == 0)
    def _():
        m_prev = m_s[...]
        m_new = jnp.maximum(m_prev, jnp.max(z, axis=-1, keepdims=True))
        l_s[...] = l_s[...] * jnp.exp(m_prev - m_new) + \
                   jnp.sum(jnp.exp(z - m_new), axis=-1, keepdims=True)
        m_s[...] = m_new

    @pl.when(phase == 1)
    def _():
        logp_ref[...] = z - (m_s[...] + jnp.log(l_s[...]))


def output_head(x2d, g, be, w, b, *, row_tile=256, vocab_tile=2048, eps=1e-6):
    N, D = x2d.shape
    V = w.shape[1]
    Vp = _round_up(V, 128)
    if Vp != V:
        # Pad vocab to a lane multiple (never the old tv=V fallback): padded columns
        # get bias -1e9 (prob ~0) and are sliced off below.
        # TODO(synk): the final slice copies the logits once; prefer 128-multiple vocabs.
        w = jnp.pad(w, ((0, 0), (0, Vp - V)))
        b = jnp.pad(b, ((0, 0), (0, Vp - V)), constant_values=-1e9)
    tr = _pick_row_tile(N, row_tile)
    tv = _pick_col_tile(Vp, vocab_tile)
    grid = (N // tr, 2, Vp // tv)

    logp, xn = pl.pallas_call(
        functools.partial(_head_kernel, eps=eps),
        out_shape=(jax.ShapeDtypeStruct((N, Vp), jnp.float32),
                   jax.ShapeDtypeStruct((N, D), jnp.float32)),
        grid_spec=pltpu.PrefetchScalarGridSpec(
            num_scalar_prefetch=0, grid=grid,
            in_specs=[pl.BlockSpec((tr, D), lambda i, p, j: (i, 0)),
                      _wspec((1, D), lambda i, p, j: (0, 0)),
                      _wspec((1, D), lambda i, p, j: (0, 0)),
                      pl.BlockSpec((D, tv), lambda i, p, j: (0, j)),
                      pl.BlockSpec((1, tv), lambda i, p, j: (0, j))],
            out_specs=(pl.BlockSpec((tr, tv), lambda i, p, j: (i, j * p)),
                       pl.BlockSpec((tr, D), lambda i, p, j: (i, 0))),
            scratch_shapes=[pltpu.VMEM((tr, D), jnp.float32),
                            pltpu.VMEM((tr, 1), jnp.float32),
                            pltpu.VMEM((tr, 1), jnp.float32)]),
        compiler_params=pltpu.CompilerParams(
            dimension_semantics=("parallel", "arbitrary", "arbitrary"),
            vmem_limit_bytes=_VMEM_LIMIT),
    )(x2d, g, be, w, b)

    if Vp != V:
        logp = logp[:, :V]
    return logp, xn


# --------------------------------- model pieces ----------------------------------- #

def tf_embedding(emb_table, target, model_dim):
    """Embedding (padding_idx=0) * sqrt(D) + sinusoidal positional encoding (plain JAX)."""
    T, _ = target.shape
    x = jnp.take(emb_table, target, axis=0).astype(jnp.float32) * math.sqrt(model_dim)
    pos = jnp.arange(T, dtype=jnp.float32)[:, None]
    div = jnp.exp(jnp.arange(0, model_dim, 2, dtype=jnp.float32)
                  * (-math.log(10000.0) / model_dim))
    pe = jnp.zeros((T, model_dim), jnp.float32)
    pe = pe.at[:, 0::2].set(jnp.sin(pos * div))
    pe = pe.at[:, 1::2].set(jnp.cos(pos * div))
    return x + pe[:, None, :]
    # TODO(synk): TFEmbedding dropout is a training-time no-op here (eval mode).


def tf_decoder_forward(params, encoder_states, encoder_mask, target, *, n_heads,
                       q_tile=256, row_tile=256, ff_tile=2048, vocab_tile=2048, eps=1e-6):
    """Mirrors TFDecoder.forward (pre_norm=True, img_attn=None, eval mode)."""
    T, B = target.shape
    D = params["emb"].shape[1]
    V = params["out_w"].shape[1]

    x = tf_embedding(params["emb"], target, D)                        # (T, B, D) f32
    x = x.transpose(1, 0, 2)                                          # (B, T, D)
    enc = encoder_states.astype(jnp.float32).transpose(1, 0, 2)       # (B, S, D)

    # Additive pad biases; the causal part of generate_combined_mask is a single
    # precomputed (T, T) array reused (constant index) by every batch item / layer.
    dec_pad_bias = jnp.where(target.T == 0, -1e9, 0.0).astype(jnp.float32)[:, None, :]  # (B,1,T)
    enc_bias = jnp.where(encoder_mask[:, 0], -1e9, 0.0).astype(jnp.float32)             # (B,1,S)
    causal_bias = jnp.where(jnp.triu(jnp.ones((T, T), jnp.float32), 1) > 0,
                            -1e9, 0.0).astype(jnp.float32)                              # (T,T)
    # TODO(synk): wait-k encoder lookahead mask (kwargs['k'] path) not exercised.

    for lp in params["blocks"]:
        x = self_attention_sublayer(x, lp["self"], lp["ln1_g"], lp["ln1_b"],
                                    dec_pad_bias, causal_bias,
                                    n_heads=n_heads, q_tile=q_tile, eps=eps)
        x = cross_attention_sublayer(x, enc, lp["cross"], lp["ln2_g"], lp["ln2_b"],
                                     enc_bias, n_heads=n_heads, q_tile=q_tile, eps=eps)
        x = ffn_sublayer(x.reshape(B * T, D), lp["ln3_g"], lp["ln3_b"],
                         lp["ff_w1"], lp["ff_b1"], lp["ff_w2"], lp["ff_b2"],
                         row_tile=row_tile, ff_tile=ff_tile, eps=eps).reshape(B, T, D)

    # Go time-major on the small (., D) activation BEFORE the head so the large
    # (T, B, V) log-probs never need a transpose in HBM.
    x_tm = x.transpose(1, 0, 2).reshape(T * B, D)
    logp, dec_flat = output_head(x_tm, params["final_g"], params["final_b"],
                                 params["out_w"], params["out_b"],
                                 row_tile=row_tile, vocab_tile=vocab_tile, eps=eps)
    return logp.reshape(T, B, V), dec_flat.reshape(T, B, D)


# ------------------------------ pure-JAX reference -------------------------------- #

def reference_forward(params, encoder_states, encoder_mask, target, *, n_heads, eps=1e-6):
    T, B = target.shape
    D = params["emb"].shape[1]
    dh = D // n_heads
    x = tf_embedding(params["emb"], target, D).transpose(1, 0, 2)     # (B,T,D)
    enc = encoder_states.astype(jnp.float32).transpose(1, 0, 2)       # (B,S,D)
    dec_pad = jnp.where(target.T == 0, -1e9, 0.0)[:, None, :]         # (B,1,T)
    causal = jnp.where(jnp.triu(jnp.ones((T, T)), 1) > 0, -1e9, 0.0)  # (T,T)
    enc_bias = jnp.where(encoder_mask[:, 0], -1e9, 0.0)               # (B,1,S)

    def dense(src, w, b):
        y = jnp.einsum("btd,dn->btn", src.astype(jnp.bfloat16), w,
                       preferred_element_type=jnp.float32)
        return y + b

    def split_heads(y):
        Bq, Tq, _ = y.shape
        return y.reshape(Bq, Tq, n_heads, dh).transpose(0, 2, 1, 3)   # (B,H,T,dh)

    def mha(q_in, kv_in, ap, bias):
        q = split_heads(dense(q_in, ap["wq"], ap["bq"]))
        k = split_heads(dense(kv_in, ap["wk"], ap["bk"]))
        v = split_heads(dense(kv_in, ap["wv"], ap["bv"]))
        s = jnp.einsum("bhqe,bhke->bhqk", q.astype(jnp.bfloat16), k.astype(jnp.bfloat16),
                       preferred_element_type=jnp.float32) * (1.0 / math.sqrt(dh))
        s = s + bias[:, None, :, :]
        p = jax.nn.softmax(s, axis=-1)
        ctx = jnp.einsum("bhqk,bhke->bhqe", p.astype(jnp.bfloat16), v.astype(jnp.bfloat16),
                         preferred_element_type=jnp.float32)
        ctx = ctx.transpose(0, 2, 1, 3).reshape(q_in.shape)
        return dense(ctx, ap["wo"], ap["bo"])

    for blk in params["blocks"]:
        xn = _ln(x, blk["ln1_g"], blk["ln1_b"], eps)
        x = x + mha(xn, xn, blk["self"], dec_pad + causal[None])
        xn = _ln(x, blk["ln2_g"], blk["ln2_b"], eps)
        x = x + mha(xn, enc, blk["cross"], enc_bias)
        xn = _ln(x, blk["ln3_g"], blk["ln3_b"], eps)
        h = _gelu(dense(xn, blk["ff_w1"], blk["ff_b1"]))
        x = x + dense(h, blk["ff_w2"], blk["ff_b2"])

    xf = _ln(x, params["final_g"], params["final_b"], eps)
    logits = dense(xf, params["out_w"], params["out_b"])
    logp = jax.nn.log_softmax(logits, axis=-1)
    return logp.transpose(1, 0, 2), xf.transpose(1, 0, 2)


# -------------------------------- parameter init ---------------------------------- #

def init_params(key, vocab, model_dim, ff_dim, n_heads, n_layers):
    del n_heads  # weights are stored full-width (D, D); heads are split at use time
    keys = iter(jax.random.split(key, 256))

    def wgt(shape):
        return (jax.random.normal(next(keys), shape, jnp.float32) * 0.02).astype(jnp.bfloat16)

    def bias(shape):
        return jax.random.normal(next(keys), shape, jnp.float32) * 0.02

    emb = wgt((vocab, model_dim)).at[0].set(0)        # padding_idx = 0
    blocks = []
    for _ in range(n_layers):
        blk = {}
        for name in ("self", "cross"):
            blk[name] = {
                "wq": wgt((model_dim, model_dim)), "bq": bias((1, model_dim)),
                "wk": wgt((model_dim, model_dim)), "bk": bias((1, model_dim)),
                "wv": wgt((model_dim, model_dim)), "bv": bias((1, model_dim)),
                "wo": wgt((model_dim, model_dim)), "bo": bias((1, model_dim)),
            }
        blk["ff_w1"], blk["ff_b1"] = wgt((model_dim, ff_dim)), bias((1, ff_dim))
        blk["ff_w2"], blk["ff_b2"] = wgt((ff_dim, model_dim)), bias((1, model_dim))
        for ln in ("ln1", "ln2", "ln3"):
            blk[ln + "_g"] = 1.0 + 0.1 * jax.random.normal(next(keys), (1, model_dim), jnp.float32)
            blk[ln + "_b"] = 0.02 * jax.random.normal(next(keys), (1, model_dim), jnp.float32)
        blocks.append(blk)
    return {"emb": emb, "blocks": blocks,
            "final_g": 1.0 + 0.1 * jax.random.normal(next(keys), (1, model_dim), jnp.float32),
            "final_b": 0.02 * jax.random.normal(next(keys), (1, model_dim), jnp.float32),
            "out_w": wgt((model_dim, vocab)),
            "out_b": bias((1, vocab))}


# ------------------------------------- main ---------------------------------------- #

if __name__ == "__main__":
    MODEL_DIM, FF_DIM, N_HEADS, N_LAYERS, VOCAB = 32, 256, 4, 2, 256
    T, S, B = 16, 16, 2
    # NOTE: D=32 / dh=8 under-fill the 128-lane vregs; production sizes (D, F, V
    # multiples of 128) use the same code with full lanes and bigger tiles.

    key = jax.random.PRNGKey(0)
    k_tgt, k_enc, k_par = jax.random.split(key, 3)

    params = init_params(k_par, VOCAB, MODEL_DIM, FF_DIM, N_HEADS, N_LAYERS)

    # target token ids, time-major (t_len, bsize); trailing pads in batch item 1
    target = jax.random.randint(k_tgt, (T, B), 1, VOCAB, dtype=jnp.int32)
    target = target.at[-3:, 1].set(0)

    # encoder hidden states (s_len, bsize, model_dim) and padding mask (bsize,1,1,s_len)
    encoder_states = jax.random.normal(k_enc, (S, B, MODEL_DIM), jnp.float32)
    encoder_mask = jnp.zeros((B, 1, 1, S), jnp.bool_).at[1, :, :, -3:].set(True)

    # small tiles to exercise the Tq / F / vocab / phase grid axes at toy sizes
    fwd = jax.jit(functools.partial(tf_decoder_forward, n_heads=N_HEADS,
                                    q_tile=8, row_tile=8, ff_tile=128, vocab_tile=128))
    logp, dec_x = fwd(params, encoder_states, encoder_mask, target)
    jax.block_until_ready((logp, dec_x))

    assert logp.shape == (T, B, VOCAB) and dec_x.shape == (T, B, MODEL_DIM)
    assert bool(jnp.all(jnp.isfinite(logp))) and bool(jnp.all(jnp.isfinite(dec_x)))
    # log_softmax rows must sum to ~1 in prob space
    assert bool(jnp.allclose(jnp.sum(jnp.exp(logp), axis=-1), 1.0, atol=1e-3))

    # parity vs. a pure-JAX reference of the same math
    ref = jax.jit(functools.partial(reference_forward, n_heads=N_HEADS))
    ref_logp, ref_dec = ref(params, encoder_states, encoder_mask, target)
    jax.block_until_ready((ref_logp, ref_dec))
    assert bool(jnp.allclose(logp, ref_logp, atol=1e-2, rtol=1e-2)), \
        float(jnp.max(jnp.abs(logp - ref_logp)))
    assert bool(jnp.allclose(dec_x, ref_dec, atol=1e-2, rtol=1e-2)), \
        float(jnp.max(jnp.abs(dec_x - ref_dec)))

    print("KERNEL_OK")
</pallas_src>

<mosaic_0001>
module attributes {stable_mosaic.version = 11 : i64} {
  func.func @_k(%arg0: i32, %arg1: memref<8x128xf32, #tpu.memory_space<vmem>>, %arg2: memref<8x128xf32, #tpu.memory_space<vmem>>) attributes {dimension_semantics = [#tpu.dimension_semantics<arbitrary>], iteration_bounds = array<i64: 2>, scalar_prefetch = 0 : i64, scratch_operands = 0 : i64, tpu.core_type = #tpu.core_type<tc>, window_params = [{pipeline_mode = #tpu.pipeline_mode<synchronous>, transform_indices = @transform_0, window_bounds = array<i64: 8, 128>}, {pipeline_mode = #tpu.pipeline_mode<synchronous>, transform_indices = @transform_1, window_bounds = array<i64: 8, 128>}]} {
    %c0 = arith.constant 0 : index
    %c0_0 = arith.constant 0 : index
    %0 = vector.load %arg1[%c0, %c0_0] : memref<8x128xf32, #tpu.memory_space<vmem>>, vector<8x128xf32>
    %cst = arith.constant 1.000000e+00 : f32
    %1 = vector.broadcast %cst : f32 to vector<8x128xf32>
    %2 = arith.addf %0, %1 : vector<8x128xf32>
    %c0_1 = arith.constant 0 : index
    %c0_2 = arith.constant 0 : index
    %3 = vector.load %arg2[%c0_1, %c0_2] : memref<8x128xf32, #tpu.memory_space<vmem>>, vector<8x128xf32>
    tpu.vector_store %arg2[%c0_1, %c0_2], %2 {strides = array<i32>} : memref<8x128xf32, #tpu.memory_space<vmem>>, vector<8x128xf32>,
    return
  }
  func.func @transform_0(%arg0: i32) -> (i32, i32) {
    %c0_i32 = arith.constant 0 : i32
    %c0_i32_0 = arith.constant 0 : i32
    %c0_i32_1 = arith.constant 0 : i32
    return %c0_i32, %c0_i32_0 : i32, i32
  }
  func.func @transform_1(%arg0: i32) -> (i32, i32) {
    %c0_i32 = arith.constant 0 : i32
    %c0_i32_0 = arith.constant 0 : i32
    %c0_i32_1 = arith.constant 0 : i32
    return %c0_i32, %c0_i32_0 : i32, i32
  }
}

module attributes {stable_mosaic.version = 11 : i64} {
  func.func @_self_attn_kernel(%arg0: i32, %arg1: i32, %arg2: memref<1x8x32xf32, #tpu.memory_space<vmem>>, %arg3: memref<1x16x32xf32, #tpu.memory_space<vmem>>, %arg4: memref<8x16xf32, #tpu.memory_space<vmem>>, %arg5: memref<32x32xbf16, #tpu.memory_space<vmem>>, %arg6: memref<1x32xf32, #tpu.memory_space<vmem>>, %arg7: memref<32x32xbf16, #tpu.memory_space<vmem>>, %arg8: memref<1x32xf32, #tpu.memory_space<vmem>>, %arg9: memref<32x32xbf16, #tpu.memory_space<vmem>>, %arg10: memref<1x32xf32, #tpu.memory_space<vmem>>, %arg11: memref<32x32xbf16, #tpu.memory_space<vmem>>, %arg12: memref<1x32xf32, #tpu.memory_space<vmem>>, %arg13: memref<1x32xf32, #tpu.memory_space<vmem>>, %arg14: memref<1x32xf32, #tpu.memory_space<vmem>>, %arg15: memref<1x1x16xf32, #tpu.memory_space<vmem>>, %arg16: memref<1x8x32xf32, #tpu.memory_space<vmem>>, %arg17: memref<16x32xbf16, #tpu.memory_space<vmem>>, %arg18: memref<16x32xbf16, #tpu.memory_space<vmem>>) attributes {dimension_semantics = [#tpu.dimension_semantics<parallel>, #tpu.dimension_semantics<arbitrary>], iteration_bounds = array<i64: 2, 2>, scalar_prefetch = 0 : i64, scratch_operands = 2 : i64, tpu.core_type = #tpu.core_type<tc>, window_params = [{transform_indices = @transform_0, window_bounds = array<i64: 1, 8, 32>}, {transform_indices = @transform_1, window_bounds = array<i64: 1, 16, 32>}, {transform_indices = @transform_2, window_bounds = array<i64: 8, 16>}, {pipeline_mode = #tpu.pipeline_mode<synchronous>, transform_indices = @transform_3, window_bounds = array<i64: 32, 32>}, {pipeline_mode = #tpu.pipeline_mode<synchronous>, transform_indices = @transform_4, window_bounds = array<i64: 1, 32>}, {pipeline_mode = #tpu.pipeline_mode<synchronous>, transform_indices = @transform_5, window_bounds = array<i64: 32, 32>}, {pipeline_mode = #tpu.pipeline_mode<synchronous>, transform_indices = @transform_6, window_bounds = array<i64: 1, 32>}, {pipeline_mode = #tpu.pipeline_mode<synchronous>, transform_indices = @transform_7, window_bounds = array<i64: 32, 32>}, {pipeline_mode = #tpu.pipeline_mode<synchronous>, transform_indices = @transform_8, window_bounds = array<i64: 1, 32>}, {pipeline_mode = #tpu.pipeline_mode<synchronous>, transform_indices = @transform_9, window_bounds = array<i64: 32, 32>}, {pipeline_mode = #tpu.pipeline_mode<synchronous>, transform_indices = @transform_10, window_bounds = array<i64: 1, 32>}, {pipeline_mode = #tpu.pipeline_mode<synchronous>, transform_indices = @transform_11, window_bounds = array<i64: 1, 32>}, {pipeline_mode = #tpu.pipeline_mode<synchronous>, transform_indices = @transform_12, window_bounds = array<i64: 1, 32>}, {transform_indices = @transform_13, window_bounds = array<i64: 1, 1, 16>}, {transform_indices = @transform_14, window_bounds = array<i64: 1, 8, 32>}]} {
    %c0 = arith.constant 0 : index
    %c0_0 = arith.constant 0 : index
    %0 = vector.load %arg4[%c0, %c0_0] : memref<8x16xf32, #tpu.memory_space<vmem>>, vector<8x16xf32>
    %c0_i32 = arith.constant 0 : i32
    %1 = arith.cmpi eq, %arg1, %c0_i32 : i32
    %2 = arith.extui %1 : i1 to i32
    %c0_i32_1 = arith.constant 0 : i32
    %3 = arith.cmpi ne, %2, %c0_i32_1 : i32
    scf.if %3 {
      %c0_62 = arith.constant 0 : index
      %c0_63 = arith.constant 0 : index
      %c0_64 = arith.constant 0 : index
      %134 = vector.load %arg3[%c0_62, %c0_63, %c0_64] : memref<1x16x32xf32, #tpu.memory_space<vmem>>, vector<1x16x32xf32>
      %135 = vector.shape_cast %134 : vector<1x16x32xf32> to vector<16x32xf32>
      %c0_65 = arith.constant 0 : index
      %c0_66 = arith.constant 0 : index
      %136 = vector.load %arg13[%c0_65, %c0_66] : memref<1x32xf32, #tpu.memory_space<vmem>>, vector<1x32xf32>
      %c0_67 = arith.constant 0 : index
      %c0_68 = arith.constant 0 : index
      %137 = vector.load %arg14[%c0_67, %c0_68] : memref<1x32xf32, #tpu.memory_space<vmem>>, vector<1x32xf32>
      %cst_69 = arith.constant dense<0.000000e+00> : vector<16xf32>
      %138 = vector.multi_reduction <add>, %135, %cst_69 [1] : vector<16x32xf32> to vector<16xf32>
      %139 = vector.shape_cast %138 : vector<16xf32> to vector<16x1xf32>
      %cst_70 = arith.constant 3.200000e+01 : f32
      %140 = vector.broadcast %cst_70 : f32 to vector<16x1xf32>
      %141 = arith.divf %139, %140 : vector<16x1xf32>
      %142 = vector.broadcast %141 : vector<16x1xf32> to vector<16x32xf32>
      %143 = arith.subf %135, %142 : vector<16x32xf32>
      %144 = arith.mulf %143, %143 : vector<16x32xf32>
      %cst_71 = arith.constant dense<0.000000e+00> : vector<16xf32>
      %145 = vector.multi_reduction <add>, %144, %cst_71 [1] : vector<16x32xf32> to vector<16xf32>
      %146 = vector.shape_cast %145 : vector<16xf32> to vector<16x1xf32>
      %cst_72 = arith.constant 3.200000e+01 : f32
      %147 = vector.broadcast %cst_72 : f32 to vector<16x1xf32>
      %148 = arith.divf %146, %147 : vector<16x1xf32>
      %149 = vector.broadcast %141 : vector<16x1xf32> to vector<16x32xf32>
      %150 = arith.subf %135, %149 : vector<16x32xf32>
      %cst_73 = arith.constant 9.99999997E-7 : f32
      %151 = vector.broadcast %cst_73 : f32 to vector<16x1xf32>
      %152 = arith.addf %148, %151 : vector<16x1xf32>
      %153 = math.rsqrt %152 : vector<16x1xf32>
      %154 = vector.broadcast %153 : vector<16x1xf32> to vector<16x32xf32>
      %155 = arith.mulf %150, %154 : vector<16x32xf32>
      %156 = vector.broadcast %136 : vector<1x32xf32> to vector<16x32xf32>
      %157 = arith.mulf %155, %156 : vector<16x32xf32>
      %158 = vector.broadcast %137 : vector<1x32xf32> to vector<16x32xf32>
      %159 = arith.addf %157, %158 : vector<16x32xf32>
      %160 = arith.truncf %159 : vector<16x32xf32> to vector<16x32xbf16>
      %c0_74 = arith.constant 0 : index
      %c0_75 = arith.constant 0 : index
      %161 = vector.load %arg7[%c0_74, %c0_75] : memref<32x32xbf16, #tpu.memory_space<vmem>>, vector<32x32xbf16>
      %cst_76 = arith.constant dense<0.000000e+00> : vector<16x32xf32>
      %162 = tpu.matmul %160, %161, %cst_76 {dimension_numbers = #tpu.dot_dimension_numbers<[1], [0], [0], [1], [0, 0, 1, 1], [], []>} : vector<16x32xbf16>, vector<32x32xbf16>, vector<16x32xf32> -> vector<16x32xf32>
      %c0_77 = arith.constant 0 : index
      %c0_78 = arith.constant 0 : index
      %163 = vector.load %arg8[%c0_77, %c0_78] : memref<1x32xf32, #tpu.memory_space<vmem>>, vector<1x32xf32>
      %164 = vector.broadcast %163 : vector<1x32xf32> to vector<16x32xf32>
      %165 = arith.addf %162, %164 : vector<16x32xf32>
      %166 = arith.truncf %165 : vector<16x32xf32> to vector<16x32xbf16>
      %c0_79 = arith.constant 0 : index
      %c0_80 = arith.constant 0 : index
      %167 = vector.load %arg17[%c0_79, %c0_80] : memref<16x32xbf16, #tpu.memory_space<vmem>>, vector<16x32xbf16>
      tpu.vector_store %arg17[%c0_79, %c0_80], %166 {strides = array<i32>} : memref<16x32xbf16, #tpu.memory_space<vmem>>, vector<16x32xbf16>,
      %c0_81 = arith.constant 0 : index
      %c0_82 = arith.constant 0 : index
      %168 = vector.load %arg9[%c0_81, %c0_82] : memref<32x32xbf16, #tpu.memory_space<vmem>>, vector<32x32xbf16>
      %cst_83 = arith.constant dense<0.000000e+00> : vector<16x32xf32>
      %169 = tpu.matmul %160, %168, %cst_83 {dimension_numbers = #tpu.dot_dimension_numbers<[1], [0], [0], [1], [0, 0, 1, 1], [], []>} : vector<16x32xbf16>, vector<32x32xbf16>, vector<16x32xf32> -> vector<16x32xf32>
      %c0_84 = arith.constant 0 : index
      %c0_85 = arith.constant 0 : index
      %170 = vector.load %arg10[%c0_84, %c0_85] : memref<1x32xf32, #tpu.memory_space<vmem>>, vector<1x32xf32>
      %171 = vector.broadcast %170 : vector<1x32xf32> to vector<16x32xf32>
      %172 = arith.addf %169, %171 : vector<16x32xf32>
      %173 = arith.truncf %172 : vector<16x32xf32> to vector<16x32xbf16>
      %c0_86 = arith.constant 0 : index
      %c0_87 = arith.constant 0 : index
      %174 = vector.load %arg18[%c0_86, %c0_87] : memref<16x32xbf16, #tpu.memory_space<vmem>>, vector<16x32xbf16>
      tpu.vector_store %arg18[%c0_86, %c0_87], %173 {strides = array<i32>} : memref<16x32xbf16, #tpu.memory_space<vmem>>, vector<16x32xbf16>,
    } else {
    }
    %c0_2 = arith.constant 0 : index
    %c0_3 = arith.constant 0 : index
    %c0_4 = arith.constant 0 : index
    %4 = vector.load %arg2[%c0_2, %c0_3, %c0_4] : memref<1x8x32xf32, #tpu.memory_space<vmem>>, vector<1x8x32xf32>
    %5 = vector.shape_cast %4 : vector<1x8x32xf32> to vector<8x32xf32>
    %c0_5 = arith.constant 0 : index
    %c0_6 = arith.constant 0 : index
    %6 = vector.load %arg13[%c0_5, %c0_6] : memref<1x32xf32, #tpu.memory_space<vmem>>, vector<1x32xf32>
    %c0_7 = arith.constant 0 : index
    %c0_8 = arith.constant 0 : index
    %7 = vector.load %arg14[%c0_7, %c0_8] : memref<1x32xf32, #tpu.memory_space<vmem>>, vector<1x32xf32>
    %cst = arith.constant dense<0.000000e+00> : vector<8xf32>
    %8 = vector.multi_reduction <add>, %5, %cst [1] : vector<8x32xf32> to vector<8xf32>
    %9 = vector.shape_cast %8 : vector<8xf32> to vector<8x1xf32>
    %cst_9 = arith.constant 3.200000e+01 : f32
    %10 = vector.broadcast %cst_9 : f32 to vector<8x1xf32>
    %11 = arith.divf %9, %10 : vector<8x1xf32>
    %12 = vector.broadcast %11 : vector<8x1xf32> to vector<8x32xf32>
    %13 = arith.subf %5, %12 : vector<8x32xf32>
    %14 = arith.mulf %13, %13 : vector<8x32xf32>
    %cst_10 = arith.constant dense<0.000000e+00> : vector<8xf32>
    %15 = vector.multi_reduction <add>, %14, %cst_10 [1] : vector<8x32xf32> to vector<8xf32>
    %16 = vector.shape_cast %15 : vector<8xf32> to vector<8x1xf32>
    %cst_11 = arith.constant 3.200000e+01 : f32
    %17 = vector.broadcast %cst_11 : f32 to vector<8x1xf32>
    %18 = arith.divf %16, %17 : vector<8x1xf32>
    %19 = vector.broadcast %11 : vector<8x1xf32> to vector<8x32xf32>
    %20 = arith.subf %5, %19 : vector<8x32xf32>
    %cst_12 = arith.constant 9.99999997E-7 : f32
    %21 = vector.broadcast %cst_12 : f32 to vector<8x1xf32>
    %22 = arith.addf %18, %21 : vector<8x1xf32>
    %23 = math.rsqrt %22 : vector<8x1xf32>
    %24 = vector.broadcast %23 : vector<8x1xf32> to vector<8x32xf32>
    %25 = arith.mulf %20, %24 : vector<8x32xf32>
    %26 = vector.broadcast %6 : vector<1x32xf32> to vector<8x32xf32>
    %27 = arith.mulf %25, %26 : vector<8x32xf32>
    %28 = vector.broadcast %7 : vector<1x32xf32> to vector<8x32xf32>
    %29 = arith.addf %27, %28 : vector<8x32xf32>
    %30 = arith.truncf %29 : vector<8x32xf32> to vector<8x32xbf16>
    %c0_13 = arith.constant 0 : index
    %c0_14 = arith.constant 0 : index
    %31 = vector.load %arg5[%c0_13, %c0_14] : memref<32x32xbf16, #tpu.memory_space<vmem>>, vector<32x32xbf16>
    %cst_15 = arith.constant dense<0.000000e+00> : vector<8x32xf32>
    %32 = tpu.matmul %30, %31, %cst_15 {dimension_numbers = #tpu.dot_dimension_numbers<[1], [0], [0], [1], [0, 0, 1, 1], [], []>} : vector<8x32xbf16>, vector<32x32xbf16>, vector<8x32xf32> -> vector<8x32xf32>
    %c0_16 = arith.constant 0 : index
    %c0_17 = arith.constant 0 : index
    %33 = vector.load %arg6[%c0_16, %c0_17] : memref<1x32xf32, #tpu.memory_space<vmem>>, vector<1x32xf32>
    %34 = vector.broadcast %33 : vector<1x32xf32> to vector<8x32xf32>
    %35 = arith.addf %32, %34 : vector<8x32xf32>
    %36 = arith.truncf %35 : vector<8x32xf32> to vector<8x32xbf16>
    %c0_18 = arith.constant 0 : index
    %c0_19 = arith.constant 0 : index
    %c0_20 = arith.constant 0 : index
    %37 = vector.load %arg15[%c0_18, %c0_19, %c0_20] : memref<1x1x16xf32, #tpu.memory_space<vmem>>, vector<1x1x16xf32>
    %38 = vector.shape_cast %37 : vector<1x1x16xf32> to vector<1x16xf32>
    %c0_21 = arith.constant 0 : index
    %c0_22 = arith.constant 0 : index
    %39 = vector.load %arg17[%c0_21, %c0_22] : memref<16x32xbf16, #tpu.memory_space<vmem>>, vector<16x8xbf16>
    %c0_23 = arith.constant 0 : index
    %c0_24 = arith.constant 0 : index
    %40 = vector.load %arg18[%c0_23, %c0_24] : memref<16x32xbf16, #tpu.memory_space<vmem>>, vector<16x8xbf16>
    %41 = vector.extract_strided_slice %36 {offsets = [0, 0], sizes = [8, 8], strides = [1, 1]} : vector<8x32xbf16> to vector<8x8xbf16>
    %cst_25 = arith.constant dense<0.000000e+00> : vector<8x16xf32>
    %42 = tpu.matmul %41, %39, %cst_25 {dimension_numbers = #tpu.dot_dimension_numbers<[1], [1], [0], [0], [0, 0, 1, 0], [], []>} : vector<8x8xbf16>, vector<16x8xbf16>, vector<8x16xf32> -> vector<8x16xf32>
    %cst_26 = arith.constant 0.353553385 : f32
    %43 = vector.broadcast %cst_26 : f32 to vector<8x16xf32>
    %44 = arith.mulf %42, %43 : vector<8x16xf32>
    %45 = vector.broadcast %38 : vector<1x16xf32> to vector<8x16xf32>
    %46 = arith.addf %44, %45 : vector<8x16xf32>
    %47 = arith.addf %46, %0 : vector<8x16xf32>
    %cst_27 = arith.constant dense<0xFF800000> : vector<8xf32>
    %48 = vector.multi_reduction <maximumf>, %47, %cst_27 [1] : vector<8x16xf32> to vector<8xf32>
    %49 = vector.shape_cast %48 : vector<8xf32> to vector<8x1xf32>
    %50 = vector.broadcast %49 : vector<8x1xf32> to vector<8x16xf32>
    %51 = arith.subf %47, %50 : vector<8x16xf32>
    %52 = math.exp %51 : vector<8x16xf32>
    %cst_28 = arith.constant dense<0.000000e+00> : vector<8xf32>
    %53 = vector.multi_reduction <add>, %52, %cst_28 [1] : vector<8x16xf32> to vector<8xf32>
    %54 = vector.shape_cast %53 : vector<8xf32> to vector<8x1xf32>
    %55 = tpu.reciprocal %54 {approx = true} : vector<8x1xf32> -> vector<8x1xf32>
    %56 = vector.broadcast %55 : vector<8x1xf32> to vector<8x16xf32>
    %57 = arith.mulf %52, %56 : vector<8x16xf32>
    %58 = arith.truncf %57 : vector<8x16xf32> to vector<8x16xbf16>
    %cst_29 = arith.constant dense<0.000000e+00> : vector<8x8xf32>
    %59 = tpu.matmul %58, %40, %cst_29 {dimension_numbers = #tpu.dot_dimension_numbers<[1], [0], [0], [1], [0, 0, 1, 1], [], []>} : vector<8x16xbf16>, vector<16x8xbf16>, vector<8x8xf32> -> vector<8x8xf32>
    %c0_30 = arith.constant 0 : index
    %c8 = arith.constant 8 : index
    %60 = vector.load %arg17[%c0_30, %c8] : memref<16x32xbf16, #tpu.memory_space<vmem>>, vector<16x8xbf16>
    %c0_31 = arith.constant 0 : index
    %c8_32 = arith.constant 8 : index
    %61 = vector.load %arg18[%c0_31, %c8_32] : memref<16x32xbf16, #tpu.memory_space<vmem>>, vector<16x8xbf16>
    %62 = vector.extract_strided_slice %36 {offsets = [0, 8], sizes = [8, 8], strides = [1, 1]} : vector<8x32xbf16> to vector<8x8xbf16>
    %cst_33 = arith.constant dense<0.000000e+00> : vector<8x16xf32>
    %63 = tpu.matmul %62, %60, %cst_33 {dimension_numbers = #tpu.dot_dimension_numbers<[1], [1], [0], [0], [0, 0, 1, 0], [], []>} : vector<8x8xbf16>, vector<16x8xbf16>, vector<8x16xf32> -> vector<8x16xf32>
    %cst_34 = arith.constant 0.353553385 : f32
    %64 = vector.broadcast %cst_34 : f32 to vector<8x16xf32>
    %65 = arith.mulf %63, %64 : vector<8x16xf32>
    %66 = vector.broadcast %38 : vector<1x16xf32> to vector<8x16xf32>
    %67 = arith.addf %65, %66 : vector<8x16xf32>
    %68 = arith.addf %67, %0 : vector<8x16xf32>
    %cst_35 = arith.constant dense<0xFF800000> : vector<8xf32>
    %69 = vector.multi_reduction <maximumf>, %68, %cst_35 [1] : vector<8x16xf32> to vector<8xf32>
    %70 = vector.shape_cast %69 : vector<8xf32> to vector<8x1xf32>
    %71 = vector.broadcast %70 : vector<8x1xf32> to vector<8x16xf32>
    %72 = arith.subf %68, %71 : vector<8x16xf32>
    %73 = math.exp %72 : vector<8x16xf32>
    %cst_36 = arith.constant dense<0.000000e+00> : vector<8xf32>
    %74 = vector.multi_reduction <add>, %73, %cst_36 [1] : vector<8x16xf32> to vector<8xf32>
    %75 = vector.shape_cast %74 : vector<8xf32> to vector<8x1xf32>
    %76 = tpu.reciprocal %75 {approx = true} : vector<8x1xf32> -> vector<8x1xf32>
    %77 = vector.broadcast %76 : vector<8x1xf32> to vector<8x16xf32>
    %78 = arith.mulf %73, %77 : vector<8x16xf32>
    %79 = arith.truncf %78 : vector<8x16xf32> to vector<8x16xbf16>
    %cst_37 = arith.constant dense<0.000000e+00> : vector<8x8xf32>
    %80 = tpu.matmul %79, %61, %cst_37 {dimension_numbers = #tpu.dot_dimension_numbers<[1], [0], [0], [1], [0, 0, 1, 1], [], []>} : vector<8x16xbf16>, vector<16x8xbf16>, vector<8x8xf32> -> vector<8x8xf32>
    %c0_38 = arith.constant 0 : index
    %c16 = arith.constant 16 : index
    %81 = vector.load %arg17[%c0_38, %c16] : memref<16x32xbf16, #tpu.memory_space<vmem>>, vector<16x8xbf16>
    %c0_39 = arith.constant 0 : index
    %c16_40 = arith.constant 16 : index
    %82 = vector.load %arg18[%c0_39, %c16_40] : memref<16x32xbf16, #tpu.memory_space<vmem>>, vector<16x8xbf16>
    %83 = vector.extract_strided_slice %36 {offsets = [0, 16], sizes = [8, 8], strides = [1, 1]} : vector<8x32xbf16> to vector<8x8xbf16>
    %cst_41 = arith.constant dense<0.000000e+00> : vector<8x16xf32>
    %84 = tpu.matmul %83, %81, %cst_41 {dimension_numbers = #tpu.dot_dimension_numbers<[1], [1], [0], [0], [0, 0, 1, 0], [], []>} : vector<8x8xbf16>, vector<16x8xbf16>, vector<8x16xf32> -> vector<8x16xf32>
    %cst_42 = arith.constant 0.353553385 : f32
    %85 = vector.broadcast %cst_42 : f32 to vector<8x16xf32>
    %86 = arith.mulf %84, %85 : vector<8x16xf32>
    %87 = vector.broadcast %38 : vector<1x16xf32> to vector<8x16xf32>
    %88 = arith.addf %86, %87 : vector<8x16xf32>
    %89 = arith.addf %88, %0 : vector<8x16xf32>
    %cst_43 = arith.constant dense<0xFF800000> : vector<8xf32>
    %90 = vector.multi_reduction <maximumf>, %89, %cst_43 [1] : vector<8x16xf32> to vector<8xf32>
    %91 = vector.shape_cast %90 : vector<8xf32> to vector<8x1xf32>
    %92 = vector.broadcast %91 : vector<8x1xf32> to vector<8x16xf32>
    %93 = arith.subf %89, %92 : vector<8x16xf32>
    %94 = math.exp %93 : vector<8x16xf32>
    %cst_44 = arith.constant dense<0.000000e+00> : vector<8xf32>
    %95 = vector.multi_reduction <add>, %94, %cst_44 [1] : vector<8x16xf32> to vector<8xf32>
    %96 = vector.shape_cast %95 : vector<8xf32> to vector<8x1xf32>
    %97 = tpu.reciprocal %96 {approx = true} : vector<8x1xf32> -> vector<8x1xf32>
    %98 = vector.broadcast %97 : vector<8x1xf32> to vector<8x16xf32>
    %99 = arith.mulf %94, %98 : vector<8x16xf32>
    %100 = arith.truncf %99 : vector<8x16xf32> to vector<8x16xbf16>
    %cst_45 = arith.constant dense<0.000000e+00> : vector<8x8xf32>
    %101 = tpu.matmul %100, %82, %cst_45 {dimension_numbers = #tpu.dot_dimension_numbers<[1], [0], [0], [1], [0, 0, 1, 1], [], []>} : vector<8x16xbf16>, vector<16x8xbf16>, vector<8x8xf32> -> vector<8x8xf32>
    %c0_46 = arith.constant 0 : index
    %c24 = arith.constant 24 : index
    %102 = vector.load %arg17[%c0_46, %c24] : memref<16x32xbf16, #tpu.memory_space<vmem>>, vector<16x8xbf16>
    %c0_47 = arith.constant 0 : index
    %c24_48 = arith.constant 24 : index
    %103 = vector.load %arg18[%c0_47, %c24_48] : memref<16x32xbf16, #tpu.memory_space<vmem>>, vector<16x8xbf16>
    %104 = vector.extract_strided_slice %36 {offsets = [0, 24], sizes = [8, 8], strides = [1, 1]} : vector<8x32xbf16> to vector<8x8xbf16>
    %cst_49 = arith.constant dense<0.000000e+00> : vector<8x16xf32>
    %105 = tpu.matmul %104, %102, %cst_49 {dimension_numbers = #tpu.dot_dimension_numbers<[1], [1], [0], [0], [0, 0, 1, 0], [], []>} : vector<8x8xbf16>, vector<16x8xbf16>, vector<8x16xf32> -> vector<8x16xf32>
    %cst_50 = arith.constant 0.353553385 : f32
    %106 = vector.broadcast %cst_50 : f32 to vector<8x16xf32>
    %107 = arith.mulf %105, %106 : vector<8x16xf32>
    %108 = vector.broadcast %38 : vector<1x16xf32> to vector<8x16xf32>
    %109 = arith.addf %107, %108 : vector<8x16xf32>
    %110 = arith.addf %109, %0 : vector<8x16xf32>
    %cst_51 = arith.constant dense<0xFF800000> : vector<8xf32>
    %111 = vector.multi_reduction <maximumf>, %110, %cst_51 [1] : vector<8x16xf32> to vector<8xf32>
    %112 = vector.shape_cast %111 : vector<8xf32> to vector<8x1xf32>
    %113 = vector.broadcast %112 : vector<8x1xf32> to vector<8x16xf32>
    %114 = arith.subf %110, %113 : vector<8x16xf32>
    %115 = math.exp %114 : vector<8x16xf32>
    %cst_52 = arith.constant dense<0.000000e+00> : vector<8xf32>
    %116 = vector.multi_reduction <add>, %115, %cst_52 [1] : vector<8x16xf32> to vector<8xf32>
    %117 = vector.shape_cast %116 : vector<8xf32> to vector<8x1xf32>
    %118 = tpu.reciprocal %117 {approx = true} : vector<8x1xf32> -> vector<8x1xf32>
    %119 = vector.broadcast %118 : vector<8x1xf32> to vector<8x16xf32>
    %120 = arith.mulf %115, %119 : vector<8x16xf32>
    %121 = arith.truncf %120 : vector<8x16xf32> to vector<8x16xbf16>
    %cst_53 = arith.constant dense<0.000000e+00> : vector<8x8xf32>
    %122 = tpu.matmul %121, %103, %cst_53 {dimension_numbers = #tpu.dot_dimension_numbers<[1], [0], [0], [1], [0, 0, 1, 1], [], []>} : vector<8x16xbf16>, vector<16x8xbf16>, vector<8x8xf32> -> vector<8x8xf32>
    %123 = tpu.concatenate %59, %80, %101, %122 in 1 : vector<8x8xf32>, vector<8x8xf32>, vector<8x8xf32>, vector<8x8xf32> -> vector<8x32xf32>
    %124 = arith.truncf %123 : vector<8x32xf32> to vector<8x32xbf16>
    %c0_54 = arith.constant 0 : index
    %c0_55 = arith.constant 0 : index
    %125 = vector.load %arg12[%c0_54, %c0_55] : memref<1x32xf32, #tpu.memory_space<vmem>>, vector<1x32xf32>
    %126 = vector.broadcast %125 : vector<1x32xf32> to vector<8x32xf32>
    %127 = arith.addf %5, %126 : vector<8x32xf32>
    %c0_56 = arith.constant 0 : index
    %c0_57 = arith.constant 0 : index
    %128 = vector.load %arg11[%c0_56, %c0_57] : memref<32x32xbf16, #tpu.memory_space<vmem>>, vector<32x32xbf16>
    %cst_58 = arith.constant dense<0.000000e+00> : vector<8x32xf32>
    %129 = tpu.matmul %124, %128, %cst_58 {dimension_numbers = #tpu.dot_dimension_numbers<[1], [0], [0], [1], [0, 0, 1, 1], [], []>} : vector<8x32xbf16>, vector<32x32xbf16>, vector<8x32xf32> -> vector<8x32xf32>
    %130 = arith.addf %127, %129 : vector<8x32xf32>
    %c0_59 = arith.constant 0 : index
    %c0_60 = arith.constant 0 : index
    %c0_61 = arith.constant 0 : index
    %131 = vector.load %arg16[%c0_59, %c0_60, %c0_61] : memref<1x8x32xf32, #tpu.memory_space<vmem>>, vector<1x8x32xf32>
    %132 = vector.shape_cast %131 : vector<1x8x32xf32> to vector<8x32xf32>
    %133 = vector.shape_cast %130 : vector<8x32xf32> to vector<1x8x32xf32>
    tpu.vector_store %arg16[%c0_59, %c0_60, %c0_61], %133 {strides = array<i32>} : memref<1x8x32xf32, #tpu.memory_space<vmem>>, vector<1x8x32xf32>,
    return
  }
  func.func @transform_0(%arg0: i32, %arg1: i32) -> (i32, i32, i32) {
    %c0_i32 = arith.constant 0 : i32
    %c0_i32_0 = arith.constant 0 : i32
    return %arg0, %arg1, %c0_i32 : i32, i32, i32
  }
  func.func @transform_1(%arg0: i32, %arg1: i32) -> (i32, i32, i32) {
    %c0_i32 = arith.constant 0 : i32
    %c0_i32_0 = arith.constant 0 : i32
    %c0_i32_1 = arith.constant 0 : i32
    return %arg0, %c0_i32, %c0_i32_0 : i32, i32, i32
  }
  func.func @transform_2(%arg0: i32, %arg1: i32) -> (i32, i32) {
    %c0_i32 = arith.constant 0 : i32
    %c0_i32_0 = arith.constant 0 : i32
    return %arg1, %c0_i32 : i32, i32
  }
  func.func @transform_3(%arg0: i32, %arg1: i32) -> (i32, i32) {
    %c0_i32 = arith.constant 0 : i32
    %c0_i32_0 = arith.constant 0 : i32
    %c0_i32_1 = arith.constant 0 : i32
    return %c0_i32, %c0_i32_0 : i32, i32
  }
  func.func @transform_4(%arg0: i32, %arg1: i32) -> (i32, i32) {
    %c0_i32 = arith.constant 0 : i32
    %c0_i32_0 = arith.constant 0 : i32
    %c0_i32_1 = arith.constant 0 : i32
    return %c0_i32, %c0_i32_0 : i32, i32
  }
  func.func @transform_5(%arg0: i32, %arg1: i32) -> (i32, i32) {
    %c0_i32 = arith.constant 0 : i32
    %c0_i32_0 = arith.constant 0 : i32
    %c0_i32_1 = arith.constant 0 : i32
    return %c0_i32, %c0_i32_0 : i32, i32
  }
  func.func @transform_6(%arg0: i32, %arg1: i32) -> (i32, i32) {
    %c0_i32 = arith.constant 0 : i32
    %c0_i32_0 = arith.constant 0 : i32
    %c0_i32_1 = arith.constant 0 : i32
    return %c0_i32, %c0_i32_0 : i32, i32
  }
  func.func @transform_7(%arg0: i32, %arg1: i32) -> (i32, i32) {
    %c0_i32 = arith.constant 0 : i32
    %c0_i32_0 = arith.constant 0 : i32
    %c0_i32_1 = arith.constant 0 : i32
    return %c0_i32, %c0_i32_0 : i32, i32
  }
  func.func @transform_8(%arg0: i32, %arg1: i32) -> (i32, i32) {
    %c0_i32 = arith.constant 0 : i32
    %c0_i32_0 = arith.constant 0 : i32
    %c0_i32_1 = arith.constant 0 : i32
    return %c0_i32, %c0_i32_0 : i32, i32
  }
  func.func @transform_9(%arg0: i32, %arg1: i32) -> (i32, i32) {
    %c0_i32 = arith.constant 0 : i32
    %c0_i32_0 = arith.constant 0 : i32
    %c0_i32_1 = arith.constant 0 : i32
    return %c0_i32, %c0_i32_0 : i32, i32
  }
  func.func @transform_10(%arg0: i32, %arg1: i32) -> (i32, i32) {
    %c0_i32 = arith.constant 0 : i32
    %c0_i32_0 = arith.constant 0 : i32
    %c0_i32_1 = arith.constant 0 : i32
    return %c0_i32, %c0_i32_0 : i32, i32
  }
  func.func @transform_11(%arg0: i32, %arg1: i32) -> (i32, i32) {
    %c0_i32 = arith.constant 0 : i32
    %c0_i32_0 = arith.constant 0 : i32
    %c0_i32_1 = arith.constant 0 : i32
    return %c0_i32, %c0_i32_0 : i32, i32
  }
  func.func @transform_12(%arg0: i32, %arg1: i32) -> (i32, i32) {
    %c0_i32 = arith.constant 0 : i32
    %c0_i32_0 = arith.constant 0 : i32
    %c0_i32_1 = arith.constant 0 : i32
    return %c0_i32, %c0_i32_0 : i32, i32
  }
  func.func @transform_13(%arg0: i32, %arg1: i32) -> (i32, i32, i32) {
    %c0_i32 = arith.constant 0 : i32
    %c0_i32_0 = arith.constant 0 : i32
    %c0_i32_1 = arith.constant 0 : i32
    return %arg0, %c0_i32, %c0_i32_0 : i32, i32, i32
  }
  func.func @transform_14(%arg0: i32, %arg1: i32) -> (i32, i32, i32) {
    %c0_i32 = arith.constant 0 : i32
    %c0_i32_0 = arith.constant 0 : i32
    return %arg0, %arg1, %c0_i32 : i32, i32, i32
  }
}

module attributes {stable_mosaic.version = 11 : i64} {
  func.func @_cross_attn_kernel(%arg0: i32, %arg1: i32, %arg2: memref<1x8x32xf32, #tpu.memory_space<vmem>>, %arg3: memref<1x16x32xf32, #tpu.memory_space<vmem>>, %arg4: memref<32x32xbf16, #tpu.memory_space<vmem>>, %arg5: memref<1x32xf32, #tpu.memory_space<vmem>>, %arg6: memref<32x32xbf16, #tpu.memory_space<vmem>>, %arg7: memref<1x32xf32, #tpu.memory_space<vmem>>, %arg8: memref<32x32xbf16, #tpu.memory_space<vmem>>, %arg9: memref<1x32xf32, #tpu.memory_space<vmem>>, %arg10: memref<32x32xbf16, #tpu.memory_space<vmem>>, %arg11: memref<1x32xf32, #tpu.memory_space<vmem>>, %arg12: memref<1x32xf32, #tpu.memory_space<vmem>>, %arg13: memref<1x32xf32, #tpu.memory_space<vmem>>, %arg14: memref<1x1x16xf32, #tpu.memory_space<vmem>>, %arg15: memref<1x8x32xf32, #tpu.memory_space<vmem>>, %arg16: memref<16x32xbf16, #tpu.memory_space<vmem>>, %arg17: memref<16x32xbf16, #tpu.memory_space<vmem>>) attributes {dimension_semantics = [#tpu.dimension_semantics<parallel>, #tpu.dimension_semantics<arbitrary>], iteration_bounds = array<i64: 2, 2>, scalar_prefetch = 0 : i64, scratch_operands = 2 : i64, tpu.core_type = #tpu.core_type<tc>, window_params = [{transform_indices = @transform_0, window_bounds = array<i64: 1, 8, 32>}, {transform_indices = @transform_1, window_bounds = array<i64: 1, 16, 32>}, {pipeline_mode = #tpu.pipeline_mode<synchronous>, transform_indices = @transform_2, window_bounds = array<i64: 32, 32>}, {pipeline_mode = #tpu.pipeline_mode<synchronous>, transform_indices = @transform_3, window_bounds = array<i64: 1, 32>}, {pipeline_mode = #tpu.pipeline_mode<synchronous>, transform_indices = @transform_4, window_bounds = array<i64: 32, 32>}, {pipeline_mode = #tpu.pipeline_mode<synchronous>, transform_indices = @transform_5, window_bounds = array<i64: 1, 32>}, {pipeline_mode = #tpu.pipeline_mode<synchronous>, transform_indices = @transform_6, window_bounds = array<i64: 32, 32>}, {pipeline_mode = #tpu.pipeline_mode<synchronous>, transform_indices = @transform_7, window_bounds = array<i64: 1, 32>}, {pipeline_mode = #tpu.pipeline_mode<synchronous>, transform_indices = @transform_8, window_bounds = array<i64: 32, 32>}, {pipeline_mode = #tpu.pipeline_mode<synchronous>, transform_indices = @transform_9, window_bounds = array<i64: 1, 32>}, {pipeline_mode = #tpu.pipeline_mode<synchronous>, transform_indices = @transform_10, window_bounds = array<i64: 1, 32>}, {pipeline_mode = #tpu.pipeline_mode<synchronous>, transform_indices = @transform_11, window_bounds = array<i64: 1, 32>}, {transform_indices = @transform_12, window_bounds = array<i64: 1, 1, 16>}, {transform_indices = @transform_13, window_bounds = array<i64: 1, 8, 32>}]} {
    %c0_i32 = arith.constant 0 : i32
    %0 = arith.cmpi eq, %arg1, %c0_i32 : i32
    %1 = arith.extui %0 : i1 to i32
    %c0_i32_0 = arith.constant 0 : i32
    %2 = arith.cmpi ne, %1, %c0_i32_0 : i32
    scf.if %2 {
      %c0_60 = arith.constant 0 : index
      %c0_61 = arith.constant 0 : index
      %c0_62 = arith.constant 0 : index
      %129 = vector.load %arg3[%c0_60, %c0_61, %c0_62] : memref<1x16x32xf32, #tpu.memory_space<vmem>>, vector<1x16x32xf32>
      %130 = vector.shape_cast %129 : vector<1x16x32xf32> to vector<16x32xf32>
      %131 = arith.truncf %130 : vector<16x32xf32> to vector<16x32xbf16>
      %c0_63 = arith.constant 0 : index
      %c0_64 = arith.constant 0 : index
      %132 = vector.load %arg6[%c0_63, %c0_64] : memref<32x32xbf16, #tpu.memory_space<vmem>>, vector<32x32xbf16>
      %cst_65 = arith.constant dense<0.000000e+00> : vector<16x32xf32>
      %133 = tpu.matmul %131, %132, %cst_65 {dimension_numbers = #tpu.dot_dimension_numbers<[1], [0], [0], [1], [0, 0, 1, 1], [], []>} : vector<16x32xbf16>, vector<32x32xbf16>, vector<16x32xf32> -> vector<16x32xf32>
      %c0_66 = arith.constant 0 : index
      %c0_67 = arith.constant 0 : index
      %134 = vector.load %arg7[%c0_66, %c0_67] : memref<1x32xf32, #tpu.memory_space<vmem>>, vector<1x32xf32>
      %135 = vector.broadcast %134 : vector<1x32xf32> to vector<16x32xf32>
      %136 = arith.addf %133, %135 : vector<16x32xf32>
      %137 = arith.truncf %136 : vector<16x32xf32> to vector<16x32xbf16>
      %c0_68 = arith.constant 0 : index
      %c0_69 = arith.constant 0 : index
      %138 = vector.load %arg16[%c0_68, %c0_69] : memref<16x32xbf16, #tpu.memory_space<vmem>>, vector<16x32xbf16>
      tpu.vector_store %arg16[%c0_68, %c0_69], %137 {strides = array<i32>} : memref<16x32xbf16, #tpu.memory_space<vmem>>, vector<16x32xbf16>,
      %c0_70 = arith.constant 0 : index
      %c0_71 = arith.constant 0 : index
      %139 = vector.load %arg8[%c0_70, %c0_71] : memref<32x32xbf16, #tpu.memory_space<vmem>>, vector<32x32xbf16>
      %cst_72 = arith.constant dense<0.000000e+00> : vector<16x32xf32>
      %140 = tpu.matmul %131, %139, %cst_72 {dimension_numbers = #tpu.dot_dimension_numbers<[1], [0], [0], [1], [0, 0, 1, 1], [], []>} : vector<16x32xbf16>, vector<32x32xbf16>, vector<16x32xf32> -> vector<16x32xf32>
      %c0_73 = arith.constant 0 : index
      %c0_74 = arith.constant 0 : index
      %141 = vector.load %arg9[%c0_73, %c0_74] : memref<1x32xf32, #tpu.memory_space<vmem>>, vector<1x32xf32>
      %142 = vector.broadcast %141 : vector<1x32xf32> to vector<16x32xf32>
      %143 = arith.addf %140, %142 : vector<16x32xf32>
      %144 = arith.truncf %143 : vector<16x32xf32> to vector<16x32xbf16>
      %c0_75 = arith.constant 0 : index
      %c0_76 = arith.constant 0 : index
      %145 = vector.load %arg17[%c0_75, %c0_76] : memref<16x32xbf16, #tpu.memory_space<vmem>>, vector<16x32xbf16>
      tpu.vector_store %arg17[%c0_75, %c0_76], %144 {strides = array<i32>} : memref<16x32xbf16, #tpu.memory_space<vmem>>, vector<16x32xbf16>,
    } else {
    }
    %c0 = arith.constant 0 : index
    %c0_1 = arith.constant 0 : index
    %c0_2 = arith.constant 0 : index
    %3 = vector.load %arg2[%c0, %c0_1, %c0_2] : memref<1x8x32xf32, #tpu.memory_space<vmem>>, vector<1x8x32xf32>
    %4 = vector.shape_cast %3 : vector<1x8x32xf32> to vector<8x32xf32>
    %c0_3 = arith.constant 0 : index
    %c0_4 = arith.constant 0 : index
    %5 = vector.load %arg12[%c0_3, %c0_4] : memref<1x32xf32, #tpu.memory_space<vmem>>, vector<1x32xf32>
    %c0_5 = arith.constant 0 : index
    %c0_6 = arith.constant 0 : index
    %6 = vector.load %arg13[%c0_5, %c0_6] : memref<1x32xf32, #tpu.memory_space<vmem>>, vector<1x32xf32>
    %cst = arith.constant dense<0.000000e+00> : vector<8xf32>
    %7 = vector.multi_reduction <add>, %4, %cst [1] : vector<8x32xf32> to vector<8xf32>
    %8 = vector.shape_cast %7 : vector<8xf32> to vector<8x1xf32>
    %cst_7 = arith.constant 3.200000e+01 : f32
    %9 = vector.broadcast %cst_7 : f32 to vector<8x1xf32>
    %10 = arith.divf %8, %9 : vector<8x1xf32>
    %11 = vector.broadcast %10 : vector<8x1xf32> to vector<8x32xf32>
    %12 = arith.subf %4, %11 : vector<8x32xf32>
    %13 = arith.mulf %12, %12 : vector<8x32xf32>
    %cst_8 = arith.constant dense<0.000000e+00> : vector<8xf32>
    %14 = vector.multi_reduction <add>, %13, %cst_8 [1] : vector<8x32xf32> to vector<8xf32>
    %15 = vector.shape_cast %14 : vector<8xf32> to vector<8x1xf32>
    %cst_9 = arith.constant 3.200000e+01 : f32
    %16 = vector.broadcast %cst_9 : f32 to vector<8x1xf32>
    %17 = arith.divf %15, %16 : vector<8x1xf32>
    %18 = vector.broadcast %10 : vector<8x1xf32> to vector<8x32xf32>
    %19 = arith.subf %4, %18 : vector<8x32xf32>
    %cst_10 = arith.constant 9.99999997E-7 : f32
    %20 = vector.broadcast %cst_10 : f32 to vector<8x1xf32>
    %21 = arith.addf %17, %20 : vector<8x1xf32>
    %22 = math.rsqrt %21 : vector<8x1xf32>
    %23 = vector.broadcast %22 : vector<8x1xf32> to vector<8x32xf32>
    %24 = arith.mulf %19, %23 : vector<8x32xf32>
    %25 = vector.broadcast %5 : vector<1x32xf32> to vector<8x32xf32>
    %26 = arith.mulf %24, %25 : vector<8x32xf32>
    %27 = vector.broadcast %6 : vector<1x32xf32> to vector<8x32xf32>
    %28 = arith.addf %26, %27 : vector<8x32xf32>
    %29 = arith.truncf %28 : vector<8x32xf32> to vector<8x32xbf16>
    %c0_11 = arith.constant 0 : index
    %c0_12 = arith.constant 0 : index
    %30 = vector.load %arg4[%c0_11, %c0_12] : memref<32x32xbf16, #tpu.memory_space<vmem>>, vector<32x32xbf16>
    %cst_13 = arith.constant dense<0.000000e+00> : vector<8x32xf32>
    %31 = tpu.matmul %29, %30, %cst_13 {dimension_numbers = #tpu.dot_dimension_numbers<[1], [0], [0], [1], [0, 0, 1, 1], [], []>} : vector<8x32xbf16>, vector<32x32xbf16>, vector<8x32xf32> -> vector<8x32xf32>
    %c0_14 = arith.constant 0 : index
    %c0_15 = arith.constant 0 : index
    %32 = vector.load %arg5[%c0_14, %c0_15] : memref<1x32xf32, #tpu.memory_space<vmem>>, vector<1x32xf32>
    %33 = vector.broadcast %32 : vector<1x32xf32> to vector<8x32xf32>
    %34 = arith.addf %31, %33 : vector<8x32xf32>
    %35 = arith.truncf %34 : vector<8x32xf32> to vector<8x32xbf16>
    %c0_16 = arith.constant 0 : index
    %c0_17 = arith.constant 0 : index
    %c0_18 = arith.constant 0 : index
    %36 = vector.load %arg14[%c0_16, %c0_17, %c0_18] : memref<1x1x16xf32, #tpu.memory_space<vmem>>, vector<1x1x16xf32>
    %37 = vector.shape_cast %36 : vector<1x1x16xf32> to vector<1x16xf32>
    %c0_19 = arith.constant 0 : index
    %c0_20 = arith.constant 0 : index
    %38 = vector.load %arg16[%c0_19, %c0_20] : memref<16x32xbf16, #tpu.memory_space<vmem>>, vector<16x8xbf16>
    %c0_21 = arith.constant 0 : index
    %c0_22 = arith.constant 0 : index
    %39 = vector.load %arg17[%c0_21, %c0_22] : memref<16x32xbf16, #tpu.memory_space<vmem>>, vector<16x8xbf16>
    %40 = vector.extract_strided_slice %35 {offsets = [0, 0], sizes = [8, 8], strides = [1, 1]} : vector<8x32xbf16> to vector<8x8xbf16>
    %cst_23 = arith.constant dense<0.000000e+00> : vector<8x16xf32>
    %41 = tpu.matmul %40, %38, %cst_23 {dimension_numbers = #tpu.dot_dimension_numbers<[1], [1], [0], [0], [0, 0, 1, 0], [], []>} : vector<8x8xbf16>, vector<16x8xbf16>, vector<8x16xf32> -> vector<8x16xf32>
    %cst_24 = arith.constant 0.353553385 : f32
    %42 = vector.broadcast %cst_24 : f32 to vector<8x16xf32>
    %43 = arith.mulf %41, %42 : vector<8x16xf32>
    %44 = vector.broadcast %37 : vector<1x16xf32> to vector<8x16xf32>
    %45 = arith.addf %43, %44 : vector<8x16xf32>
    %cst_25 = arith.constant dense<0xFF800000> : vector<8xf32>
    %46 = vector.multi_reduction <maximumf>, %45, %cst_25 [1] : vector<8x16xf32> to vector<8xf32>
    %47 = vector.shape_cast %46 : vector<8xf32> to vector<8x1xf32>
    %48 = vector.broadcast %47 : vector<8x1xf32> to vector<8x16xf32>
    %49 = arith.subf %45, %48 : vector<8x16xf32>
    %50 = math.exp %49 : vector<8x16xf32>
    %cst_26 = arith.constant dense<0.000000e+00> : vector<8xf32>
    %51 = vector.multi_reduction <add>, %50, %cst_26 [1] : vector<8x16xf32> to vector<8xf32>
    %52 = vector.shape_cast %51 : vector<8xf32> to vector<8x1xf32>
    %53 = tpu.reciprocal %52 {approx = true} : vector<8x1xf32> -> vector<8x1xf32>
    %54 = vector.broadcast %53 : vector<8x1xf32> to vector<8x16xf32>
    %55 = arith.mulf %50, %54 : vector<8x16xf32>
    %56 = arith.truncf %55 : vector<8x16xf32> to vector<8x16xbf16>
    %cst_27 = arith.constant dense<0.000000e+00> : vector<8x8xf32>
    %57 = tpu.matmul %56, %39, %cst_27 {dimension_numbers = #tpu.dot_dimension_numbers<[1], [0], [0], [1], [0, 0, 1, 1], [], []>} : vector<8x16xbf16>, vector<16x8xbf16>, vector<8x8xf32> -> vector<8x8xf32>
    %c0_28 = arith.constant 0 : index
    %c8 = arith.constant 8 : index
    %58 = vector.load %arg16[%c0_28, %c8] : memref<16x32xbf16, #tpu.memory_space<vmem>>, vector<16x8xbf16>
    %c0_29 = arith.constant 0 : index
    %c8_30 = arith.constant 8 : index
    %59 = vector.load %arg17[%c0_29, %c8_30] : memref<16x32xbf16, #tpu.memory_space<vmem>>, vector<16x8xbf16>
    %60 = vector.extract_strided_slice %35 {offsets = [0, 8], sizes = [8, 8], strides = [1, 1]} : vector<8x32xbf16> to vector<8x8xbf16>
    %cst_31 = arith.constant dense<0.000000e+00> : vector<8x16xf32>
    %61 = tpu.matmul %60, %58, %cst_31 {dimension_numbers = #tpu.dot_dimension_numbers<[1], [1], [0], [0], [0, 0, 1, 0], [], []>} : vector<8x8xbf16>, vector<16x8xbf16>, vector<8x16xf32> -> vector<8x16xf32>
    %cst_32 = arith.constant 0.353553385 : f32
    %62 = vector.broadcast %cst_32 : f32 to vector<8x16xf32>
    %63 = arith.mulf %61, %62 : vector<8x16xf32>
    %64 = vector.broadcast %37 : vector<1x16xf32> to vector<8x16xf32>
    %65 = arith.addf %63, %64 : vector<8x16xf32>
    %cst_33 = arith.constant dense<0xFF800000> : vector<8xf32>
    %66 = vector.multi_reduction <maximumf>, %65, %cst_33 [1] : vector<8x16xf32> to vector<8xf32>
    %67 = vector.shape_cast %66 : vector<8xf32> to vector<8x1xf32>
    %68 = vector.broadcast %67 : vector<8x1xf32> to vector<8x16xf32>
    %69 = arith.subf %65, %68 : vector<8x16xf32>
    %70 = math.exp %69 : vector<8x16xf32>
    %cst_34 = arith.constant dense<0.000000e+00> : vector<8xf32>
    %71 = vector.multi_reduction <add>, %70, %cst_34 [1] : vector<8x16xf32> to vector<8xf32>
    %72 = vector.shape_cast %71 : vector<8xf32> to vector<8x1xf32>
    %73 = tpu.reciprocal %72 {approx = true} : vector<8x1xf32> -> vector<8x1xf32>
    %74 = vector.broadcast %73 : vector<8x1xf32> to vector<8x16xf32>
    %75 = arith.mulf %70, %74 : vector<8x16xf32>
    %76 = arith.truncf %75 : vector<8x16xf32> to vector<8x16xbf16>
    %cst_35 = arith.constant dense<0.000000e+00> : vector<8x8xf32>
    %77 = tpu.matmul %76, %59, %cst_35 {dimension_numbers = #tpu.dot_dimension_numbers<[1], [0], [0], [1], [0, 0, 1, 1], [], []>} : vector<8x16xbf16>, vector<16x8xbf16>, vector<8x8xf32> -> vector<8x8xf32>
    %c0_36 = arith.constant 0 : index
    %c16 = arith.constant 16 : index
    %78 = vector.load %arg16[%c0_36, %c16] : memref<16x32xbf16, #tpu.memory_space<vmem>>, vector<16x8xbf16>
    %c0_37 = arith.constant 0 : index
    %c16_38 = arith.constant 16 : index
    %79 = vector.load %arg17[%c0_37, %c16_38] : memref<16x32xbf16, #tpu.memory_space<vmem>>, vector<16x8xbf16>
    %80 = vector.extract_strided_slice %35 {offsets = [0, 16], sizes = [8, 8], strides = [1, 1]} : vector<8x32xbf16> to vector<8x8xbf16>
    %cst_39 = arith.constant dense<0.000000e+00> : vector<8x16xf32>
    %81 = tpu.matmul %80, %78, %cst_39 {dimension_numbers = #tpu.dot_dimension_numbers<[1], [1], [0], [0], [0, 0, 1, 0], [], []>} : vector<8x8xbf16>, vector<16x8xbf16>, vector<8x16xf32> -> vector<8x16xf32>
    %cst_40 = arith.constant 0.353553385 : f32
    %82 = vector.broadcast %cst_40 : f32 to vector<8x16xf32>
    %83 = arith.mulf %81, %82 : vector<8x16xf32>
    %84 = vector.broadcast %37 : vector<1x16xf32> to vector<8x16xf32>
    %85 = arith.addf %83, %84 : vector<8x16xf32>
    %cst_41 = arith.constant dense<0xFF800000> : vector<8xf32>
    %86 = vector.multi_reduction <maximumf>, %85, %cst_41 [1] : vector<8x16xf32> to vector<8xf32>
    %87 = vector.shape_cast %86 : vector<8xf32> to vector<8x1xf32>
    %88 = vector.broadcast %87 : vector<8x1xf32> to vector<8x16xf32>
    %89 = arith.subf %85, %88 : vector<8x16xf32>
    %90 = math.exp %89 : vector<8x16xf32>
    %cst_42 = arith.constant dense<0.000000e+00> : vector<8xf32>
    %91 = vector.multi_reduction <add>, %90, %cst_42 [1] : vector<8x16xf32> to vector<8xf32>
    %92 = vector.shape_cast %91 : vector<8xf32> to vector<8x1xf32>
    %93 = tpu.reciprocal %92 {approx = true} : vector<8x1xf32> -> vector<8x1xf32>
    %94 = vector.broadcast %93 : vector<8x1xf32> to vector<8x16xf32>
    %95 = arith.mulf %90, %94 : vector<8x16xf32>
    %96 = arith.truncf %95 : vector<8x16xf32> to vector<8x16xbf16>
    %cst_43 = arith.constant dense<0.000000e+00> : vector<8x8xf32>
    %97 = tpu.matmul %96, %79, %cst_43 {dimension_numbers = #tpu.dot_dimension_numbers<[1], [0], [0], [1], [0, 0, 1, 1], [], []>} : vector<8x16xbf16>, vector<16x8xbf16>, vector<8x8xf32> -> vector<8x8xf32>
    %c0_44 = arith.constant 0 : index
    %c24 = arith.constant 24 : index
    %98 = vector.load %arg16[%c0_44, %c24] : memref<16x32xbf16, #tpu.memory_space<vmem>>, vector<16x8xbf16>
    %c0_45 = arith.constant 0 : index
    %c24_46 = arith.constant 24 : index
    %99 = vector.load %arg17[%c0_45, %c24_46] : memref<16x32xbf16, #tpu.memory_space<vmem>>, vector<16x8xbf16>
    %100 = vector.extract_strided_slice %35 {offsets = [0, 24], sizes = [8, 8], strides = [1, 1]} : vector<8x32xbf16> to vector<8x8xbf16>
    %cst_47 = arith.constant dense<0.000000e+00> : vector<8x16xf32>
    %101 = tpu.matmul %100, %98, %cst_47 {dimension_numbers = #tpu.dot_dimension_numbers<[1], [1], [0], [0], [0, 0, 1, 0], [], []>} : vector<8x8xbf16>, vector<16x8xbf16>, vector<8x16xf32> -> vector<8x16xf32>
    %cst_48 = arith.constant 0.353553385 : f32
    %102 = vector.broadcast %cst_48 : f32 to vector<8x16xf32>
    %103 = arith.mulf %101, %102 : vector<8x16xf32>
    %104 = vector.broadcast %37 : vector<1x16xf32> to vector<8x16xf32>
    %105 = arith.addf %103, %104 : vector<8x16xf32>
    %cst_49 = arith.constant dense<0xFF800000> : vector<8xf32>
    %106 = vector.multi_reduction <maximumf>, %105, %cst_49 [1] : vector<8x16xf32> to vector<8xf32>
    %107 = vector.shape_cast %106 : vector<8xf32> to vector<8x1xf32>
    %108 = vector.broadcast %107 : vector<8x1xf32> to vector<8x16xf32>
    %109 = arith.subf %105, %108 : vector<8x16xf32>
    %110 = math.exp %109 : vector<8x16xf32>
    %cst_50 = arith.constant dense<0.000000e+00> : vector<8xf32>
    %111 = vector.multi_reduction <add>, %110, %cst_50 [1] : vector<8x16xf32> to vector<8xf32>
    %112 = vector.shape_cast %111 : vector<8xf32> to vector<8x1xf32>
    %113 = tpu.reciprocal %112 {approx = true} : vector<8x1xf32> -> vector<8x1xf32>
    %114 = vector.broadcast %113 : vector<8x1xf32> to vector<8x16xf32>
    %115 = arith.mulf %110, %114 : vector<8x16xf32>
    %116 = arith.truncf %115 : vector<8x16xf32> to vector<8x16xbf16>
    %cst_51 = arith.constant dense<0.000000e+00> : vector<8x8xf32>
    %117 = tpu.matmul %116, %99, %cst_51 {dimension_numbers = #tpu.dot_dimension_numbers<[1], [0], [0], [1], [0, 0, 1, 1], [], []>} : vector<8x16xbf16>, vector<16x8xbf16>, vector<8x8xf32> -> vector<8x8xf32>
    %118 = tpu.concatenate %57, %77, %97, %117 in 1 : vector<8x8xf32>, vector<8x8xf32>, vector<8x8xf32>, vector<8x8xf32> -> vector<8x32xf32>
    %119 = arith.truncf %118 : vector<8x32xf32> to vector<8x32xbf16>
    %c0_52 = arith.constant 0 : index
    %c0_53 = arith.constant 0 : index
    %120 = vector.load %arg11[%c0_52, %c0_53] : memref<1x32xf32, #tpu.memory_space<vmem>>, vector<1x32xf32>
    %121 = vector.broadcast %120 : vector<1x32xf32> to vector<8x32xf32>
    %122 = arith.addf %4, %121 : vector<8x32xf32>
    %c0_54 = arith.constant 0 : index
    %c0_55 = arith.constant 0 : index
    %123 = vector.load %arg10[%c0_54, %c0_55] : memref<32x32xbf16, #tpu.memory_space<vmem>>, vector<32x32xbf16>
    %cst_56 = arith.constant dense<0.000000e+00> : vector<8x32xf32>
    %124 = tpu.matmul %119, %123, %cst_56 {dimension_numbers = #tpu.dot_dimension_numbers<[1], [0], [0], [1], [0, 0, 1, 1], [], []>} : vector<8x32xbf16>, vector<32x32xbf16>, vector<8x32xf32> -> vector<8x32xf32>
    %125 = arith.addf %122, %124 : vector<8x32xf32>
    %c0_57 = arith.constant 0 : index
    %c0_58 = arith.constant 0 : index
    %c0_59 = arith.constant 0 : index
    %126 = vector.load %arg15[%c0_57, %c0_58, %c0_59] : memref<1x8x32xf32, #tpu.memory_space<vmem>>, vector<1x8x32xf32>
    %127 = vector.shape_cast %126 : vector<1x8x32xf32> to vector<8x32xf32>
    %128 = vector.shape_cast %125 : vector<8x32xf32> to vector<1x8x32xf32>
    tpu.vector_store %arg15[%c0_57, %c0_58, %c0_59], %128 {strides = array<i32>} : memref<1x8x32xf32, #tpu.memory_space<vmem>>, vector<1x8x32xf32>,
    return
  }
  func.func @transform_0(%arg0: i32, %arg1: i32) -> (i32, i32, i32) {
    %c0_i32 = arith.constant 0 : i32
    %c0_i32_0 = arith.constant 0 : i32
    return %arg0, %arg1, %c0_i32 : i32, i32, i32
  }
  func.func @transform_1(%arg0: i32, %arg1: i32) -> (i32, i32, i32) {
    %c0_i32 = arith.constant 0 : i32
    %c0_i32_0 = arith.constant 0 : i32
    %c0_i32_1 = arith.constant 0 : i32
    return %arg0, %c0_i32, %c0_i32_0 : i32, i32, i32
  }
  func.func @transform_2(%arg0: i32, %arg1: i32) -> (i32, i32) {
    %c0_i32 = arith.constant 0 : i32
    %c0_i32_0 = arith.constant 0 : i32
    %c0_i32_1 = arith.constant 0 : i32
    return %c0_i32, %c0_i32_0 : i32, i32
  }
  func.func @transform_3(%arg0: i32, %arg1: i32) -> (i32, i32) {
    %c0_i32 = arith.constant 0 : i32
    %c0_i32_0 = arith.constant 0 : i32
    %c0_i32_1 = arith.constant 0 : i32
    return %c0_i32, %c0_i32_0 : i32, i32
  }
  func.func @transform_4(%arg0: i32, %arg1: i32) -> (i32, i32) {
    %c0_i32 = arith.constant 0 : i32
    %c0_i32_0 = arith.constant 0 : i32
    %c0_i32_1 = arith.constant 0 : i32
    return %c0_i32, %c0_i32_0 : i32, i32
  }
  func.func @transform_5(%arg0: i32, %arg1: i32) -> (i32, i32) {
    %c0_i32 = arith.constant 0 : i32
    %c0_i32_0 = arith.constant 0 : i32
    %c0_i32_1 = arith.constant 0 : i32
    return %c0_i32, %c0_i32_0 : i32, i32
  }
  func.func @transform_6(%arg0: i32, %arg1: i32) -> (i32, i32) {
    %c0_i32 = arith.constant 0 : i32
    %c0_i32_0 = arith.constant 0 : i32
    %c0_i32_1 = arith.constant 0 : i32
    return %c0_i32, %c0_i32_0 : i32, i32
  }
  func.func @transform_7(%arg0: i32, %arg1: i32) -> (i32, i32) {
    %c0_i32 = arith.constant 0 : i32
    %c0_i32_0 = arith.constant 0 : i32
    %c0_i32_1 = arith.constant 0 : i32
    return %c0_i32, %c0_i32_0 : i32, i32
  }
  func.func @transform_8(%arg0: i32, %arg1: i32) -> (i32, i32) {
    %c0_i32 = arith.constant 0 : i32
    %c0_i32_0 = arith.constant 0 : i32
    %c0_i32_1 = arith.constant 0 : i32
    return %c0_i32, %c0_i32_0 : i32, i32
  }
  func.func @transform_9(%arg0: i32, %arg1: i32) -> (i32, i32) {
    %c0_i32 = arith.constant 0 : i32
    %c0_i32_0 = arith.constant 0 : i32
    %c0_i32_1 = arith.constant 0 : i32
    return %c0_i32, %c0_i32_0 : i32, i32
  }
  func.func @transform_10(%arg0: i32, %arg1: i32) -> (i32, i32) {
    %c0_i32 = arith.constant 0 : i32
    %c0_i32_0 = arith.constant 0 : i32
    %c0_i32_1 = arith.constant 0 : i32
    return %c0_i32, %c0_i32_0 : i32, i32
  }
  func.func @transform_11(%arg0: i32, %arg1: i32) -> (i32, i32) {
    %c0_i32 = arith.constant 0 : i32
    %c0_i32_0 = arith.constant 0 : i32
    %c0_i32_1 = arith.constant 0 : i32
    return %c0_i32, %c0_i32_0 : i32, i32
  }
  func.func @transform_12(%arg0: i32, %arg1: i32) -> (i32, i32, i32) {
    %c0_i32 = arith.constant 0 : i32
    %c0_i32_0 = arith.constant 0 : i32
    %c0_i32_1 = arith.constant 0 : i32
    return %arg0, %c0_i32, %c0_i32_0 : i32, i32, i32
  }
  func.func @transform_13(%arg0: i32, %arg1: i32) -> (i32, i32, i32) {
    %c0_i32 = arith.constant 0 : i32
    %c0_i32_0 = arith.constant 0 : i32
    return %arg0, %arg1, %c0_i32 : i32, i32, i32
  }
}

module attributes {stable_mosaic.version = 11 : i64} {
  func.func @_ffn_kernel(%arg0: i32, %arg1: i32, %arg2: memref<8x32xf32, #tpu.memory_space<vmem>>, %arg3: memref<1x32xf32, #tpu.memory_space<vmem>>, %arg4: memref<1x32xf32, #tpu.memory_space<vmem>>, %arg5: memref<32x128xbf16, #tpu.memory_space<vmem>>, %arg6: memref<1x128xf32, #tpu.memory_space<vmem>>, %arg7: memref<128x32xbf16, #tpu.memory_space<vmem>>, %arg8: memref<1x32xf32, #tpu.memory_space<vmem>>, %arg9: memref<8x32xf32, #tpu.memory_space<vmem>>, %arg10: memref<8x32xf32, #tpu.memory_space<vmem>>) attributes {dimension_semantics = [#tpu.dimension_semantics<parallel>, #tpu.dimension_semantics<arbitrary>], iteration_bounds = array<i64: 4, 2>, scalar_prefetch = 0 : i64, scratch_operands = 1 : i64, tpu.core_type = #tpu.core_type<tc>, window_params = [{transform_indices = @transform_0, window_bounds = array<i64: 8, 32>}, {pipeline_mode = #tpu.pipeline_mode<synchronous>, transform_indices = @transform_1, window_bounds = array<i64: 1, 32>}, {pipeline_mode = #tpu.pipeline_mode<synchronous>, transform_indices = @transform_2, window_bounds = array<i64: 1, 32>}, {transform_indices = @transform_3, window_bounds = array<i64: 32, 128>}, {transform_indices = @transform_4, window_bounds = array<i64: 1, 128>}, {transform_indices = @transform_5, window_bounds = array<i64: 128, 32>}, {pipeline_mode = #tpu.pipeline_mode<synchronous>, transform_indices = @transform_6, window_bounds = array<i64: 1, 32>}, {transform_indices = @transform_7, window_bounds = array<i64: 8, 32>}]} {
    %c0_i32 = arith.constant 0 : i32
    %0 = arith.cmpi eq, %arg1, %c0_i32 : i32
    %1 = arith.extui %0 : i1 to i32
    %c0_i32_0 = arith.constant 0 : i32
    %2 = arith.cmpi ne, %1, %c0_i32_0 : i32
    scf.if %2 {
      %c0_17 = arith.constant 0 : index
      %c0_18 = arith.constant 0 : index
      %29 = vector.load %arg2[%c0_17, %c0_18] : memref<8x32xf32, #tpu.memory_space<vmem>>, vector<8x32xf32>
      %c0_19 = arith.constant 0 : index
      %c0_20 = arith.constant 0 : index
      %30 = vector.load %arg3[%c0_19, %c0_20] : memref<1x32xf32, #tpu.memory_space<vmem>>, vector<1x32xf32>
      %c0_21 = arith.constant 0 : index
      %c0_22 = arith.constant 0 : index
      %31 = vector.load %arg4[%c0_21, %c0_22] : memref<1x32xf32, #tpu.memory_space<vmem>>, vector<1x32xf32>
      %cst_23 = arith.constant dense<0.000000e+00> : vector<8xf32>
      %32 = vector.multi_reduction <add>, %29, %cst_23 [1] : vector<8x32xf32> to vector<8xf32>
      %33 = vector.shape_cast %32 : vector<8xf32> to vector<8x1xf32>
      %cst_24 = arith.constant 3.200000e+01 : f32
      %34 = vector.broadcast %cst_24 : f32 to vector<8x1xf32>
      %35 = arith.divf %33, %34 : vector<8x1xf32>
      %36 = vector.broadcast %35 : vector<8x1xf32> to vector<8x32xf32>
      %37 = arith.subf %29, %36 : vector<8x32xf32>
      %38 = arith.mulf %37, %37 : vector<8x32xf32>
      %cst_25 = arith.constant dense<0.000000e+00> : vector<8xf32>
      %39 = vector.multi_reduction <add>, %38, %cst_25 [1] : vector<8x32xf32> to vector<8xf32>
      %40 = vector.shape_cast %39 : vector<8xf32> to vector<8x1xf32>
      %cst_26 = arith.constant 3.200000e+01 : f32
      %41 = vector.broadcast %cst_26 : f32 to vector<8x1xf32>
      %42 = arith.divf %40, %41 : vector<8x1xf32>
      %43 = vector.broadcast %35 : vector<8x1xf32> to vector<8x32xf32>
      %44 = arith.subf %29, %43 : vector<8x32xf32>
      %cst_27 = arith.constant 9.99999997E-7 : f32
      %45 = vector.broadcast %cst_27 : f32 to vector<8x1xf32>
      %46 = arith.addf %42, %45 : vector<8x1xf32>
      %47 = math.rsqrt %46 : vector<8x1xf32>
      %48 = vector.broadcast %47 : vector<8x1xf32> to vector<8x32xf32>
      %49 = arith.mulf %44, %48 : vector<8x32xf32>
      %50 = vector.broadcast %30 : vector<1x32xf32> to vector<8x32xf32>
      %51 = arith.mulf %49, %50 : vector<8x32xf32>
      %52 = vector.broadcast %31 : vector<1x32xf32> to vector<8x32xf32>
      %53 = arith.addf %51, %52 : vector<8x32xf32>
      %c0_28 = arith.constant 0 : index
      %c0_29 = arith.constant 0 : index
      %54 = vector.load %arg10[%c0_28, %c0_29] : memref<8x32xf32, #tpu.memory_space<vmem>>, vector<8x32xf32>
      tpu.vector_store %arg10[%c0_28, %c0_29], %53 {strides = array<i32>} : memref<8x32xf32, #tpu.memory_space<vmem>>, vector<8x32xf32>,
      %c0_30 = arith.constant 0 : index
      %c0_31 = arith.constant 0 : index
      %55 = vector.load %arg8[%c0_30, %c0_31] : memref<1x32xf32, #tpu.memory_space<vmem>>, vector<1x32xf32>
      %56 = vector.broadcast %55 : vector<1x32xf32> to vector<8x32xf32>
      %57 = arith.addf %29, %56 : vector<8x32xf32>
      %c0_32 = arith.constant 0 : index
      %c0_33 = arith.constant 0 : index
      %58 = vector.load %arg9[%c0_32, %c0_33] : memref<8x32xf32, #tpu.memory_space<vmem>>, vector<8x32xf32>
      tpu.vector_store %arg9[%c0_32, %c0_33], %57 {strides = array<i32>} : memref<8x32xf32, #tpu.memory_space<vmem>>, vector<8x32xf32>,
    } else {
    }
    %c0 = arith.constant 0 : index
    %c0_1 = arith.constant 0 : index
    %3 = vector.load %arg10[%c0, %c0_1] : memref<8x32xf32, #tpu.memory_space<vmem>>, vector<8x32xf32>
    %c0_2 = arith.constant 0 : index
    %c0_3 = arith.constant 0 : index
    %4 = vector.load %arg5[%c0_2, %c0_3] : memref<32x128xbf16, #tpu.memory_space<vmem>>, vector<32x128xbf16>
    %5 = arith.truncf %3 : vector<8x32xf32> to vector<8x32xbf16>
    %cst = arith.constant dense<0.000000e+00> : vector<8x128xf32>
    %6 = tpu.matmul %5, %4, %cst {dimension_numbers = #tpu.dot_dimension_numbers<[1], [0], [0], [1], [0, 0, 1, 1], [], []>} : vector<8x32xbf16>, vector<32x128xbf16>, vector<8x128xf32> -> vector<8x128xf32>
    %c0_4 = arith.constant 0 : index
    %c0_5 = arith.constant 0 : index
    %7 = vector.load %arg6[%c0_4, %c0_5] : memref<1x128xf32, #tpu.memory_space<vmem>>, vector<1x128xf32>
    %8 = vector.broadcast %7 : vector<1x128xf32> to vector<8x128xf32>
    %9 = arith.addf %6, %8 : vector<8x128xf32>
    %cst_6 = arith.constant 5.000000e-01 : f32
    %10 = vector.broadcast %cst_6 : f32 to vector<8x128xf32>
    %11 = arith.mulf %10, %9 : vector<8x128xf32>
    %cst_7 = arith.constant 4.471500e-02 : f32
    %12 = vector.broadcast %cst_7 : f32 to vector<8x128xf32>
    %13 = arith.mulf %12, %9 : vector<8x128xf32>
    %14 = arith.mulf %13, %9 : vector<8x128xf32>
    %15 = arith.mulf %14, %9 : vector<8x128xf32>
    %16 = arith.addf %9, %15 : vector<8x128xf32>
    %cst_8 = arith.constant 0.797884583 : f32
    %17 = vector.broadcast %cst_8 : f32 to vector<8x128xf32>
    %18 = arith.mulf %17, %16 : vector<8x128xf32>
    %19 = math.tanh %18 : vector<8x128xf32>
    %cst_9 = arith.constant 1.000000e+00 : f32
    %20 = vector.broadcast %cst_9 : f32 to vector<8x128xf32>
    %21 = arith.addf %20, %19 : vector<8x128xf32>
    %22 = arith.mulf %11, %21 : vector<8x128xf32>
    %c0_10 = arith.constant 0 : index
    %c0_11 = arith.constant 0 : index
    %23 = vector.load %arg9[%c0_10, %c0_11] : memref<8x32xf32, #tpu.memory_space<vmem>>, vector<8x32xf32>
    %c0_12 = arith.constant 0 : index
    %c0_13 = arith.constant 0 : index
    %24 = vector.load %arg7[%c0_12, %c0_13] : memref<128x32xbf16, #tpu.memory_space<vmem>>, vector<128x32xbf16>
    %25 = arith.truncf %22 : vector<8x128xf32> to vector<8x128xbf16>
    %cst_14 = arith.constant dense<0.000000e+00> : vector<8x32xf32>
    %26 = tpu.matmul %25, %24, %cst_14 {dimension_numbers = #tpu.dot_dimension_numbers<[1], [0], [0], [1], [0, 0, 1, 1], [], []>} : vector<8x128xbf16>, vector<128x32xbf16>, vector<8x32xf32> -> vector<8x32xf32>
    %27 = arith.addf %23, %26 : vector<8x32xf32>
    %c0_15 = arith.constant 0 : index
    %c0_16 = arith.constant 0 : index
    %28 = vector.load %arg9[%c0_15, %c0_16] : memref<8x32xf32, #tpu.memory_space<vmem>>, vector<8x32xf32>
    tpu.vector_store %arg9[%c0_15, %c0_16], %27 {strides = array<i32>} : memref<8x32xf32, #tpu.memory_space<vmem>>, vector<8x32xf32>,
    return
  }
  func.func @transform_0(%arg0: i32, %arg1: i32) -> (i32, i32) {
    %c0_i32 = arith.constant 0 : i32
    %c0_i32_0 = arith.constant 0 : i32
    return %arg0, %c0_i32 : i32, i32
  }
  func.func @transform_1(%arg0: i32, %arg1: i32) -> (i32, i32) {
    %c0_i32 = arith.constant 0 : i32
    %c0_i32_0 = arith.constant 0 : i32
    %c0_i32_1 = arith.constant 0 : i32
    return %c0_i32, %c0_i32_0 : i32, i32
  }
  func.func @transform_2(%arg0: i32, %arg1: i32) -> (i32, i32) {
    %c0_i32 = arith.constant 0 : i32
    %c0_i32_0 = arith.constant 0 : i32
    %c0_i32_1 = arith.constant 0 : i32
    return %c0_i32, %c0_i32_0 : i32, i32
  }
  func.func @transform_3(%arg0: i32, %arg1: i32) -> (i32, i32) {
    %c0_i32 = arith.constant 0 : i32
    %c0_i32_0 = arith.constant 0 : i32
    return %c0_i32, %arg1 : i32, i32
  }
  func.func @transform_4(%arg0: i32, %arg1: i32) -> (i32, i32) {
    %c0_i32 = arith.constant 0 : i32
    %c0_i32_0 = arith.constant 0 : i32
    return %c0_i32, %arg1 : i32, i32
  }
  func.func @transform_5(%arg0: i32, %arg1: i32) -> (i32, i32) {
    %c0_i32 = arith.constant 0 : i32
    %c0_i32_0 = arith.constant 0 : i32
    return %arg1, %c0_i32 : i32, i32
  }
  func.func @transform_6(%arg0: i32, %arg1: i32) -> (i32, i32) {
    %c0_i32 = arith.constant 0 : i32
    %c0_i32_0 = arith.constant 0 : i32
    %c0_i32_1 = arith.constant 0 : i32
    return %c0_i32, %c0_i32_0 : i32, i32
  }
  func.func @transform_7(%arg0: i32, %arg1: i32) -> (i32, i32) {
    %c0_i32 = arith.constant 0 : i32
    %c0_i32_0 = arith.constant 0 : i32
    return %arg0, %c0_i32 : i32, i32
  }
}

module attributes {stable_mosaic.version = 11 : i64} {
  func.func @_head_kernel(%arg0: i32, %arg1: i32, %arg2: i32, %arg3: memref<8x32xf32, #tpu.memory_space<vmem>>, %arg4: memref<1x32xf32, #tpu.memory_space<vmem>>, %arg5: memref<1x32xf32, #tpu.memory_space<vmem>>, %arg6: memref<32x128xbf16, #tpu.memory_space<vmem>>, %arg7: memref<1x128xf32, #tpu.memory_space<vmem>>, %arg8: memref<8x128xf32, #tpu.memory_space<vmem>>, %arg9: memref<8x32xf32, #tpu.memory_space<vmem>>, %arg10: memref<8x32xf32, #tpu.memory_space<vmem>>, %arg11: memref<8x1xf32, #tpu.memory_space<vmem>>, %arg12: memref<8x1xf32, #tpu.memory_space<vmem>>) attributes {dimension_semantics = [#tpu.dimension_semantics<parallel>, #tpu.dimension_semantics<arbitrary>, #tpu.dimension_semantics<arbitrary>], iteration_bounds = array<i64: 4, 2, 2>, scalar_prefetch = 0 : i64, scratch_operands = 3 : i64, tpu.core_type = #tpu.core_type<tc>, window_params = [{transform_indices = @transform_0, window_bounds = array<i64: 8, 32>}, {pipeline_mode = #tpu.pipeline_mode<synchronous>, transform_indices = @transform_1, window_bounds = array<i64: 1, 32>}, {pipeline_mode = #tpu.pipeline_mode<synchronous>, transform_indices = @transform_2, window_bounds = array<i64: 1, 32>}, {transform_indices = @transform_3, window_bounds = array<i64: 32, 128>}, {transform_indices = @transform_4, window_bounds = array<i64: 1, 128>}, {transform_indices = @transform_5, window_bounds = array<i64: 8, 128>}, {transform_indices = @transform_6, window_bounds = array<i64: 8, 32>}]} {
    %c0_i32 = arith.constant 0 : i32
    %0 = arith.cmpi eq, %arg1, %c0_i32 : i32
    %c0_i32_0 = arith.constant 0 : i32
    %1 = arith.cmpi eq, %arg2, %c0_i32_0 : i32
    %2 = arith.andi %0, %1 : i1
    %3 = arith.extui %2 : i1 to i32
    %c0_i32_1 = arith.constant 0 : i32
    %4 = arith.cmpi ne, %3, %c0_i32_1 : i32
    scf.if %4 {
      %c0_10 = arith.constant 0 : index
      %c0_11 = arith.constant 0 : index
      %18 = vector.load %arg3[%c0_10, %c0_11] : memref<8x32xf32, #tpu.memory_space<vmem>>, vector<8x32xf32>
      %c0_12 = arith.constant 0 : index
      %c0_13 = arith.constant 0 : index
      %19 = vector.load %arg4[%c0_12, %c0_13] : memref<1x32xf32, #tpu.memory_space<vmem>>, vector<1x32xf32>
      %c0_14 = arith.constant 0 : index
      %c0_15 = arith.constant 0 : index
      %20 = vector.load %arg5[%c0_14, %c0_15] : memref<1x32xf32, #tpu.memory_space<vmem>>, vector<1x32xf32>
      %cst_16 = arith.constant dense<0.000000e+00> : vector<8xf32>
      %21 = vector.multi_reduction <add>, %18, %cst_16 [1] : vector<8x32xf32> to vector<8xf32>
      %22 = vector.shape_cast %21 : vector<8xf32> to vector<8x1xf32>
      %cst_17 = arith.constant 3.200000e+01 : f32
      %23 = vector.broadcast %cst_17 : f32 to vector<8x1xf32>
      %24 = arith.divf %22, %23 : vector<8x1xf32>
      %25 = vector.broadcast %24 : vector<8x1xf32> to vector<8x32xf32>
      %26 = arith.subf %18, %25 : vector<8x32xf32>
      %27 = arith.mulf %26, %26 : vector<8x32xf32>
      %cst_18 = arith.constant dense<0.000000e+00> : vector<8xf32>
      %28 = vector.multi_reduction <add>, %27, %cst_18 [1] : vector<8x32xf32> to vector<8xf32>
      %29 = vector.shape_cast %28 : vector<8xf32> to vector<8x1xf32>
      %cst_19 = arith.constant 3.200000e+01 : f32
      %30 = vector.broadcast %cst_19 : f32 to vector<8x1xf32>
      %31 = arith.divf %29, %30 : vector<8x1xf32>
      %32 = vector.broadcast %24 : vector<8x1xf32> to vector<8x32xf32>
      %33 = arith.subf %18, %32 : vector<8x32xf32>
      %cst_20 = arith.constant 9.99999997E-7 : f32
      %34 = vector.broadcast %cst_20 : f32 to vector<8x1xf32>
      %35 = arith.addf %31, %34 : vector<8x1xf32>
      %36 = math.rsqrt %35 : vector<8x1xf32>
      %37 = vector.broadcast %36 : vector<8x1xf32> to vector<8x32xf32>
      %38 = arith.mulf %33, %37 : vector<8x32xf32>
      %39 = vector.broadcast %19 : vector<1x32xf32> to vector<8x32xf32>
      %40 = arith.mulf %38, %39 : vector<8x32xf32>
      %41 = vector.broadcast %20 : vector<1x32xf32> to vector<8x32xf32>
      %42 = arith.addf %40, %41 : vector<8x32xf32>
      %c0_21 = arith.constant 0 : index
      %c0_22 = arith.constant 0 : index
      %43 = vector.load %arg10[%c0_21, %c0_22] : memref<8x32xf32, #tpu.memory_space<vmem>>, vector<8x32xf32>
      tpu.vector_store %arg10[%c0_21, %c0_22], %42 {strides = array<i32>} : memref<8x32xf32, #tpu.memory_space<vmem>>, vector<8x32xf32>,
      %c0_23 = arith.constant 0 : index
      %c0_24 = arith.constant 0 : index
      %44 = vector.load %arg9[%c0_23, %c0_24] : memref<8x32xf32, #tpu.memory_space<vmem>>, vector<8x32xf32>
      tpu.vector_store %arg9[%c0_23, %c0_24], %42 {strides = array<i32>} : memref<8x32xf32, #tpu.memory_space<vmem>>, vector<8x32xf32>,
      %cst_25 = arith.constant 0xFF800000 : f32
      %45 = vector.broadcast %cst_25 : f32 to vector<8x1xf32>
      %c0_26 = arith.constant 0 : index
      %c0_27 = arith.constant 0 : index
      %46 = vector.load %arg11[%c0_26, %c0_27] : memref<8x1xf32, #tpu.memory_space<vmem>>, vector<8x1xf32>
      tpu.vector_store %arg11[%c0_26, %c0_27], %45 {strides = array<i32>} : memref<8x1xf32, #tpu.memory_space<vmem>>, vector<8x1xf32>,
      %cst_28 = arith.constant 0.000000e+00 : f32
      %47 = vector.broadcast %cst_28 : f32 to vector<8x1xf32>
      %c0_29 = arith.constant 0 : index
      %c0_30 = arith.constant 0 : index
      %48 = vector.load %arg12[%c0_29, %c0_30] : memref<8x1xf32, #tpu.memory_space<vmem>>, vector<8x1xf32>
      tpu.vector_store %arg12[%c0_29, %c0_30], %47 {strides = array<i32>} : memref<8x1xf32, #tpu.memory_space<vmem>>, vector<8x1xf32>,
    } else {
    }
    %c0 = arith.constant 0 : index
    %c0_2 = arith.constant 0 : index
    %5 = vector.load %arg10[%c0, %c0_2] : memref<8x32xf32, #tpu.memory_space<vmem>>, vector<8x32xf32>
    %c0_3 = arith.constant 0 : index
    %c0_4 = arith.constant 0 : index
    %6 = vector.load %arg6[%c0_3, %c0_4] : memref<32x128xbf16, #tpu.memory_space<vmem>>, vector<32x128xbf16>
    %7 = arith.truncf %5 : vector<8x32xf32> to vector<8x32xbf16>
    %cst = arith.constant dense<0.000000e+00> : vector<8x128xf32>
    %8 = tpu.matmul %7, %6, %cst {dimension_numbers = #tpu.dot_dimension_numbers<[1], [0], [0], [1], [0, 0, 1, 1], [], []>} : vector<8x32xbf16>, vector<32x128xbf16>, vector<8x128xf32> -> vector<8x128xf32>
    %c0_5 = arith.constant 0 : index
    %c0_6 = arith.constant 0 : index
    %9 = vector.load %arg7[%c0_5, %c0_6] : memref<1x128xf32, #tpu.memory_space<vmem>>, vector<1x128xf32>
    %10 = vector.broadcast %9 : vector<1x128xf32> to vector<8x128xf32>
    %11 = arith.addf %8, %10 : vector<8x128xf32>
    %c0_i32_7 = arith.constant 0 : i32
    %12 = arith.cmpi eq, %arg1, %c0_i32_7 : i32
    %13 = arith.extui %12 : i1 to i32
    %c0_i32_8 = arith.constant 0 : i32
    %14 = arith.cmpi ne, %13, %c0_i32_8 : i32
    scf.if %14 {
      %c0_10 = arith.constant 0 : index
      %c0_11 = arith.constant 0 : index
      %18 = vector.load %arg11[%c0_10, %c0_11] : memref<8x1xf32, #tpu.memory_space<vmem>>, vector<8x1xf32>
      %cst_12 = arith.constant dense<0xFF800000> : vector<8xf32>
      %19 = vector.multi_reduction <maximumf>, %11, %cst_12 [1] : vector<8x128xf32> to vector<8xf32>
      %20 = vector.shape_cast %19 : vector<8xf32> to vector<8x1xf32>
      %21 = arith.maximumf %18, %20 : vector<8x1xf32>
      %c0_13 = arith.constant 0 : index
      %c0_14 = arith.constant 0 : index
      %22 = vector.load %arg12[%c0_13, %c0_14] : memref<8x1xf32, #tpu.memory_space<vmem>>, vector<8x1xf32>
      %23 = arith.subf %18, %21 : vector<8x1xf32>
      %24 = math.exp %23 : vector<8x1xf32>
      %25 = arith.mulf %22, %24 : vector<8x1xf32>
      %26 = vector.broadcast %21 : vector<8x1xf32> to vector<8x128xf32>
      %27 = arith.subf %11, %26 : vector<8x128xf32>
      %28 = math.exp %27 : vector<8x128xf32>
      %cst_15 = arith.constant dense<0.000000e+00> : vector<8xf32>
      %29 = vector.multi_reduction <add>, %28, %cst_15 [1] : vector<8x128xf32> to vector<8xf32>
      %30 = vector.shape_cast %29 : vector<8xf32> to vector<8x1xf32>
      %31 = arith.addf %25, %30 : vector<8x1xf32>
      %c0_16 = arith.constant 0 : index
      %c0_17 = arith.constant 0 : index
      %32 = vector.load %arg12[%c0_16, %c0_17] : memref<8x1xf32, #tpu.memory_space<vmem>>, vector<8x1xf32>
      tpu.vector_store %arg12[%c0_16, %c0_17], %31 {strides = array<i32>} : memref<8x1xf32, #tpu.memory_space<vmem>>, vector<8x1xf32>,
      %c0_18 = arith.constant 0 : index
      %c0_19 = arith.constant 0 : index
      %33 = vector.load %arg11[%c0_18, %c0_19] : memref<8x1xf32, #tpu.memory_space<vmem>>, vector<8x1xf32>
      tpu.vector_store %arg11[%c0_18, %c0_19], %21 {strides = array<i32>} : memref<8x1xf32, #tpu.memory_space<vmem>>, vector<8x1xf32>,
    } else {
    }
    %c1_i32 = arith.constant 1 : i32
    %15 = arith.cmpi eq, %arg1, %c1_i32 : i32
    %16 = arith.extui %15 : i1 to i32
    %c0_i32_9 = arith.constant 0 : i32
    %17 = arith.cmpi ne, %16, %c0_i32_9 : i32
    scf.if %17 {
      %c0_10 = arith.constant 0 : index
      %c0_11 = arith.constant 0 : index
      %18 = vector.load %arg11[%c0_10, %c0_11] : memref<8x1xf32, #tpu.memory_space<vmem>>, vector<8x1xf32>
      %c0_12 = arith.constant 0 : index
      %c0_13 = arith.constant 0 : index
      %19 = vector.load %arg12[%c0_12, %c0_13] : memref<8x1xf32, #tpu.memory_space<vmem>>, vector<8x1xf32>
      %20 = math.log %19 : vector<8x1xf32>
      %21 = arith.addf %18, %20 : vector<8x1xf32>
      %22 = vector.broadcast %21 : vector<8x1xf32> to vector<8x128xf32>
      %23 = arith.subf %11, %22 : vector<8x128xf32>
      %c0_14 = arith.constant 0 : index
      %c0_15 = arith.constant 0 : index
      %24 = vector.load %arg8[%c0_14, %c0_15] : memref<8x128xf32, #tpu.memory_space<vmem>>, vector<8x128xf32>
      tpu.vector_store %arg8[%c0_14, %c0_15], %23 {strides = array<i32>} : memref<8x128xf32, #tpu.memory_space<vmem>>, vector<8x128xf32>,
    } else {
    }
    return
  }
  func.func @transform_0(%arg0: i32, %arg1: i32, %arg2: i32) -> (i32, i32) {
    %c0_i32 = arith.constant 0 : i32
    %c0_i32_0 = arith.constant 0 : i32
    return %arg0, %c0_i32 : i32, i32
  }
  func.func @transform_1(%arg0: i32, %arg1: i32, %arg2: i32) -> (i32, i32) {
    %c0_i32 = arith.constant 0 : i32
    %c0_i32_0 = arith.constant 0 : i32
    %c0_i32_1 = arith.constant 0 : i32
    return %c0_i32, %c0_i32_0 : i32, i32
  }
  func.func @transform_2(%arg0: i32, %arg1: i32, %arg2: i32) -> (i32, i32) {
    %c0_i32 = arith.constant 0 : i32
    %c0_i32_0 = arith.constant 0 : i32
    %c0_i32_1 = arith.constant 0 : i32
    return %c0_i32, %c0_i32_0 : i32, i32
  }
  func.func @transform_3(%arg0: i32, %arg1: i32, %arg2: i32) -> (i32, i32) {
    %c0_i32 = arith.constant 0 : i32
    %c0_i32_0 = arith.constant 0 : i32
    return %c0_i32, %arg2 : i32, i32
  }
  func.func @transform_4(%arg0: i32, %arg1: i32, %arg2: i32) -> (i32, i32) {
    %c0_i32 = arith.constant 0 : i32
    %c0_i32_0 = arith.constant 0 : i32
    return %c0_i32, %arg2 : i32, i32
  }
  func.func @transform_5(%arg0: i32, %arg1: i32, %arg2: i32) -> (i32, i32) {
    %0 = arith.muli %arg2, %arg1 : i32
    %c0_i32 = arith.constant 0 : i32
    return %arg0, %0 : i32, i32
  }
  func.func @transform_6(%arg0: i32, %arg1: i32, %arg2: i32) -> (i32, i32) {
    %c0_i32 = arith.constant 0 : i32
    %c0_i32_0 = arith.constant 0 : i32
    return %arg0, %c0_i32 : i32, i32
  }
}

</mosaic_0001>

<bundles_post_ra>
// kernel: tpu_custom_call.1
= control target key start
LH: loop header
LB: loop body
LE: loop exit
PB: predicated region body
PF: predicated region fallthrough
CT: control target
= control target key end

     0   :  { %6 = vsyncpa [#allocation3], 0  ;;  %s341_s0 = inlined_call_operand.hbm [shape: f32[8,128], index: 0, kind: input, shape index: {}]   ;;  %s342_s1 = inlined_call_operand.hbm [shape: f32[8,128], index: 1, kind: output, shape index: {}]  }
   0x1   :  { %7 = vsyncpa [#allocation4], 0  ;;  %s262_s6 = smov 0  }
   0x2 LB: > { %s145_s7 = sadd.s32 4294967295, %s248_s6   ;;  %p146_p0 = scmp.ge.s32.totalorder %s248_s6, 1  ;;  %s248_s6 = sphi %s262_s6, %s13_s6  }
   0x3   : > { %p60_p1 = scmp.lt.s32.totalorder %s248_s6, 3  ;;  %p276_p3 = scmp.eq.s32.totalorder %s145_s7, 0 }
   0x4   : > { %s250_s10 = smov [#allocation2]   ;;  %s180_s15 = scalar_lea.hbm %s341_s0, 128 }
   0x5   : > { %p270_p2 = pnand %p146_p0, %p60_p1  ;;  %s73_s11 = sshll.u32 %s250_s10, 4  ;;  %s74_s11 = int_to_ptr.vmem [resolvable:$true] %s73_s11 }
   0x6   : > { %s347_s9 = scalar_select %p276_p3, 1, 0 }
   0x7   : > { %s346_s8 = scalar_select %p270_p2, 1, 0 }
   0x8   : > { %p162_p4 = pneg %p270_p2  ;;  %p181_p6 = scmp.ne.s32.totalorder %s341_s0, %s180_s15 }
   0x9   : > { %p187_p10 = scmp.lt.u32.totalorder %s180_s15, %s341_s0 }
   0xa   : > { %p284_p5 = pnand %p276_p3, %p162_p4 }
   0xc   : > { %p182_p7 = pneg %p284_p5 }
   0xe   : > { %p183_p8 = pnand %p182_p7, %p181_p6 }
  0x10   : > { %p184_p9 = pneg %p183_p8 }
  0x12   : > { %p189_p11 = pnand %p187_p10, %p184_p9 }
  0x14   : > { %192 = shalt.err (!%p189_p11)
}
  0x15   : > { %s193_s20 = scalar_lea.vmem %s74_s11, 128  ;;  %p201_p1 = scmp.lt.s32.totalorder %s74_s11, %s74_s11 }
  0x16   : > { %p194_p12 = scmp.ne.s32.totalorder %s74_s11, %s193_s20  ;;  %p202_p4 = scmp.lt.s32.totalorder %s193_s20, %s193_s20 }
  0x18   : > { %p196_p13 = pnand %p194_p12, %p182_p7  ;;  %p203_p3 = por %p202_p4, %p201_p1 }
  0x1a   : > { %p197_p0 = pneg %p196_p13 }
  0x1c   : > { %p204_p2 = pnand %p203_p3, %p197_p0 }
  0x1e   : > { %207 = shalt.err (!%p204_p2)
}
  0x1f   : > { %165 = dma.hbm_to_vmem [thread:$0]  (!%p284_p5), %s341_s0, 128, %s74_s11, [#allocation3]  }
  0x20   : > { %p349_p6 = scmp.ne.s32.totalorder %s346_s8, 0 }
  0x21   : > { %p350_p8 = scmp.ne.s32.totalorder (!%p349_p6), %s347_s9, 0 }
  0x22   : > { %86 = sbr.rel (%p349_p6) target bundleno = 67 (0x43), region = 24 }
  0x29   : > { %239 = dma.done.wait (%p350_p8), [#allocation3], 128  }
  0x2a   : > { %241 = vsyncadd (%p350_p8), [#allocation3], 4294967168  ;;  %s251_s23 = smov [#allocation5]   ;;  %v96_v0 = vld [vmem:[#allocation2] sm:$0xff]  ;;  %p312_p2 = scmp.eq.s32.totalorder %s145_s7, 1 }
  0x2b   : > { %s106_s24 = sshll.u32 %s251_s23, 4  ;;  %v97_v1 = vadd.f32 1.0, %v96_v0  ;;  %s107_s24 = int_to_ptr.vmem [resolvable:$true] %s106_s24 }
  0x2c   : > { %s208_s26 = scalar_lea.vmem %s107_s24, 128  ;;  %p215_p9 = scmp.lt.s32.totalorder %s107_s24, %s107_s24 }
  0x2d   : > { %98 = vst [vmem:[#allocation5] sm:$0xff] %v97_v1  ;;  %p209_p3 = scmp.ne.s32.totalorder %s107_s24, %s208_s26  ;;  %p216_p10 = scmp.lt.s32.totalorder %s208_s26, %s208_s26 }
  0x2f   : > { %p210_p5 = pnand %p209_p3, %p312_p2  ;;  %p217_p11 = por %p216_p10, %p215_p9 }
  0x31   : > { %p211_p7 = pneg %p210_p5 }
  0x33   : > { %p218_p12 = pnand %p217_p11, %p211_p7 }
  0x35   : > { %221 = shalt.err (!%p218_p12)
}
  0x36   : > { %s222_s29 = scalar_lea.hbm %s342_s1, 128 }
  0x37   : > { %p223_p13 = scmp.ne.s32.totalorder %s342_s1, %s222_s29  ;;  %p228_p4 = scmp.lt.u32.totalorder %s222_s29, %s342_s1 }
  0x39   : > { %p224_p0 = pnand %p223_p13, %p312_p2 }
  0x3b   : > { %p225_p1 = pneg %p224_p0 }
  0x3d   : > { %p230_p6 = pnand %p228_p4, %p225_p1 }
  0x3f   : > { %233 = shalt.err (!%p230_p6)
}
  0x40   : > { %159 = dma.vmem_to_hbm [thread:$0]  (%p312_p2), %s107_s24, 128, %s342_s1, [#allocation4]  }
  0x41   : > { %243 = dma.done.wait (%p312_p2), [#allocation4], 128  }
  0x42   : > { %245 = vsyncadd (%p312_p2), [#allocation4], 4294967168 }
  0x43 PF: > { %s13_s6 = sadd.s32 1, %s248_s6  }
  0x44   : > { %p10_p8 = scmp.ge.s32.totalorder %s13_s6, 4  }
  0x46   :  { %12 = sbr.rel (!%p10_p8) target bundleno = 2 (0x2), region = 53 }
  0x4d   :  { %119 = vsyncpa [#allocation3], 1 }
  0x4e   :  { %121 = vsyncpa [#allocation3 + $0x1], 1 }
  0x4f   :  { %122 = vsyncpa [#allocation4], 1 }
  0x50   :  { %124 = vsyncpa [#allocation4 + $0x1], 1 }

// kernel: tf_decoder_forward.7
= control target key start
LH: loop header
LB: loop body
LE: loop exit
PB: predicated region body
PF: predicated region fallthrough
CT: control target
= control target key end

     0   :  { %s1854_s29 = smov 0   ;;  %s1856_s30 = smov 0   ;;  %s2070_s0 = inlined_call_operand.vmem [shape: f32[2,16,32], index: 0, kind: input, shape index: {}, may-alias: {0,1}]   ;;  %s2071_s1 = inlined_call_operand.vmem [shape: f32[2,16,32], index: 1, kind: input, shape index: {}, may-alias: {0,1}]   ;;  %s2072_s2 = inlined_call_operand.vmem [shape: f32[16,16], index: 2, kind: input, shape index: {}]   ;;  %s2073_s3 = inlined_call_operand.vmem [shape: bf16[32,32], index: 3, kind: input, shape index: {}]   ;;  %s2074_s4 = inlined_call_operand.vmem [shape: f32[1,32], index: 4, kind: input, shape index: {}]   ;;  %s2075_s5 = inlined_call_operand.vmem [shape: bf16[32,32], index: 5, kind: input, shape index: {}]   ;;  %s2076_s6 = inlined_call_operand.vmem [shape: f32[1,32], index: 6, kind: input, shape index: {}]   ;;  %s2077_s7 = inlined_call_operand.vmem [shape: bf16[32,32], index: 7, kind: input, shape index: {}]   ;;  %s2078_s8 = inlined_call_operand.vmem [shape: f32[1,32], index: 8, kind: input, shape index: {}]   ;;  %s2079_s9 = inlined_call_operand.vmem [shape: bf16[32,32], index: 9, kind: input, shape index: {}]   ;;  %s2080_s10 = inlined_call_operand.vmem [shape: f32[1,32], index: 10, kind: input, shape index: {}]   ;;  %s2081_s11 = inlined_call_operand.vmem [shape: f32[1,32], index: 11, kind: input, shape index: {}]   ;;  %s2082_s12 = inlined_call_operand.vmem [shape: f32[1,32], index: 12, kind: input, shape index: {}]   ;;  %s2083_s13 = inlined_call_operand.vmem [shape: f32[2,1,16], index: 13, kind: input, shape index: {}]   ;;  %s2084_s14 = inlined_call_operand.vmem [shape: f32[2,16,32], index: 14, kind: output, shape index: {}]  }
   0x1   :  { %2090 = sst [smem:[#allocation9_spill]] %s2073_s3  ;;  %s1858_s15 = smov 0  }
   0x2   :  { %2091 = sst [smem:[#allocation10_spill]] %s2074_s4  ;;  %s1860_s16 = smov 0  }
   0x3   :  { %2092 = sst [smem:[#allocation11_spill]] %s2078_s8  ;;  %s1862_s17 = smov 0  }
   0x4   :  { %2093 = sst [smem:[#allocation12_spill]] %s2079_s9 }
   0x5   :  { %2094 = sst [smem:[#allocation13_spill]] %s2080_s10 }
   0x6 LB: > { %2095 = sst [smem:[#allocation4_spill]] %s1759_s15  ;;  %s33_s18 = sadd.s32 1, %s1759_s15  ;;  %s1767_s17 = sphi %s1862_s17, %s24_s17   ;;  %s1763_s16 = sphi %s1860_s16, %s2109_s16   ;;  %s1759_s15 = sphi %s1858_s15, %s2108_s15   ;;  %s1755_s30 = sphi %s1856_s30, %s2107_s30   ;;  %s1751_s29 = sphi %s1854_s29, %s2106_s29  }
   0x7   : > { %2096 = sst [smem:[#allocation5_spill]] %s1763_s16  ;;  %s36_s19 = sadd.s32 1, %s1763_s16 }
   0x8   : > { %2097 = sst [smem:[#allocation6_spill]] %s1767_s17  ;;  %p34_p0 = scmp.ge.s32.totalorder %s33_s18, 2 }
   0x9   : > { %p1500_p1 = scmp.ge.s32.totalorder %s1767_s17, 1  ;;  %p458_p2 = scmp.lt.s32.totalorder %s1767_s17, 5 }
   0xa   : > { %s2111_s18 = smov (%p34_p0, %s33_s18), 0  ;;  %s2113_s19 = smov (!%p34_p0, %s36_s19), %s1763_s16 }
   0xb   : > { %2098 = sst [smem:[#allocation7_spill]] %s2111_s18  ;;  %p459_p3 = pnand %p1500_p1, %p458_p2 }
   0xc   : > { %p38_p4 = scmp.ge.s32.totalorder %s2113_s19, 2  ;;  %p522_p5 = scmp.lt.s32.totalorder (!%p459_p3), %s1755_s30, 1 }
   0xd   : > { %462 = sbr.rel (%p459_p3) target bundleno = 2342 (0x926), region = 76  ;;  %p524_p6 = scmp.lt.s32.totalorder (!%p459_p3), %s1751_s29, 1 }
   0xe   : > { %s2115_s19 = smov (%p38_p4, %s2113_s19), 0  ;;  %p1508_p7 = scmp.ne.s32.totalorder (!%p459_p3), %s1751_s29, 0 }
   0xf   : > { %2099 = sst [smem:[#allocation8_spill]] %s2115_s19 }
  0x14   : > { %s2117_s30 = smov (!%p522_p5, %s1755_s30), 1  ;;  %555 = sbr.rel (%p1508_p7) target bundleno = 563 (0x233), region = 80 }
  0x15   : > { %s525_s20 = scalar_select %p524_p6, %s1751_s29, 1 }
  0x16   : > { %s1501_s21 = sshll.u32 %s2117_s30, 1  ;;  %s1540_s22 = sshll.u32 %s2117_s30, 4  ;;  %vm560_vm0 = vcmask (!%p1508_p7), 261120   ;;  %v1699_v15 = vld [vmem:[%s2075_s5] sm:$0xff] (!%p1508_p7)   ;;  %v1769_v17 = vmov (!%p1508_p7), 0.0   ;;  %v1701_v18 = vld [vmem:[%s2075_s5 + $0x8] sm:$0xff] (!%p1508_p7)  }
  0x17   : > { %s527_s23 = sadd.s32 %s1501_s21, %s525_s20  ;;  %s534_s26 = scalar_lea.vmem %s2071_s1, %s1540_s22  ;;  %v1700_v16 = vld [vmem:[%s2077_s7] sm:$0xff] (!%p1508_p7)   ;;  %1569 = vmatprep.subr.bf16.mxu0 (!%p1508_p7), %v1769_v17  ;;  %1577 = vmatprep.subr.bf16.mxu1 (!%p1508_p7), %v1769_v17  ;;  %v1702_v19 = vld [vmem:[%s2077_s7 + $0x8] sm:$0xff] (!%p1508_p7)   ;;  %vm1770_vm1 = vmmov (!%p1508_p7), 0  }
  0x18   : > { %s1502_s27 = sshll.u32 %s527_s23, 3  ;;  %s1505_s28 = sshll.u32 %s525_s20, 3  ;;  %v556_v1 = vld [vmem:[%s534_s26] sm:$0xff] (!%p1508_p7)  ;;  %v557_v2 = vld [vmem:[%s534_s26 + $0x8] sm:$0xff] (!%p1508_p7)  ;;  %1570 = vmatpush3.bf16.msra.mxu0 (!%p1508_p7), %v1699_v15  ;;  %1578 = vmatpush3.bf16.msra.mxu1 (!%p1508_p7), %v1700_v16 }
  0x19   : > { %s1898_s16 = scalar_lea.vmem %s2070_s0, %s1502_s27  ;;  %s538_s10 = scalar_lea.vmem %s2072_s2, %s1505_s28  ;;  %v561_v3 = vsel (!%p1508_p7), %vm560_vm0, %v556_v1, 0.0  ;;  %v564_v4 = vsel (!%p1508_p7), %vm560_vm0, %v557_v2, 0.0  ;;  %1571 = vmatprep.subr.bf16.mxu0 (!%p1508_p7), %v1769_v17  ;;  %1579 = vmatprep.subr.bf16.mxu1 (!%p1508_p7), %v1769_v17  ;;  %v1509_v28 = vld [vmem:[%s2081_s11] ss:$0 sm:$0xff] (!%p1508_p7) }
  0x1a   : > { %s541_s3 = scalar_lea.vmem %s2083_s13, %s2117_s30  ;;  %s1910_s24 = scalar_lea.vmem %s2084_s14, %s1502_s27  ;;  %v1912_v0 = vld [vmem:[%s538_s10] sm:$0xff]  ;;  %562 = vadd.xlane.f32.xlu0 (!%p1508_p7), %v561_v3  ;;  %1573 = vmatprep.mubr.msk.bf16.mxu0 (!%p1508_p7), %vm1770_vm1, %v1769_v17 }
  0x1b   : > { %1581 = vmatprep.mubr.msk.bf16.mxu1 %vm1770_vm1, %v1769_v17  ;;  %v1510_v32 = vld [vmem:[%s2082_s12] ss:$0 sm:$0xff]  ;;  %s2100_s21 = sld [smem:[#allocation11_spill]] }
  0x1c   : > { %1572 = vmatpush3.bf16.msra.mxu0 %v1701_v18  ;;  %1580 = vmatpush3.bf16.msra.mxu1 %v1702_v19  ;;  %v1511_v37 = vld [vmem:[%s2076_s6] ss:$0 sm:$0xff] }
  0x1e   : > { %565 = vadd.xlane.f32.xlu0 %v564_v4 }
  0x21   : > { %v1515_v39 = vld [vmem:[%s2100_s21] ss:$0 sm:$0xff] }
  0xa7   : > { %v563_v5 = vpop.xlane.xlu0 %562 }
  0xa8   : > { %v568_v6 = vmul.f32 0.03125, %v563_v5 }
  0xaa   : > { %v570_v7 = vsub.f32 %v556_v1, %v568_v6 }
  0xab   : > { %v566_v8 = vpop.xlane.xlu0 %565 }
  0xac   : > { %v569_v9 = vmul.f32 0.03125, %v566_v8  ;;  %v572_v10 = vmul.f32 %v570_v7, %v570_v7 }
  0xae   : > { %v571_v11 = vsub.f32 %v557_v2, %v569_v9  ;;  %v574_v12 = vsel %vm560_vm0, %v572_v10, 0.0 }
  0xaf   : > { %575 = vadd.xlane.f32.xlu1 %v574_v12 }
  0xb0   : > { %v573_v13 = vmul.f32 %v571_v11, %v571_v11 }
  0xb2   : > { %v577_v14 = vsel %vm560_vm0, %v573_v13, 0.0 }
  0xb3   : > { %578 = vadd.xlane.f32.xlu1 %v577_v14 }
 0x13c   : > { %v576_v20 = vpop.xlane.xlu1 %575 }
 0x13d   : > { %v580_v21 = vmul.f32 0.03125, %v576_v20 }
 0x13f   : > { %v582_v22 = vadd.f32 1e-06, %v580_v21 }
 0x140   : > { %v579_v23 = vpop.xlane.xlu1 %578 }
 0x141   : > { %1703 = vrsqrt.f32 %v582_v22  ;;  %v581_v24 = vmul.f32 0.03125, %v579_v23 }
 0x143   : > { %v583_v25 = vadd.f32 1e-06, %v581_v24 }
 0x145   : > { %1705 = vrsqrt.f32 %v583_v25 }
 0x14b   : > { %v1704_v26 = vpop.eup %1703 }
 0x14c   : > { %v586_v27 = vmul.f32 %v1704_v26, %v570_v7 }
 0x14e   : > { %v594_v31 = vmul.f32 %v1509_v28, %v586_v27 }
 0x14f   : > { %v1706_v29 = vpop.eup %1705 }
 0x150   : > { %v587_v30 = vmul.f32 %v1706_v29, %v571_v11  ;;  %v602_v34 = vadd.f32 %v1510_v32, %v594_v31 }
 0x152   : > { %v595_v33 = vmul.f32 %v1509_v28, %v587_v30 }
 0x154   : > { %v603_v35 = vadd.f32 %v1510_v32, %v595_v33 }
 0x156   : > { %v604_v36 = vpack.c.bf16 %v603_v35, %v602_v34 }
 0x158   : > { %1574 = vmatmul.mubr.msk.bf16.vlgmr.msra.gmra.mrb[0].mxu0 %vm560_vm0, %v604_v36  ;;  %1582 = vmatmul.mubr.msk.bf16.vlgmr.msra.gmra.mrb[0].mxu1 %vm560_vm0, %v604_v36 }
 0x22b   : > { %v665_v38 = vpop.f32.mrb[0].mxu0  ;;  %v731_v40 = vpop.f32.mrb[0].mxu1 }
 0x22c   : > { %v1575_v41 = vpop.f32.mrb[1].mxu0  ;;  %v1583_v42 = vpop.f32.mrb[1].mxu1  ;;  %v666_v45 = vadd.f32 %v1511_v37, %v665_v38  ;;  %v732_v46 = vadd.f32 %v1515_v39, %v731_v40 }
 0x22d   : > { %v668_v43 = vpop.f32.mrb[2].mxu0  ;;  %v734_v44 = vpop.f32.mrb[2].mxu1 }
 0x22e   : > { %v669_v47 = vadd.f32 %v1511_v37, %v668_v43  ;;  %v735_v48 = vadd.f32 %v1515_v39, %v734_v44  ;;  %v1576_v49 = vpop.f32.mrb[3].mxu0  ;;  %v1584_v50 = vpop.f32.mrb[3].mxu1 }
 0x230   : > { %v672_v51 = vpack.c.bf16 %v669_v47, %v666_v45  ;;  %v738_v52 = vpack.c.bf16 %v735_v48, %v732_v46 }
 0x232   : > { %673 = vst.msk [vmem:[#allocation2] sm:$0xff] %vm560_vm0, %v672_v51  ;;  %739 = vst.msk [vmem:[#allocation3] sm:$0xff] %vm560_vm0, %v738_v52 }
 0x233 PF: > { %v1948_v53 = vld [vmem:[%s1898_s16] sm:$0xff]  ;;  %vm743_vm2 = vcmask 261120   ;;  %s2101_s9 = sld [smem:[#allocation9_spill]]  ;;  %v1771_v61 = vmov 0.0   ;;  %vm1772_vm3 = vmmov 0   ;;  %vm843_vm4 = vcmask 64512  }
 0x234   : > { %v744_v54 = vsel %vm743_vm2, %v1948_v53, 0.0  ;;  %1585 = vmatprep.subr.bf16.mxu0 %v1771_v61  ;;  %1589 = vmatprep.mubr.msk.bf16.mxu0 %vm1772_vm3, %v1771_v61  ;;  %s1773_s29 = smov 120   ;;  %v1519_v6 = vld [vmem:[%s2081_s11] ss:$0 sm:$0xff]  ;;  %s1774_s20 = smov 112   ;;  %vm899_vm5 = vcmask 130048  }
 0x235   : > { %745 = vadd.xlane.f32.xlu0 %v744_v54  ;;  %1593 = vmatprep.subr.bf16.mxu1 %v1771_v61  ;;  %v1520_v8 = vld [vmem:[%s2082_s12] ss:$0 sm:$0xff]  ;;  %s2102_s25 = sld [smem:[#allocation10_spill]]  ;;  %s1775_s26 = smov 104   ;;  %vm1305_vm6 = vcmask 195584  }
 0x236   : > { %1595 = vmatprep.mubr.msk.bf16.mxu1 %vm1772_vm3, %v1771_v61  ;;  %v1526_v28 = vld [vmem:[%s541_s3] ss:$0 sm:$0xff]  ;;  %s2103_s21 = sld [smem:[#allocation12_spill]]  ;;  %s1776_s16 = smov 8  }
 0x237   : > { %s1777_s10 = smov 16   ;;  %s2104_s18 = sld [smem:[#allocation13_spill]] }
 0x239   : > { %v1707_v60 = vld [vmem:[%s2101_s9] sm:$0xff]   ;;  %v1708_v62 = vld [vmem:[%s2101_s9 + $0x8] sm:$0xff]  }
 0x23a   : > { %1586 = vmatpush3.bf16.msra.mxu0 %v1707_v60  ;;  %v841_v63 = vld [vmem:[#allocation2] sm:$0xff] }
 0x23b   : > { %1587 = vmatprep.subr.bf16.mxu0 %v1771_v61  ;;  %959 = vrot.lane.b32.xlu1 %v841_v63, %s1773_s29  ;;  %v848_v1 = vsel %vm843_vm4, %v841_v63, 0  ;;  %v1521_v12 = vld [vmem:[%s2102_s25] ss:$0 sm:$0xff] }
 0x23c   : > { %1594 = vmatpush3.bf16.xpose.msra.mxu1 %v848_v1 }
 0x23d   : > { %1605 = vmatprep.subr.bf16.mxu1 %v1771_v61 }
 0x23e   : > { %1588 = vmatpush3.bf16.msra.mxu0 %v1708_v62 }
 0x23f   : > { %1599 = vmatprep.subr.bf16.mxu0 %v1771_v61 }
 0x2ad   : > { %v960_v14 = vpop.permute.xlu1 %959 }
 0x2ae   : > { %v965_v20 = vsel %vm843_vm4, %v960_v14, 0 }
 0x2c2   : > { %v746_v55 = vpop.xlane.xlu0 %745 }
 0x2c3   : > { %v748_v56 = vmul.f32 0.03125, %v746_v55 }
 0x2c5   : > { %v749_v57 = vsub.f32 %v1948_v53, %v748_v56 }
 0x2c7   : > { %v750_v58 = vmul.f32 %v749_v57, %v749_v57 }
 0x2c9   : > { %v751_v59 = vsel %vm743_vm2, %v750_v58, 0.0 }
 0x2ca   : > { %752 = vadd.xlane.f32.xlu0 %v751_v59 }
 0x2e0   : > { %1071 = vrot.lane.b32.xlu0 %v841_v63, %s1774_s20 }
 0x357   : > { %v753_v2 = vpop.xlane.xlu0 %752 }
 0x358   : > { %v754_v3 = vmul.f32 0.03125, %v753_v2 }
 0x35a   : > { %v755_v4 = vadd.f32 1e-06, %v754_v3  ;;  %v842_v3 = vld [vmem:[#allocation3] sm:$0xff] }
 0x35b   : > { %v1072_v21 = vpop.permute.xlu0 %1071 }
 0x35c   : > { %1711 = vrsqrt.f32 %v755_v4  ;;  %v1077_v22 = vsel %vm843_vm4, %v1072_v21, 0 }
 0x366   : > { %v1712_v5 = vpop.eup %1711 }
 0x367   : > { %v757_v7 = vmul.f32 %v1712_v5, %v749_v57 }
 0x369   : > { %v764_v9 = vmul.f32 %v1519_v6, %v757_v7 }
 0x36b   : > { %v771_v10 = vadd.f32 %v1520_v8, %v764_v9 }
 0x36d   : > { %v772_v11 = vpack.c.bf16 %v771_v10, %v771_v10 }
 0x36f   : > { %1590 = vmatmul.mubr.msk.bf16.vlgmr.msra.gmra.mrb[0].mxu0 %vm743_vm2, %v772_v11 }
 0x370   : > { %1601 = vmatprep.mubr.msk.bf16.mxu0 %vm1772_vm3, %v1771_v61  ;;  %1600 = vmatpush3.bf16.msra.mxu0 %v842_v3 }
 0x371   : > { %1611 = vmatprep.subr.bf16.mxu0 %v1771_v61 }
 0x442   : > { %v833_v13 = vpop.f32.mrb[0].mxu0 }
 0x443   : > { %v834_v15 = vadd.f32 %v1521_v12, %v833_v13  ;;  %v1591_v16 = vpop.f32.mrb[1].mxu0 }
 0x444   : > { %v836_v17 = vpop.f32.mrb[2].mxu0 }
 0x445   : > { %v839_v18 = vpack.c.bf16 %v834_v15, %v834_v15  ;;  %v1592_v19 = vpop.f32.mrb[3].mxu0 }
 0x447   : > { %956 = vrot.lane.b32.xlu1 %v839_v18, %s1773_s29  ;;  %1596 = vmatmul.mubr.msk.bf16.vlgmr.msra.gmra.mrb[0].mxu1 %vm843_vm4, %v839_v18 }
 0x448   : > { %1606 = vmatpush3.bf16.xpose.msra.mxu1 %v965_v20  ;;  %1607 = vmatprep.mubr.msk.bf16.mxu1 %vm1772_vm3, %v1771_v61 }
 0x449   : > { %1617 = vmatprep.subr.bf16.mxu1 %v1771_v61 }
 0x44b   : > { %1069 = vrot.lane.b32.xlu1 %v839_v18, %s1774_s20 }
 0x44f   : > { %1182 = vrot.lane.b32.xlu1 %v841_v63, %s1775_s26 }
 0x453   : > { %1180 = vrot.lane.b32.xlu1 %v839_v18, %s1775_s26 }
 0x4b9   : > { %v957_v23 = vpop.permute.xlu1 %956 }
 0x4ba   : > { %1608 = vmatmul.mubr.msk.bf16.vlgmr.msra.gmra.mrb[4].mxu1 %vm843_vm4, %v957_v23 }
 0x4bb   : > { %1618 = vmatpush3.bf16.xpose.msra.mxu1 %v1077_v22  ;;  %1619 = vmatprep.mubr.msk.bf16.mxu1 %vm1772_vm3, %v1771_v61 }
 0x4bc   : > { %1629 = vmatprep.subr.bf16.mxu1 %v1771_v61 }
 0x4bd   : > { %v1070_v24 = vpop.permute.xlu1 %1069 }
 0x4c1   : > { %v1183_v25 = vpop.permute.xlu1 %1182 }
 0x4c2   : > { %v1188_v26 = vsel %vm843_vm4, %v1183_v25, 0  ;;  %1620 = vmatmul.mubr.msk.bf16.vlgmr.msra.gmra.mrb[8].mxu1 %vm843_vm4, %v1070_v24 }
 0x4c3   : > { %1630 = vmatpush3.bf16.xpose.msra.mxu1 %v1188_v26  ;;  %1631 = vmatprep.mubr.msk.bf16.mxu1 %vm1772_vm3, %v1771_v61 }
 0x4c4   : > { %1641 = vmatprep.subr.bf16.mxu1 %v1771_v61 }
 0x4c5   : > { %v1181_v27 = vpop.permute.xlu1 %1180 }
 0x4ca   : > { %1632 = vmatmul.mubr.msk.bf16.vlgmr.msra.gmra.mrb[12].mxu1 %vm843_vm4, %v1181_v27 }
 0x4cb   : > { %1645 = vmatprep.mubr.msk.bf16.mxu1 %vm1772_vm3, %v1771_v61 }
 0x51a   : > { %v884_v29 = vpop.f32.mrb[0].mxu1 }
 0x51b   : > { %v890_v30 = vmul.f32 0.35355338, %v884_v29  ;;  %v1597_v31 = vpop.f32.mrb[1].mxu1 }
 0x51c   : > { %v887_v32 = vpop.f32.mrb[2].mxu1 }
 0x51d   : > { %v897_v33 = vadd.f32 %v1526_v28, %v890_v30  ;;  %v1598_v34 = vpop.f32.mrb[3].mxu1 }
 0x51f   : > { %v898_v35 = vadd.f32 %v897_v33, %v1912_v0 }
 0x521   : > { %v900_v36 = vsel %vm899_vm5, %v898_v35, -inf }
 0x522   : > { %901 = vmax.xlane.f32.xlu1 %v900_v36 }
 0x58d   : > { %v1001_v37 = vpop.f32.mrb[4].mxu1 }
 0x58e   : > { %v1007_v38 = vmul.f32 0.35355338, %v1001_v37  ;;  %v1609_v39 = vpop.f32.mrb[5].mxu1 }
 0x58f   : > { %v1004_v40 = vpop.f32.mrb[6].mxu1 }
 0x590   : > { %v1008_v41 = vadd.f32 %v1526_v28, %v1007_v38  ;;  %v1610_v42 = vpop.f32.mrb[7].mxu1 }
 0x592   : > { %v1009_v43 = vadd.f32 %v1008_v41, %v1912_v0 }
 0x594   : > { %v1010_v44 = vsel %vm899_vm5, %v1009_v43, -inf }
 0x595   : > { %1011 = vmax.xlane.f32.xlu0 %v1010_v44  ;;  %v1113_v45 = vpop.f32.mrb[8].mxu1  ;;  %v1710_v44 = vld [vmem:[%s2103_s21 + $0x8] sm:$0xff]  }
 0x596   : > { %v1119_v46 = vmul.f32 0.35355338, %v1113_v45  ;;  %v1621_v47 = vpop.f32.mrb[9].mxu1 }
 0x597   : > { %v1116_v48 = vpop.f32.mrb[10].mxu1 }
 0x598   : > { %v1120_v49 = vadd.f32 %v1526_v28, %v1119_v46  ;;  %v1622_v50 = vpop.f32.mrb[11].mxu1 }
 0x59a   : > { %v1121_v51 = vadd.f32 %v1120_v49, %v1912_v0 }
 0x59c   : > { %v1122_v52 = vsel %vm899_vm5, %v1121_v51, -inf }
 0x59d   : > { %1123 = vmax.xlane.f32.xlu1 %v1122_v52  ;;  %v1224_v54 = vpop.f32.mrb[12].mxu1 }
 0x59e   : > { %v1230_v55 = vmul.f32 0.35355338, %v1224_v54  ;;  %v1633_v56 = vpop.f32.mrb[13].mxu1 }
 0x59f   : > { %v1227_v57 = vpop.f32.mrb[14].mxu1 }
 0x5a0   : > { %v1231_v58 = vadd.f32 %v1526_v28, %v1230_v55  ;;  %v1634_v59 = vpop.f32.mrb[15].mxu1 }
 0x5a2   : > { %v1232_v60 = vadd.f32 %v1231_v58, %v1912_v0 }
 0x5a4   : > { %v1233_v62 = vsel %vm899_vm5, %v1232_v60, -inf }
 0x5a5   : > { %1234 = vmax.xlane.f32.xlu1 %v1233_v62 }
 0x5af   : > { %v902_v63 = vpop.xlane.xlu1 %901 }
 0x5b0   : > { %v903_v1 = vsub.f32 %v898_v35, %v902_v63 }
 0x5b2   : > { %v904_v2 = vmul.f32 1.442695, %v903_v1 }
 0x5b4   : > { %1713 = vpow2.f32 %v904_v2  ;;  %v1534_v2 = vld [vmem:[%s2104_s18] ss:$0 sm:$0xff] }
 0x5be   : > { %v1714_v4 = vpop.eup %1713 }
 0x5bf   : > { %v906_v5 = vsel %vm899_vm5, %v1714_v4, 0.0 }
 0x5c0   : > { %907 = vadd.xlane.f32.xlu0 %v906_v5 }
 0x622   : > { %v1012_v6 = vpop.xlane.xlu0 %1011 }
 0x623   : > { %v1013_v7 = vsub.f32 %v1009_v43, %v1012_v6  ;;  %v1709_v43 = vld [vmem:[%s2103_s21] sm:$0xff]  }
 0x624   : > { %1642 = vmatpush3.bf16.msra.mxu1 %v1709_v43 }
 0x625   : > { %v1014_v8 = vmul.f32 1.442695, %v1013_v7  ;;  %1643 = vmatprep.subr.bf16.mxu1 %v1771_v61 }
 0x627   : > { %1715 = vpow2.f32 %v1014_v8 }
 0x628   : > { %1644 = vmatpush3.bf16.msra.mxu1 %v1710_v44 }
 0x62a   : > { %v1124_v0 = vpop.xlane.xlu1 %1123 }
 0x62b   : > { %v1125_v9 = vsub.f32 %v1121_v51, %v1124_v0 }
 0x62d   : > { %v1126_v10 = vmul.f32 1.442695, %v1125_v9 }
 0x62f   : > { %1717 = vpow2.f32 %v1126_v10 }
 0x631   : > { %v1716_v11 = vpop.eup %1715 }
 0x632   : > { %v1016_v12 = vsel %vm899_vm5, %v1716_v11, 0.0  ;;  %v1235_v16 = vpop.xlane.xlu1 %1234 }
 0x633   : > { %1017 = vadd.xlane.f32.xlu1 %v1016_v12  ;;  %v1236_v17 = vsub.f32 %v1232_v60, %v1235_v16 }
 0x635   : > { %v1237_v18 = vmul.f32 1.442695, %v1236_v17 }
 0x639   : > { %v1718_v13 = vpop.eup %1717 }
 0x63a   : > { %v1128_v14 = vsel %vm899_vm5, %v1718_v13, 0.0 }
 0x63b   : > { %1129 = vadd.xlane.f32.xlu0 %v1128_v14 }
 0x644   : > { %1134 = vrot.lane.b32.xlu1 %v842_v3, %s1774_s20 }
 0x64d   : > { %v908_v15 = vpop.xlane.xlu0 %907 }
 0x64e   : > { %1719 = vrcp.f32 %v908_v15 }
 0x64f   : > { %1721 = vpow2.f32 %v1237_v18 }
 0x651   : > { %1023 = vrot.lane.b32.xlu0 %v842_v3, %s1773_s29  ;;  %s1778_s29 = smov 24  }
 0x658   : > { %v1720_v19 = vpop.eup %1719 }
 0x659   : > { %v910_v20 = vmul.f32 %v1720_v19, %v1714_v4  ;;  %v1722_v22 = vpop.eup %1721 }
 0x65a   : > { %v1239_v23 = vsel %vm899_vm5, %v1722_v22, 0.0 }
 0x65b   : > { %v911_v21 = vpack.c.bf16 %v910_v20, %v910_v20 }
 0x65d   : > { %1602 = vmatmul.mubr.msk.bf16.vlgmr.msra.gmra.mrb[4].mxu0 %vm899_vm5, %v911_v21 }
 0x65e   : > { %1613 = vmatprep.mubr.msk.bf16.mxu0 %vm1772_vm3, %v1771_v61 }
 0x668   : > { %1240 = vadd.xlane.f32.xlu1 %v1239_v23 }
 0x679   : > { %1245 = vrot.lane.b32.xlu1 %v842_v3, %s1775_s26  ;;  %v1315_v3 = vadd.f32 %v1534_v2, %v1948_v53 }
 0x6c0   : > { %v1018_v24 = vpop.xlane.xlu1 %1017 }
 0x6c1   : > { %1723 = vrcp.f32 %v1018_v24 }
 0x6c4   : > { %v1135_v30 = vpop.permute.xlu1 %1134 }
 0x6c8   : > { %v1130_v25 = vpop.xlane.xlu0 %1129 }
 0x6c9   : > { %1725 = vrcp.f32 %v1130_v25 }
 0x6cb   : > { %v1724_v26 = vpop.eup %1723 }
 0x6cc   : > { %v1020_v27 = vmul.f32 %v1724_v26, %v1716_v11  ;;  %v1024_v28 = vpop.permute.xlu0 %1023 }
 0x6cd   : > { %1612 = vmatpush3.bf16.msra.mxu0 %v1024_v28 }
 0x6ce   : > { %v1021_v29 = vpack.c.bf16 %v1020_v27, %v1020_v27  ;;  %1623 = vmatprep.subr.bf16.mxu0 %v1771_v61 }
 0x6d0   : > { %1614 = vmatmul.mubr.msk.bf16.vlgmr.msra.gmra.mrb[8].mxu0 %vm899_vm5, %v1021_v29 }
 0x6d1   : > { %1624 = vmatpush3.bf16.msra.mxu0 %v1135_v30  ;;  %1625 = vmatprep.mubr.msk.bf16.mxu0 %vm1772_vm3, %v1771_v61 }
 0x6d2   : > { %1635 = vmatprep.subr.bf16.mxu0 %v1771_v61 }
 0x6d3   : > { %v1726_v31 = vpop.eup %1725 }
 0x6d4   : > { %v1132_v32 = vmul.f32 %v1726_v31, %v1718_v13 }
 0x6d6   : > { %v1133_v33 = vpack.c.bf16 %v1132_v32, %v1132_v32 }
 0x6d8   : > { %1626 = vmatmul.mubr.msk.bf16.vlgmr.msra.gmra.mrb[12].mxu0 %vm899_vm5, %v1133_v33 }
 0x6d9   : > { %1637 = vmatprep.mubr.msk.bf16.mxu0 %vm1772_vm3, %v1771_v61 }
 0x6f5   : > { %v1241_v34 = vpop.xlane.xlu1 %1240 }
 0x6f6   : > { %1727 = vrcp.f32 %v1241_v34 }
 0x6f9   : > { %v1246_v35 = vpop.permute.xlu1 %1245 }
 0x6fa   : > { %1636 = vmatpush3.bf16.msra.mxu0 %v1246_v35 }
 0x700   : > { %v1728_v36 = vpop.eup %1727 }
 0x701   : > { %v1243_v37 = vmul.f32 %v1728_v36, %v1722_v22 }
 0x703   : > { %v1244_v38 = vpack.c.bf16 %v1243_v37, %v1243_v37 }
 0x705   : > { %1638 = vmatmul.mubr.msk.bf16.vlgmr.msra.gmra.mrb[16].mxu0 %vm899_vm5, %v1244_v38 }
 0x730   : > { %v949_v39 = vpop.f32.mrb[4].mxu0 }
 0x731   : > { %v1603_v40 = vpop.f32.mrb[5].mxu0 }
 0x732   : > { %v952_v41 = vpop.f32.mrb[6].mxu0 }
 0x733   : > { %v1604_v42 = vpop.f32.mrb[7].mxu0 }
 0x7a3   : > { %v1063_v45 = vpop.f32.mrb[8].mxu0 }
 0x7a4   : > { %1292 = vrot.lane.b32.xlu0 %v1063_v45, %s1776_s16  ;;  %v1615_v46 = vpop.f32.mrb[9].mxu0 }
 0x7a5   : > { %v1066_v47 = vpop.f32.mrb[10].mxu0 }
 0x7a6   : > { %v1616_v48 = vpop.f32.mrb[11].mxu0 }
 0x7ab   : > { %v1174_v49 = vpop.f32.mrb[12].mxu0 }
 0x7ac   : > { %1296 = vrot.lane.b32.xlu1 %v1174_v49, %s1777_s10  ;;  %v1627_v50 = vpop.f32.mrb[13].mxu0 }
 0x7ad   : > { %v1177_v51 = vpop.f32.mrb[14].mxu0 }
 0x7ae   : > { %v1628_v52 = vpop.f32.mrb[15].mxu0 }
 0x7d8   : > { %v1285_v54 = vpop.f32.mrb[16].mxu0 }
 0x7d9   : > { %1300 = vrot.lane.b32.xlu0 %v1285_v54, %s1778_s29  ;;  %v1639_v55 = vpop.f32.mrb[17].mxu0 }
 0x7da   : > { %v1288_v56 = vpop.f32.mrb[18].mxu0 }
 0x7db   : > { %v1640_v57 = vpop.f32.mrb[19].mxu0 }
 0x816   : > { %v1293_v61 = vpop.permute.xlu0 %1292 }
 0x817   : > { %v1303_v59 = vsel %vm843_vm4, %v949_v39, %v1293_v61 }
 0x81e   : > { %v1297_v58 = vpop.permute.xlu1 %1296 }
 0x81f   : > { %v1304_v60 = vsel %vm899_vm5, %v1303_v59, %v1297_v58 }
 0x84b   : > { %v1301_v62 = vpop.permute.xlu0 %1300 }
 0x84c   : > { %v1306_v63 = vsel %vm1305_vm6, %v1304_v60, %v1301_v62 }
 0x84d   : > { %v1307_v1 = vpack.c.bf16 %v1306_v63, %v1306_v63 }
 0x84f   : > { %1646 = vmatmul.mubr.msk.bf16.vlgmr.msra.gmra.mrb[16].mxu1 %vm743_vm2, %v1307_v1 }
 0x922   : > { %v1369_v4 = vpop.f32.mrb[16].mxu1 }
 0x923   : > { %v1375_v5 = vadd.f32 %v1369_v4, %v1315_v3  ;;  %v1647_v6 = vpop.f32.mrb[17].mxu1 }
 0x924   : > { %v1372_v7 = vpop.f32.mrb[18].mxu1 }
 0x925   : > { %1376 = vst.msk [vmem:[%s1910_s24] sm:$0xff] %vm743_vm2, %v1375_v5  ;;  %v1648_v8 = vpop.f32.mrb[19].mxu1 }
 0x926 PF: > { %s2105_s19 = sld [smem:[#allocation6_spill]]  ;;  %s2106_s29 = sld [smem:[#allocation4_spill]] }
 0x927   : > { %s2107_s30 = sld [smem:[#allocation5_spill]]  ;;  %s2108_s15 = sld [smem:[#allocation7_spill]] }
 0x928   : > { %s2109_s16 = sld [smem:[#allocation8_spill]] }
 0x92c   : > { %s24_s17 = sadd.s32 1, %s2105_s19  }
 0x92d   : > { %p21_p8 = scmp.ge.s32.totalorder %s24_s17, 6  }
 0x92f   :  { %23 = sbr.rel (!%p21_p8) target bundleno = 6 (0x6), region = 119 }

// kernel: tf_decoder_forward.8
= control target key start
LH: loop header
LB: loop body
LE: loop exit
PB: predicated region body
PF: predicated region fallthrough
CT: control target
= control target key end

     0   :  { %s1736_s25 = smov 0   ;;  %s1738_s26 = smov 0   ;;  %s1928_s0 = inlined_call_operand.vmem [shape: f32[2,16,32], index: 0, kind: input, shape index: {}]   ;;  %s1929_s1 = inlined_call_operand.vmem [shape: f32[2,16,32], index: 1, kind: input, shape index: {}]   ;;  %s1930_s2 = inlined_call_operand.vmem [shape: bf16[32,32], index: 2, kind: input, shape index: {}]   ;;  %s1931_s3 = inlined_call_operand.vmem [shape: f32[1,32], index: 3, kind: input, shape index: {}]   ;;  %s1932_s4 = inlined_call_operand.vmem [shape: bf16[32,32], index: 4, kind: input, shape index: {}]   ;;  %s1933_s5 = inlined_call_operand.vmem [shape: f32[1,32], index: 5, kind: input, shape index: {}]   ;;  %s1934_s6 = inlined_call_operand.vmem [shape: bf16[32,32], index: 6, kind: input, shape index: {}]   ;;  %s1935_s7 = inlined_call_operand.vmem [shape: f32[1,32], index: 7, kind: input, shape index: {}]   ;;  %s1936_s8 = inlined_call_operand.vmem [shape: bf16[32,32], index: 8, kind: input, shape index: {}]   ;;  %s1937_s9 = inlined_call_operand.vmem [shape: f32[1,32], index: 9, kind: input, shape index: {}]   ;;  %s1938_s10 = inlined_call_operand.vmem [shape: f32[1,32], index: 10, kind: input, shape index: {}]   ;;  %s1939_s11 = inlined_call_operand.vmem [shape: f32[1,32], index: 11, kind: input, shape index: {}]   ;;  %s1940_s12 = inlined_call_operand.vmem [shape: f32[2,1,16], index: 12, kind: input, shape index: {}]   ;;  %s1941_s13 = inlined_call_operand.vmem [shape: f32[2,16,32], index: 13, kind: output, shape index: {}]  }
   0x1   :  { %1946 = sst [smem:[#allocation9_spill]] %s1936_s8  ;;  %s1740_s27 = smov 0  }
   0x2   :  { %1947 = sst [smem:[#allocation10_spill]] %s1937_s9  ;;  %s1742_s28 = smov 0  }
   0x3   :  { %s1744_s29 = smov 0  }
   0x4 LB: > { %1948 = sst [smem:[#allocation4_spill]] %s1646_s27  ;;  %s32_s30 = sadd.s32 1, %s1646_s27  ;;  %s1654_s29 = sphi %s1744_s29, %s23_s29   ;;  %s1650_s28 = sphi %s1742_s28, %s1959_s28   ;;  %s1646_s27 = sphi %s1740_s27, %s1958_s27   ;;  %s1642_s26 = sphi %s1738_s26, %s1957_s26   ;;  %s1638_s25 = sphi %s1736_s25, %s1956_s25  }
   0x5   : > { %1949 = sst [smem:[#allocation5_spill]] %s1650_s28  ;;  %s35_s14 = sadd.s32 1, %s1650_s28 }
   0x6   : > { %1950 = sst [smem:[#allocation6_spill]] %s1654_s29  ;;  %p33_p0 = scmp.ge.s32.totalorder %s32_s30, 2 }
   0x7   : > { %p1394_p1 = scmp.ge.s32.totalorder %s1654_s29, 1  ;;  %p424_p2 = scmp.lt.s32.totalorder %s1654_s29, 5 }
   0x8   : > { %s1961_s30 = smov (%p33_p0, %s32_s30), 0  ;;  %s1963_s14 = smov (!%p33_p0, %s35_s14), %s1650_s28 }
   0x9   : > { %1951 = sst [smem:[#allocation7_spill]] %s1961_s30  ;;  %p425_p3 = pnand %p1394_p1, %p424_p2 }
   0xa   : > { %p37_p4 = scmp.ge.s32.totalorder %s1963_s14, 2  ;;  %p482_p5 = scmp.lt.s32.totalorder (!%p425_p3), %s1642_s26, 1 }
   0xb   : > { %428 = sbr.rel (%p425_p3) target bundleno = 2026 (0x7ea), region = 72  ;;  %p484_p6 = scmp.lt.s32.totalorder (!%p425_p3), %s1638_s25, 1 }
   0xc   : > { %s1965_s14 = smov (%p37_p4, %s1963_s14), 0  ;;  %p1401_p7 = scmp.ne.s32.totalorder (!%p425_p3), %s1638_s25, 0 }
   0xd   : > { %1952 = sst [smem:[#allocation8_spill]] %s1965_s14 }
  0x12   : > { %s1967_s26 = smov (!%p482_p5, %s1642_s26), 1  ;;  %510 = sbr.rel (%p1401_p7) target bundleno = 249 (0xf9), region = 76 }
  0x13   : > { %s485_s15 = scalar_select %p484_p6, %s1638_s25, 1 }
  0x14   : > { %s1395_s16 = sshll.u32 %s1967_s26, 1  ;;  %s1431_s17 = sshll.u32 %s1967_s26, 4  ;;  %v1590_v0 = vld [vmem:[%s1932_s4] sm:$0xff] (!%p1401_p7)   ;;  %v1656_v1 = vmov (!%p1401_p7), 0.0   ;;  %v1592_v3 = vld [vmem:[%s1932_s4 + $0x8] sm:$0xff] (!%p1401_p7)   ;;  %vm1657_vm0 = vmmov (!%p1401_p7), 0  }
  0x15   : > { %s487_s18 = sadd.s32 %s1395_s16, %s485_s15  ;;  %s494_s21 = scalar_lea.vmem %s1929_s1, %s1431_s17  ;;  %1460 = vmatprep.subr.bf16.mxu0 (!%p1401_p7), %v1656_v1  ;;  %1468 = vmatprep.subr.bf16.mxu1 (!%p1401_p7), %v1656_v1  ;;  %v1591_v2 = vld [vmem:[%s1934_s6] sm:$0xff] (!%p1401_p7)   ;;  %v1593_v4 = vld [vmem:[%s1934_s6 + $0x8] sm:$0xff] (!%p1401_p7)   ;;  %vm537_vm1 = vcmask (!%p1401_p7), 261120  }
  0x16   : > { %s1396_s22 = sshll.u32 %s487_s18, 3  ;;  %s497_s14 = scalar_lea.vmem %s1940_s12, %s1967_s26  ;;  %1461 = vmatpush3.bf16.msra.mxu0 (!%p1401_p7), %v1590_v0  ;;  %1464 = vmatprep.mubr.msk.bf16.mxu0 (!%p1401_p7), %vm1657_vm0, %v1656_v1  ;;  %v511_v5 = vld [vmem:[%s494_s21] sm:$0xff] (!%p1401_p7)  ;;  %v512_v6 = vld [vmem:[%s494_s21 + $0x8] sm:$0xff] (!%p1401_p7) }
  0x17   : > { %s1780_s27 = scalar_lea.vmem %s1928_s0, %s1396_s22  ;;  %s1785_s8 = scalar_lea.vmem %s1941_s13, %s1396_s22  ;;  %1469 = vmatpush3.bf16.msra.mxu1 (!%p1401_p7), %v1591_v2  ;;  %1462 = vmatprep.subr.bf16.mxu0 (!%p1401_p7), %v1656_v1  ;;  %v513_v7 = vpack.c.bf16 (!%p1401_p7), %v512_v6, %v511_v5  ;;  %v1402_v8 = vld [vmem:[%s1933_s5] ss:$0 sm:$0xff] (!%p1401_p7) }
  0x18   : > { %1470 = vmatprep.subr.bf16.mxu1 (!%p1401_p7), %v1656_v1  ;;  %1472 = vmatprep.mubr.msk.bf16.mxu1 (!%p1401_p7), %vm1657_vm0, %v1656_v1  ;;  %v1406_v10 = vld [vmem:[%s1935_s7] ss:$0 sm:$0xff] (!%p1401_p7) }
  0x1a   : > { %1463 = vmatpush3.bf16.msra.mxu0 %v1592_v3 }
  0x1b   : > { %1471 = vmatpush3.bf16.msra.mxu1 %v1593_v4 }
  0x1d   : > { %1465 = vmatmul.mubr.msk.bf16.vlgmr.msra.gmra.mrb[0].mxu0 %vm537_vm1, %v513_v7 }
  0x1e   : > { %1473 = vmatmul.mubr.msk.bf16.vlgmr.msra.gmra.mrb[0].mxu1 %vm537_vm1, %v513_v7 }
  0xf0   : > { %v575_v9 = vpop.f32.mrb[0].mxu0 }
  0xf1   : > { %v641_v11 = vpop.f32.mrb[0].mxu1  ;;  %v1466_v12 = vpop.f32.mrb[1].mxu0  ;;  %v576_v15 = vadd.f32 %v1402_v8, %v575_v9 }
  0xf2   : > { %v1474_v13 = vpop.f32.mrb[1].mxu1  ;;  %v578_v14 = vpop.f32.mrb[2].mxu0  ;;  %v642_v19 = vadd.f32 %v1406_v10, %v641_v11 }
  0xf3   : > { %v579_v16 = vadd.f32 %v1402_v8, %v578_v14  ;;  %v644_v17 = vpop.f32.mrb[2].mxu1  ;;  %v1467_v18 = vpop.f32.mrb[3].mxu0 }
  0xf4   : > { %v645_v20 = vadd.f32 %v1406_v10, %v644_v17  ;;  %v1475_v21 = vpop.f32.mrb[3].mxu1 }
  0xf5   : > { %v582_v22 = vpack.c.bf16 %v579_v16, %v576_v15 }
  0xf6   : > { %v648_v23 = vpack.c.bf16 %v645_v20, %v642_v19 }
  0xf7   : > { %583 = vst.msk [vmem:[#allocation2] sm:$0xff] %vm537_vm1, %v582_v22 }
  0xf8   : > { %649 = vst.msk [vmem:[#allocation3] sm:$0xff] %vm537_vm1, %v648_v23 }
  0xf9 PF: > { %v1810_v24 = vld [vmem:[%s1780_s27] sm:$0xff]  ;;  %vm653_vm2 = vcmask 261120   ;;  %v1658_v32 = vmov 0.0   ;;  %vm1659_vm3 = vmmov 0   ;;  %v1595_v33 = vld [vmem:[%s1930_s2 + $0x8] sm:$0xff]   ;;  %vm753_vm4 = vcmask 64512  }
  0xfa   : > { %v654_v25 = vsel %vm653_vm2, %v1810_v24, 0.0  ;;  %v1594_v31 = vld [vmem:[%s1930_s2] sm:$0xff]   ;;  %1476 = vmatprep.subr.bf16.mxu0 %v1658_v32  ;;  %1480 = vmatprep.mubr.msk.bf16.mxu0 %vm1659_vm3, %v1658_v32  ;;  %s1660_s15 = smov 120   ;;  %s1661_s30 = smov 112   ;;  %vm808_vm5 = vcmask 130048   ;;  %vm1211_vm6 = vcmask 195584  }
  0xfb   : > { %655 = vadd.xlane.f32.xlu0 %v654_v25  ;;  %1477 = vmatpush3.bf16.msra.mxu0 %v1594_v31  ;;  %v1410_v40 = vld [vmem:[%s1938_s10] ss:$0 sm:$0xff]  ;;  %s1662_s29 = smov 104   ;;  %s1953_s22 = sld [smem:[#allocation9_spill]] }
  0xfc   : > { %1484 = vmatprep.subr.bf16.mxu1 %v1658_v32  ;;  %1478 = vmatprep.subr.bf16.mxu0 %v1658_v32  ;;  %v1411_v42 = vld [vmem:[%s1939_s11] ss:$0 sm:$0xff]  ;;  %s1663_s27 = smov 8   ;;  %s1664_s24 = smov 16  }
  0xfd   : > { %1486 = vmatprep.mubr.msk.bf16.mxu1 %vm1659_vm3, %v1658_v32  ;;  %v1412_v46 = vld [vmem:[%s1931_s3] ss:$0 sm:$0xff]  ;;  %s1954_s18 = sld [smem:[#allocation10_spill]] }
  0xfe   : > { %v751_v34 = vld [vmem:[#allocation2] sm:$0xff] }
  0xff   : > { %1479 = vmatpush3.bf16.msra.mxu0 %v1595_v33  ;;  %868 = vrot.lane.b32.xlu1 %v751_v34, %s1660_s15  ;;  %v758_v35 = vsel %vm753_vm4, %v751_v34, 0  ;;  %v1417_v63 = vld [vmem:[%s497_s14] ss:$0 sm:$0xff]  ;;  %v752_v31 = vld [vmem:[#allocation3] sm:$0xff] }
 0x100   : > { %1490 = vmatprep.subr.bf16.mxu0 %v1658_v32  ;;  %1485 = vmatpush3.bf16.xpose.msra.mxu1 %v758_v35 }
 0x101   : > { %1496 = vmatprep.subr.bf16.mxu1 %v1658_v32 }
 0x171   : > { %v869_v48 = vpop.permute.xlu1 %868 }
 0x172   : > { %v874_v54 = vsel %vm753_vm4, %v869_v48, 0 }
 0x188   : > { %v656_v26 = vpop.xlane.xlu0 %655 }
 0x189   : > { %v658_v27 = vmul.f32 0.03125, %v656_v26 }
 0x18b   : > { %v659_v28 = vsub.f32 %v1810_v24, %v658_v27 }
 0x18d   : > { %v660_v29 = vmul.f32 %v659_v28, %v659_v28 }
 0x18f   : > { %v661_v30 = vsel %vm653_vm2, %v660_v29, 0.0 }
 0x190   : > { %662 = vadd.xlane.f32.xlu0 %v661_v30 }
 0x1a6   : > { %979 = vrot.lane.b32.xlu0 %v751_v34, %s1661_s30 }
 0x21d   : > { %v663_v36 = vpop.xlane.xlu0 %662 }
 0x21e   : > { %v664_v37 = vmul.f32 0.03125, %v663_v36 }
 0x220   : > { %v665_v38 = vadd.f32 1e-06, %v664_v37 }
 0x221   : > { %v980_v55 = vpop.permute.xlu0 %979 }
 0x222   : > { %1598 = vrsqrt.f32 %v665_v38  ;;  %v985_v56 = vsel %vm753_vm4, %v980_v55, 0 }
 0x22c   : > { %v1599_v39 = vpop.eup %1598 }
 0x22d   : > { %v667_v41 = vmul.f32 %v1599_v39, %v659_v28 }
 0x22f   : > { %v674_v43 = vmul.f32 %v1410_v40, %v667_v41 }
 0x231   : > { %v681_v44 = vadd.f32 %v1411_v42, %v674_v43 }
 0x233   : > { %v682_v45 = vpack.c.bf16 %v681_v44, %v681_v44 }
 0x235   : > { %1481 = vmatmul.mubr.msk.bf16.vlgmr.msra.gmra.mrb[0].mxu0 %vm653_vm2, %v682_v45 }
 0x236   : > { %1492 = vmatprep.mubr.msk.bf16.mxu0 %vm1659_vm3, %v1658_v32  ;;  %1491 = vmatpush3.bf16.msra.mxu0 %v752_v31 }
 0x237   : > { %1502 = vmatprep.subr.bf16.mxu0 %v1658_v32 }
 0x308   : > { %v743_v47 = vpop.f32.mrb[0].mxu0 }
 0x309   : > { %v744_v49 = vadd.f32 %v1412_v46, %v743_v47  ;;  %v1482_v50 = vpop.f32.mrb[1].mxu0 }
 0x30a   : > { %v746_v51 = vpop.f32.mrb[2].mxu0 }
 0x30b   : > { %v749_v52 = vpack.c.bf16 %v744_v49, %v744_v49  ;;  %v1483_v53 = vpop.f32.mrb[3].mxu0 }
 0x30d   : > { %865 = vrot.lane.b32.xlu1 %v749_v52, %s1660_s15  ;;  %1487 = vmatmul.mubr.msk.bf16.vlgmr.msra.gmra.mrb[0].mxu1 %vm753_vm4, %v749_v52 }
 0x30e   : > { %1497 = vmatpush3.bf16.xpose.msra.mxu1 %v874_v54  ;;  %1498 = vmatprep.mubr.msk.bf16.mxu1 %vm1659_vm3, %v1658_v32 }
 0x30f   : > { %1508 = vmatprep.subr.bf16.mxu1 %v1658_v32 }
 0x311   : > { %977 = vrot.lane.b32.xlu1 %v749_v52, %s1661_s30 }
 0x315   : > { %1089 = vrot.lane.b32.xlu1 %v751_v34, %s1662_s29 }
 0x319   : > { %1087 = vrot.lane.b32.xlu1 %v749_v52, %s1662_s29 }
 0x37f   : > { %v866_v57 = vpop.permute.xlu1 %865 }
 0x380   : > { %1499 = vmatmul.mubr.msk.bf16.vlgmr.msra.gmra.mrb[4].mxu1 %vm753_vm4, %v866_v57 }
 0x381   : > { %1509 = vmatpush3.bf16.xpose.msra.mxu1 %v985_v56  ;;  %1510 = vmatprep.mubr.msk.bf16.mxu1 %vm1659_vm3, %v1658_v32 }
 0x382   : > { %1520 = vmatprep.subr.bf16.mxu1 %v1658_v32 }
 0x383   : > { %v978_v58 = vpop.permute.xlu1 %977 }
 0x387   : > { %v1090_v59 = vpop.permute.xlu1 %1089 }
 0x388   : > { %v1095_v60 = vsel %vm753_vm4, %v1090_v59, 0  ;;  %1511 = vmatmul.mubr.msk.bf16.vlgmr.msra.gmra.mrb[8].mxu1 %vm753_vm4, %v978_v58 }
 0x389   : > { %1521 = vmatpush3.bf16.xpose.msra.mxu1 %v1095_v60  ;;  %1522 = vmatprep.mubr.msk.bf16.mxu1 %vm1659_vm3, %v1658_v32 }
 0x38a   : > { %1532 = vmatprep.subr.bf16.mxu1 %v1658_v32 }
 0x38b   : > { %v1088_v61 = vpop.permute.xlu1 %1087 }
 0x390   : > { %1523 = vmatmul.mubr.msk.bf16.vlgmr.msra.gmra.mrb[12].mxu1 %vm753_vm4, %v1088_v61 }
 0x391   : > { %1536 = vmatprep.mubr.msk.bf16.mxu1 %vm1659_vm3, %v1658_v32 }
 0x3e0   : > { %v794_v62 = vpop.f32.mrb[0].mxu1 }
 0x3e1   : > { %v800_v0 = vmul.f32 0.35355338, %v794_v62  ;;  %v1488_v1 = vpop.f32.mrb[1].mxu1 }
 0x3e2   : > { %v797_v2 = vpop.f32.mrb[2].mxu1 }
 0x3e3   : > { %v1489_v3 = vpop.f32.mrb[3].mxu1  ;;  %v807_v4 = vadd.f32 %v1417_v63, %v800_v0 }
 0x3e5   : > { %v809_v5 = vsel %vm808_vm5, %v807_v4, -inf }
 0x3e6   : > { %810 = vmax.xlane.f32.xlu1 %v809_v5 }
 0x453   : > { %v910_v6 = vpop.f32.mrb[4].mxu1 }
 0x454   : > { %v916_v7 = vmul.f32 0.35355338, %v910_v6  ;;  %v1500_v8 = vpop.f32.mrb[5].mxu1 }
 0x455   : > { %v913_v9 = vpop.f32.mrb[6].mxu1 }
 0x456   : > { %v1501_v10 = vpop.f32.mrb[7].mxu1  ;;  %v917_v11 = vadd.f32 %v1417_v63, %v916_v7  ;;  %v1596_v9 = vld [vmem:[%s1953_s22] sm:$0xff]  }
 0x457   : > { %1533 = vmatpush3.bf16.msra.mxu1 %v1596_v9  ;;  %v1597_v10 = vld [vmem:[%s1953_s22 + $0x8] sm:$0xff]  }
 0x458   : > { %v918_v12 = vsel %vm808_vm5, %v917_v11, -inf  ;;  %1534 = vmatprep.subr.bf16.mxu1 %v1658_v32 }
 0x459   : > { %919 = vmax.xlane.f32.xlu0 %v918_v12 }
 0x45b   : > { %v1021_v13 = vpop.f32.mrb[8].mxu1  ;;  %1535 = vmatpush3.bf16.msra.mxu1 %v1597_v10 }
 0x45c   : > { %v1027_v14 = vmul.f32 0.35355338, %v1021_v13  ;;  %v1512_v15 = vpop.f32.mrb[9].mxu1 }
 0x45d   : > { %v1024_v16 = vpop.f32.mrb[10].mxu1 }
 0x45e   : > { %v1513_v17 = vpop.f32.mrb[11].mxu1  ;;  %v1028_v18 = vadd.f32 %v1417_v63, %v1027_v14 }
 0x460   : > { %v1029_v19 = vsel %vm808_vm5, %v1028_v18, -inf }
 0x461   : > { %1030 = vmax.xlane.f32.xlu1 %v1029_v19 }
 0x463   : > { %v1131_v20 = vpop.f32.mrb[12].mxu1 }
 0x464   : > { %v1137_v21 = vmul.f32 0.35355338, %v1131_v20  ;;  %v1524_v22 = vpop.f32.mrb[13].mxu1 }
 0x465   : > { %v1134_v23 = vpop.f32.mrb[14].mxu1 }
 0x466   : > { %v1525_v25 = vpop.f32.mrb[15].mxu1  ;;  %v1138_v26 = vadd.f32 %v1417_v63, %v1137_v21 }
 0x468   : > { %v1139_v27 = vsel %vm808_vm5, %v1138_v26, -inf }
 0x469   : > { %1140 = vmax.xlane.f32.xlu1 %v1139_v27 }
 0x473   : > { %v811_v28 = vpop.xlane.xlu1 %810 }
 0x474   : > { %v812_v29 = vsub.f32 %v807_v4, %v811_v28 }
 0x476   : > { %v813_v30 = vmul.f32 1.442695, %v812_v29 }
 0x478   : > { %1600 = vpow2.f32 %v813_v30  ;;  %v1425_v30 = vld [vmem:[%s1954_s18] ss:$0 sm:$0xff] }
 0x482   : > { %v1601_v33 = vpop.eup %1600 }
 0x483   : > { %v815_v34 = vsel %vm808_vm5, %v1601_v33, 0.0 }
 0x484   : > { %816 = vadd.xlane.f32.xlu0 %v815_v34 }
 0x4e6   : > { %v920_v35 = vpop.xlane.xlu0 %919 }
 0x4e7   : > { %v921_v36 = vsub.f32 %v917_v11, %v920_v35 }
 0x4e9   : > { %v922_v37 = vmul.f32 1.442695, %v921_v36 }
 0x4eb   : > { %1602 = vpow2.f32 %v922_v37 }
 0x4ee   : > { %v1031_v38 = vpop.xlane.xlu1 %1030 }
 0x4ef   : > { %v1032_v39 = vsub.f32 %v1028_v18, %v1031_v38 }
 0x4f1   : > { %v1033_v40 = vmul.f32 1.442695, %v1032_v39 }
 0x4f3   : > { %1604 = vpow2.f32 %v1033_v40 }
 0x4f5   : > { %v1603_v41 = vpop.eup %1602 }
 0x4f6   : > { %v924_v42 = vsel %vm808_vm5, %v1603_v41, 0.0  ;;  %v1141_v46 = vpop.xlane.xlu1 %1140 }
 0x4f7   : > { %925 = vadd.xlane.f32.xlu1 %v924_v42  ;;  %v1142_v47 = vsub.f32 %v1138_v26, %v1141_v46 }
 0x4f9   : > { %v1143_v48 = vmul.f32 1.442695, %v1142_v47 }
 0x4fd   : > { %v1605_v43 = vpop.eup %1604 }
 0x4fe   : > { %v1035_v44 = vsel %vm808_vm5, %v1605_v43, 0.0 }
 0x4ff   : > { %1036 = vadd.xlane.f32.xlu0 %v1035_v44 }
 0x508   : > { %1041 = vrot.lane.b32.xlu1 %v752_v31, %s1661_s30 }
 0x511   : > { %v817_v45 = vpop.xlane.xlu0 %816 }
 0x512   : > { %1606 = vrcp.f32 %v817_v45 }
 0x513   : > { %1608 = vpow2.f32 %v1143_v48 }
 0x515   : > { %931 = vrot.lane.b32.xlu0 %v752_v31, %s1660_s15  ;;  %s1665_s15 = smov 24  }
 0x51c   : > { %v1607_v49 = vpop.eup %1606 }
 0x51d   : > { %v819_v50 = vmul.f32 %v1607_v49, %v1601_v33  ;;  %v1609_v52 = vpop.eup %1608 }
 0x51e   : > { %v1145_v53 = vsel %vm808_vm5, %v1609_v52, 0.0 }
 0x51f   : > { %v820_v51 = vpack.c.bf16 %v819_v50, %v819_v50 }
 0x521   : > { %1493 = vmatmul.mubr.msk.bf16.vlgmr.msra.gmra.mrb[4].mxu0 %vm808_vm5, %v820_v51 }
 0x522   : > { %1504 = vmatprep.mubr.msk.bf16.mxu0 %vm1659_vm3, %v1658_v32 }
 0x52c   : > { %1146 = vadd.xlane.f32.xlu1 %v1145_v53 }
 0x53d   : > { %1151 = vrot.lane.b32.xlu1 %v752_v31, %s1662_s29  ;;  %v1221_v31 = vadd.f32 %v1425_v30, %v1810_v24 }
 0x584   : > { %v926_v54 = vpop.xlane.xlu1 %925 }
 0x585   : > { %1610 = vrcp.f32 %v926_v54 }
 0x588   : > { %v1042_v60 = vpop.permute.xlu1 %1041 }
 0x58c   : > { %v1037_v55 = vpop.xlane.xlu0 %1036 }
 0x58d   : > { %1612 = vrcp.f32 %v1037_v55 }
 0x58f   : > { %v1611_v56 = vpop.eup %1610 }
 0x590   : > { %v928_v57 = vmul.f32 %v1611_v56, %v1603_v41  ;;  %v932_v58 = vpop.permute.xlu0 %931 }
 0x591   : > { %1503 = vmatpush3.bf16.msra.mxu0 %v932_v58 }
 0x592   : > { %v929_v59 = vpack.c.bf16 %v928_v57, %v928_v57  ;;  %1514 = vmatprep.subr.bf16.mxu0 %v1658_v32 }
 0x594   : > { %1505 = vmatmul.mubr.msk.bf16.vlgmr.msra.gmra.mrb[8].mxu0 %vm808_vm5, %v929_v59 }
 0x595   : > { %1515 = vmatpush3.bf16.msra.mxu0 %v1042_v60  ;;  %1516 = vmatprep.mubr.msk.bf16.mxu0 %vm1659_vm3, %v1658_v32 }
 0x596   : > { %1526 = vmatprep.subr.bf16.mxu0 %v1658_v32 }
 0x597   : > { %v1613_v61 = vpop.eup %1612 }
 0x598   : > { %v1039_v62 = vmul.f32 %v1613_v61, %v1605_v43 }
 0x59a   : > { %v1040_v63 = vpack.c.bf16 %v1039_v62, %v1039_v62 }
 0x59c   : > { %1517 = vmatmul.mubr.msk.bf16.vlgmr.msra.gmra.mrb[12].mxu0 %vm808_vm5, %v1040_v63 }
 0x59d   : > { %1528 = vmatprep.mubr.msk.bf16.mxu0 %vm1659_vm3, %v1658_v32 }
 0x5b9   : > { %v1147_v0 = vpop.xlane.xlu1 %1146 }
 0x5ba   : > { %1614 = vrcp.f32 %v1147_v0 }
 0x5bd   : > { %v1152_v1 = vpop.permute.xlu1 %1151 }
 0x5be   : > { %1527 = vmatpush3.bf16.msra.mxu0 %v1152_v1 }
 0x5c4   : > { %v1615_v2 = vpop.eup %1614 }
 0x5c5   : > { %v1149_v3 = vmul.f32 %v1615_v2, %v1609_v52 }
 0x5c7   : > { %v1150_v4 = vpack.c.bf16 %v1149_v3, %v1149_v3 }
 0x5c9   : > { %1529 = vmatmul.mubr.msk.bf16.vlgmr.msra.gmra.mrb[16].mxu0 %vm808_vm5, %v1150_v4 }
 0x5f4   : > { %v858_v5 = vpop.f32.mrb[4].mxu0 }
 0x5f5   : > { %v1494_v6 = vpop.f32.mrb[5].mxu0 }
 0x5f6   : > { %v861_v7 = vpop.f32.mrb[6].mxu0 }
 0x5f7   : > { %v1495_v8 = vpop.f32.mrb[7].mxu0 }
 0x667   : > { %v971_v11 = vpop.f32.mrb[8].mxu0 }
 0x668   : > { %1198 = vrot.lane.b32.xlu0 %v971_v11, %s1663_s27  ;;  %v1506_v12 = vpop.f32.mrb[9].mxu0 }
 0x669   : > { %v974_v13 = vpop.f32.mrb[10].mxu0 }
 0x66a   : > { %v1507_v14 = vpop.f32.mrb[11].mxu0 }
 0x66f   : > { %v1081_v15 = vpop.f32.mrb[12].mxu0 }
 0x670   : > { %1202 = vrot.lane.b32.xlu1 %v1081_v15, %s1664_s24  ;;  %v1518_v16 = vpop.f32.mrb[13].mxu0 }
 0x671   : > { %v1084_v17 = vpop.f32.mrb[14].mxu0 }
 0x672   : > { %v1519_v18 = vpop.f32.mrb[15].mxu0 }
 0x69c   : > { %v1191_v19 = vpop.f32.mrb[16].mxu0 }
 0x69d   : > { %1206 = vrot.lane.b32.xlu0 %v1191_v19, %s1665_s15  ;;  %v1530_v20 = vpop.f32.mrb[17].mxu0 }
 0x69e   : > { %v1194_v21 = vpop.f32.mrb[18].mxu0 }
 0x69f   : > { %v1531_v22 = vpop.f32.mrb[19].mxu0 }
 0x6da   : > { %v1199_v32 = vpop.permute.xlu0 %1198 }
 0x6db   : > { %v1209_v25 = vsel %vm753_vm4, %v858_v5, %v1199_v32 }
 0x6e2   : > { %v1203_v23 = vpop.permute.xlu1 %1202 }
 0x6e3   : > { %v1210_v26 = vsel %vm808_vm5, %v1209_v25, %v1203_v23 }
 0x70f   : > { %v1207_v27 = vpop.permute.xlu0 %1206 }
 0x710   : > { %v1212_v28 = vsel %vm1211_vm6, %v1210_v26, %v1207_v27 }
 0x711   : > { %v1213_v29 = vpack.c.bf16 %v1212_v28, %v1212_v28 }
 0x713   : > { %1537 = vmatmul.mubr.msk.bf16.vlgmr.msra.gmra.mrb[16].mxu1 %vm653_vm2, %v1213_v29 }
 0x7e6   : > { %v1275_v33 = vpop.f32.mrb[16].mxu1 }
 0x7e7   : > { %v1281_v34 = vadd.f32 %v1275_v33, %v1221_v31  ;;  %v1538_v35 = vpop.f32.mrb[17].mxu1 }
 0x7e8   : > { %v1278_v36 = vpop.f32.mrb[18].mxu1 }
 0x7e9   : > { %1282 = vst.msk [vmem:[%s1785_s8] sm:$0xff] %vm653_vm2, %v1281_v34  ;;  %v1539_v37 = vpop.f32.mrb[19].mxu1 }
 0x7ea PF: > { %s1955_s28 = sld [smem:[#allocation6_spill]]  ;;  %s1956_s25 = sld [smem:[#allocation4_spill]] }
 0x7eb   : > { %s1957_s26 = sld [smem:[#allocation5_spill]]  ;;  %s1958_s27 = sld [smem:[#allocation7_spill]] }
 0x7f0   : > { %s23_s29 = sadd.s32 1, %s1955_s28   ;;  %s1959_s28 = sld [smem:[#allocation8_spill]] }
 0x7f1   : > { %p20_p8 = scmp.ge.s32.totalorder %s23_s29, 6  }
 0x7f3   :  { %22 = sbr.rel (!%p20_p8) target bundleno = 4 (0x4), region = 112 }

// kernel: tf_decoder_forward.13
= control target key start
LH: loop header
LB: loop body
LE: loop exit
PB: predicated region body
PF: predicated region fallthrough
CT: control target
= control target key end

     0   :  { %s1266_s0 = inlined_call_operand.vmem [shape: f32[32,32], index: 0, kind: input, shape index: {}]   ;;  %s1267_s1 = inlined_call_operand.vmem [shape: f32[1,32], index: 1, kind: input, shape index: {}]   ;;  %s1268_s2 = inlined_call_operand.vmem [shape: f32[1,32], index: 2, kind: input, shape index: {}]   ;;  %s1269_s3 = inlined_call_operand.vmem [shape: bf16[32,256], index: 3, kind: input, shape index: {}]   ;;  %s1270_s4 = inlined_call_operand.vmem [shape: f32[1,256], index: 4, kind: input, shape index: {}]   ;;  %s1271_s5 = inlined_call_operand.vmem [shape: f32[32,256], index: 5, kind: output, shape index: {0}]   ;;  %s1272_s6 = inlined_call_operand.hbm [shape: f32[32,32], index: 6, kind: output, shape index: {1}]  }
   0x1   :  { %1285 = sst [smem:[#allocation22_spill]] %s1269_s3 }
   0x2   :  { %12 = vsyncpa [#allocation7], 0 }
   0x3   :  { %14 = vsyncpa [#allocation7 + $0x1], 0  ;;  %s1027_s21 = smov 0   ;;  %s1029_s22 = smov 0  }
   0x4   :  { %s1031_s23 = smov 0   ;;  %s1033_s24 = smov 0  }
   0x5   :  { %s1035_s25 = smov 0   ;;  %s1037_s26 = smov 0  }
   0x6   :  { %s1039_s27 = smov 0   ;;  %s1041_s28 = smov 0  }
   0x7   :  { %s1043_s29 = smov 0   ;;  %s1045_s30 = smov 0  }
   0x8   :  { %s1047_s7 = smov 0   ;;  %s1049_s8 = smov 0  }
   0x9 LB: > { %1286 = sst [smem:[#allocation9_spill]] %s939_s21  ;;  %s701_s9 = sadd.s32 4294967295, %s983_s8   ;;  %s983_s8 = sphi %s1049_s8, %s20_s8   ;;  %s979_s7 = sphi %s1047_s7, %s1316_s7   ;;  %s975_s30 = sphi %s1045_s30, %s1319_s30   ;;  %s971_s29 = sphi %s1043_s29, %s1314_s29   ;;  %s967_s28 = sphi %s1041_s28, %s1313_s28   ;;  %s963_s27 = sphi %s1039_s27, %s1312_s27   ;;  %s959_s26 = sphi %s1037_s26, %s1311_s26   ;;  %s955_s25 = sphi %s1035_s25, %s1310_s25   ;;  %s951_s24 = sphi %s1033_s24, %s1309_s24   ;;  %s947_s23 = sphi %s1031_s23, %s1308_s23   ;;  %s943_s22 = sphi %s1029_s22, %s1318_s22   ;;  %s939_s21 = sphi %s1027_s21, %s1317_s21  }
   0xa   : > { %1287 = sst [smem:[#allocation10_spill]] %s947_s23  ;;  %s702_s10 = sadd.s32 4294967294, %s983_s8  }
   0xb   : > { %1288 = sst [smem:[#allocation11_spill]] %s955_s25  ;;  %s32_s11 = sadd.s32 1, %s971_s29 }
   0xc   : > { %1289 = sst [smem:[#allocation12_spill]] %s971_s29  ;;  %p33_p0 = scmp.ge.s32.totalorder %s32_s11, 2 }
   0xd   : > { %1290 = sst [smem:[#allocation13_spill]] %s975_s30  ;;  %s35_s12 = sadd.s32 1, %s975_s30 }
   0xe   : > { %1291 = sst [smem:[#allocation14_spill]] %s979_s7  ;;  %s39_s13 = sadd.s32 1, %s979_s7 }
   0xf   : > { %1292 = sst [smem:[#allocation15_spill]] %s983_s8  ;;  %p121_p1 = scmp.ne.s32.totalorder %s955_s25, %s951_s24 }
  0x10   : > { %s1321_s11 = smov (%p33_p0, %s32_s11), 0  ;;  %s1323_s12 = smov (!%p33_p0, %s35_s12), %s975_s30 }
  0x11   : > { %1293 = sst [smem:[#allocation16_spill]] %s1321_s11  ;;  %s111_s14 = ssub.s32 %s971_s29, %s1321_s11 }
  0x12   : > { %p122_p2 = scmp.eq.s32.totalorder %s983_s8, 0  ;;  %p37_p3 = scmp.ge.s32.totalorder %s1323_s12, 2 }
  0x13   : > { %p112_p4 = scmp.eq.s32.totalorder %s111_s14, 0  ;;  %s114_s15 = sadd.s32 1, %s955_s25 }
  0x14   : > { %p1101_p5 = por %p122_p2, %p121_p1  ;;  %s1325_s12 = smov (%p37_p3, %s1323_s12), 0 }
  0x15   : > { %1295 = sst [smem:[#allocation17_spill]] %s1325_s12  ;;  %s1327_s13 = smov (!%p37_p3, %s39_s13), %s979_s7 }
  0x16   : > { %s1109_s17 = scalar_select %p112_p4, %s955_s25, %s114_s15  }
  0x17   : > { %p41_p6 = scmp.ge.s32.totalorder %s1327_s13, 4  ;;  %p206_p7 = scmp.ne.s32.totalorder %s947_s23, %s943_s22 }
  0x18   : > { %1296 = sst [smem:[#allocation18_spill]] %s1109_s17  ;;  %p207_p8 = scmp.eq.s32.totalorder %s701_s9, 15 }
  0x19   : > { %p212_p9 = scmp.ne.s32.totalorder %s943_s22, %s939_s21  ;;  %s1329_s13 = smov (%p41_p6, %s1327_s13), 0 }
  0x1a   : > { %1297 = sst [smem:[#allocation19_spill]] %s1329_s13  ;;  %p1117_p10 = por %p207_p8, %p206_p7 }
  0x1b   : > { %p213_p11 = scmp.eq.s32.totalorder %s702_s10, 15  ;;  %s193_s19 = ssub.s32 %s979_s7, %s1329_s13 }
  0x1c   : > { %s196_s20 = sadd.s32 1, %s947_s23  ;;  %p194_p12 = scmp.eq.s32.totalorder %s193_s19, 0 }
  0x1d   : > { %p1124_p13 = por %p213_p11, %p212_p9  ;;  %p704_p0 = scmp.ge.s32.totalorder %s983_s8, 16 }
  0x1e   : > { %s1129_s15 = scalar_select %p194_p12, %s947_s23, %s196_s20  }
  0x1f   : > { %s1299_s14 = scalar_select %p1124_p13, 1, 0 }
  0x20   : > { %1301 = sst [smem:[#allocation21_spill]] %s1129_s15  ;;  %235 = sbr.rel (%p704_p0) target bundleno = 51 (0x33), region = 24 }
  0x21   : > { %1300 = sst [smem:[#allocation20_spill]] %s1299_s14 }
  0x27   : > { %245 = sbr.rel (!%p1101_p5) target bundleno = 51 (0x33), region = 32  ;;  %s247_s9 = sand.u32 (%p1101_p5), 1, %s955_s25  }
  0x28   : > { %s706_s12 = sshll.u32 (%p1101_p5), %s971_s29, 2  ;;  %s705_s10 = sshll.u32 (%p1101_p5), %s247_s9, 4 }
  0x29   : > { %s1302_s3 = sld [smem:[#allocation22_spill]] (%p1101_p5)  ;;  %s249_s7 = scalar_lea.vmem (%p1101_p5), [#allocation5], %s705_s10 }
  0x2f   : > { %s251_s19 = scalar_lea.vmem %s1302_s3, %s706_s12 }
  0x30   : > { %v267_v0 = vld [vmem:[%s251_s19] sm:$0xf]  ;;  %v269_v1 = vld [vmem:[%s251_s19 + $0x8] sm:$0xf]  ;;  %v271_v2 = vld [vmem:[%s251_s19 + $0x10] sm:$0xf] }
  0x31   : > { %268 = vst [vmem:[%s249_s7] sm:$0xf] %v267_v0  ;;  %270 = vst [vmem:[%s249_s7 + $0x4] sm:$0xf] %v269_v1  ;;  %v273_v3 = vld [vmem:[%s251_s19 + $0x18] sm:$0xf] }
  0x32   : > { %272 = vst [vmem:[%s249_s7 + $0x8] sm:$0xf] %v271_v2  ;;  %274 = vst [vmem:[%s249_s7 + $0xc] sm:$0xf] %v273_v3 }
  0x33 PF: > { %p707_p1 = scmp.ge.s32.totalorder %s983_s8, 1  ;;  %p310_p2 = scmp.lt.s32.totalorder %s983_s8, 17 }
  0x35   : > { %p311_p3 = pnand %p707_p1, %p310_p2 }
  0x36   : > { %s317_s11 = sand.u32 (!%p311_p3), 1, %s951_s24   ;;  %s1277_s7 = sand.u32 (!%p311_p3), 1, %s943_s22  }
  0x37   : > { %314 = sbr.rel (%p311_p3) target bundleno = 1214 (0x4be), region = 77  ;;  %s1143_s12 = sshll.u32 (!%p311_p3), %s317_s11, 4 }
  0x38   : > { %s1147_s13 = sshll.u32 (!%p311_p3), %s1277_s7, 3  ;;  %p362_p4 = scmp.lt.s32.totalorder (!%p311_p3), %s967_s28, 3 }
  0x39   : > { %p366_p5 = scmp.lt.s32.totalorder (!%p311_p3), %s959_s26, 1  ;;  %s369_s16 = smul.u32 (!%p311_p3), %s959_s26, %s963_s27 }
  0x3a   : > { %p380_p6 = scmp.eq.s32.totalorder (!%p311_p3), %s963_s27, 0  ;;  %p381_p8 = scmp.eq.s32.totalorder (!%p311_p3), %s959_s26, 0 }
  0x3b   : > { %p372_p7 = scmp.lt.s32.totalorder (!%p311_p3), %s369_s16, 1  ;;  %s319_s21 = scalar_lea.vmem (!%p311_p3), [#allocation5], %s1143_s12 }
  0x3c   : > { %p382_p9 = pnand (!%p311_p3), %p381_p8, %p380_p6  ;;  %s361_s8 = scalar_lea.vmem (!%p311_p3), [#allocation6], %s1147_s13 }
  0x3e   : > { %s363_s20 = scalar_select %p362_p4, %s967_s28, 3 }
  0x3f   : > { %s1156_s9 = scalar_select %p366_p5, %s959_s26, 1 }
  0x40   : > { %s710_s10 = sshll.u32 %s363_s20, 3  ;;  %s1331_s16 = smov (!%p372_p7, %s369_s16), 1  ;;  %vm389_vm0 = vcmask (!%p382_p9), 261120   ;;  %vm420_vm1 = vcmask (!%p382_p9), 7168   ;;  %v985_v11 = vmov (!%p382_p9), -inf   ;;  %v986_v12 = vmov (!%p382_p9), 0.0  }
  0x41   : > { %s365_s11 = scalar_lea.vmem %s1266_s0, %s710_s10  ;;  %s368_s7 = scalar_lea.vmem %s1270_s4, %s1156_s9  ;;  %421 = vst.msk [vmem:[#allocation3] sm:$0xff] (!%p382_p9), %vm420_vm1, %v985_v11  ;;  %422 = vst.msk [vmem:[#allocation4] sm:$0xff] (!%p382_p9), %vm420_vm1, %v986_v12  ;;  %v713_v17 = vld [vmem:[%s1267_s1] ss:$0 sm:$0xff] (!%p382_p9) }
  0x42   : > { %s711_s29 = sshll.u32 %s363_s20, 1  ;;  %385 = sbr.rel (%p382_p9) target bundleno = 381 (0x17d), region = 85  ;;  %v386_v4 = vld [vmem:[%s365_s11] sm:$0xff] (!%p382_p9) }
  0x43   : > { %s375_s17 = sadd.s32 %s711_s29, %s1331_s16  ;;  %v390_v5 = vsel (!%p382_p9), %vm389_vm0, %v386_v4, 0.0  ;;  %v714_v19 = vld [vmem:[%s1268_s2] ss:$0 sm:$0xff] (!%p382_p9) }
  0x44   : > { %s712_s25 = sshll.u32 %s375_s17, 3  ;;  %391 = vadd.xlane.f32.xlu0 (!%p382_p9), %v390_v5 }
  0x45   : > { %s1169_s14 = scalar_lea.vmem %s1271_s5, %s712_s25 }
  0xd1   : > { %v392_v6 = vpop.xlane.xlu0 %391 }
  0xd2   : > { %v394_v7 = vmul.f32 0.03125, %v392_v6 }
  0xd4   : > { %v395_v8 = vsub.f32 %v386_v4, %v394_v7 }
  0xd6   : > { %v396_v9 = vmul.f32 %v395_v8, %v395_v8 }
  0xd8   : > { %v397_v10 = vsel %vm389_vm0, %v396_v9, 0.0 }
  0xd9   : > { %398 = vadd.xlane.f32.xlu0 %v397_v10 }
 0x166   : > { %v399_v13 = vpop.xlane.xlu0 %398 }
 0x167   : > { %v400_v14 = vmul.f32 0.03125, %v399_v13 }
 0x169   : > { %v401_v15 = vadd.f32 1e-06, %v400_v14 }
 0x16b   : > { %845 = vrsqrt.f32 %v401_v15 }
 0x175   : > { %v846_v16 = vpop.eup %845 }
 0x176   : > { %v403_v18 = vmul.f32 %v846_v16, %v395_v8 }
 0x178   : > { %v410_v20 = vmul.f32 %v713_v17, %v403_v18 }
 0x17a   : > { %v417_v21 = vadd.f32 %v714_v19, %v410_v20 }
 0x17c   : > { %418 = vst.msk [vmem:[#allocation2] sm:$0xff] %vm389_vm0, %v417_v21  ;;  %419 = vst.msk [vmem:[%s361_s8] sm:$0xff] %vm389_vm0, %v417_v21 }
 0x17d PF: > { %v847_v22 = vld [vmem:[%s319_s21] sm:$0xff]   ;;  %v987_v23 = vmov 0.0   ;;  %v848_v24 = vld [vmem:[%s319_s21 + $0x8] sm:$0xff]   ;;  %vm988_vm2 = vmmov 0   ;;  %vm448_vm3 = vcmask 261120   ;;  %p719_p11 = scmp.ne.s32.totalorder %s963_s27, 0 }
 0x17e   : > { %728 = vmatprep.subr.bf16.mxu0 %v987_v23  ;;  %732 = vmatprep.mubr.msk.bf16.mxu0 %vm988_vm2, %v987_v23  ;;  %v715_v27 = vld [vmem:[%s368_s7] ss:$0 sm:$0xff]  ;;  %v989_v33 = vmov (!%p719_p11), 0   ;;  %v495_v34 = vld [vmem:[#allocation3] sm:$0xff] (!%p719_p11)  ;;  %vm515_vm4 = vcmask (!%p719_p11), 7168   ;;  %v499_v44 = vld [vmem:[#allocation4] sm:$0xff] (!%p719_p11) }
 0x17f   : > { %729 = vmatpush3.bf16.msra.mxu0 %v847_v22  ;;  %849 = vset.pattern.permute.xlu0 (!%p719_p11), %v989_v33 }
 0x180   : > { %730 = vmatprep.subr.bf16.mxu0 %v987_v23 }
 0x183   : > { %v423_v25 = vld [vmem:[#allocation2] sm:$0xff]  ;;  %731 = vmatpush3.bf16.msra.mxu0 %v848_v24 }
 0x184   : > { %v428_v26 = vpack.c.bf16 %v423_v25, %v423_v25 }
 0x186   : > { %733 = vmatmul.mubr.msk.bf16.vlgmr.msra.gmra.mrb[0].mxu0 %vm448_vm3, %v428_v26 }
 0x256   : > { %494 = sbr.rel (%p719_p11) target bundleno = 1036 (0x40c), region = 89 }
 0x259   : > { %v486_v28 = vpop.f32.mrb[0].mxu0 }
 0x25a   : > { %v487_v29 = vadd.f32 %v715_v27, %v486_v28  ;;  %v734_v30 = vpop.f32.mrb[1].mxu0 }
 0x25b   : > { %v489_v31 = vpop.f32.mrb[2].mxu0 }
 0x25c   : > { %v735_v32 = vpop.f32.mrb[3].mxu0  ;;  %496 = vmax.xlane.f32.xlu0 (!%p719_p11), %v487_v29 }
 0x2e9   : > { %v497_v35 = vpop.xlane.xlu0 %496 }
 0x2ea   : > { %v498_v36 = vmax.f32 %v495_v34, %v497_v35 }
 0x2ec   : > { %v500_v37 = vsub.f32 %v495_v34, %v498_v36  ;;  %517 = vst.msk [vmem:[#allocation3] sm:$0xff] %vm515_vm4, %v498_v36  ;;  %506 = vperm.xlu0 %849, %v498_v36  }
 0x2ee   : > { %v501_v42 = vmul.f32 1.442695, %v500_v37 }
 0x36b   : > { %v507_v38 = vpop.permute.xlu0 %506 }
 0x36c   : > { %v509_v39 = vsub.f32 %v487_v29, %v507_v38 }
 0x36e   : > { %v510_v40 = vmul.f32 1.442695, %v509_v39 }
 0x370   : > { %850 = vpow2.f32 %v510_v40 }
 0x371   : > { %852 = vpow2.f32 %v501_v42 }
 0x37a   : > { %v851_v41 = vpop.eup %850 }
 0x37b   : > { %512 = vadd.xlane.f32.xlu1 %v851_v41  ;;  %v853_v43 = vpop.eup %852 }
 0x37c   : > { %v503_v45 = vmul.f32 %v853_v43, %v499_v44 }
 0x408   : > { %v513_v46 = vpop.xlane.xlu1 %512 }
 0x409   : > { %v514_v47 = vadd.f32 %v513_v46, %v503_v45 }
 0x40b   : > { %516 = vst.msk [vmem:[#allocation4] sm:$0xff] %vm515_vm4, %v514_v47 }
 0x40c PF: > { %p720_p12 = scmp.ne.s32.totalorder %s963_s27, 1 }
 0x40d   : > { %v990_v49 = vmov (!%p720_p12), 0   ;;  %v522_v51 = vld [vmem:[#allocation3] sm:$0xff] (!%p720_p12) }
 0x40e   : > { %521 = sbr.rel (%p720_p12) target bundleno = 1189 (0x4a5), region = 93  ;;  %854 = vset.pattern.permute.xlu0 (!%p720_p12), %v990_v49 }
 0x412   : > { %v523_v48 = vld [vmem:[#allocation4] sm:$0xff] (!%p720_p12) }
 0x413   : > { %855 = vlog2.f32 (!%p720_p12), %v523_v48 }
 0x41d   : > { %v856_v50 = vpop.eup %855 }
 0x41e   : > { %v525_v52 = vmul.f32 0.6931472, %v856_v50 }
 0x420   : > { %v526_v53 = vadd.f32 %v525_v52, %v522_v51 }
 0x422   : > { %529 = vperm.xlu0 %854, %v526_v53  }
 0x4a1   : > { %v530_v54 = vpop.permute.xlu0 %529 }
 0x4a2   : > { %v532_v55 = vsub.f32 %v487_v29, %v530_v54 }
 0x4a4   : > { %533 = vst [vmem:[%s1169_s14] sm:$0xff] %v532_v55 }
 0x4a5 PF: > { %s722_s21 = sshll.u32 %s967_s28, 7  ;;  %s561_s7 = sshll.u32 %s361_s8, 4  ;;  %s562_s7 = int_to_ptr.vmem [resolvable:$true] %s561_s7 }
 0x4a6   : > { %s1203_s15 = scalar_lea.hbm %s1272_s6, %s722_s21  ;;  %s1303_s12 = sand.u32 1, %s943_s22  }
 0x4a7   : > { %s544_s16 = scalar_lea.sflag [#allocation7], %s1303_s12  ;;  %s857_s20 = scalar_lea.vmem %s562_s7, 128 }
 0x4a8   : > { %p858_p0 = scmp.ne.s32.totalorder %s562_s7, %s857_s20  ;;  %s991_s14 = smov [#allocation6]  }
 0x4a9   : > { %s861_s9 = sshll.u32 %s991_s14, 4  ;;  %s862_s9 = int_to_ptr.vmem [resolvable:$false] %s861_s9 }
 0x4aa   : > { %p859_p1 = pnand %p858_p0, %p1117_p10  ;;  %s863_s10 = scalar_lea.vmem %s862_s9, 256 }
 0x4ab   : > { %p864_p3 = scmp.lt.s32.totalorder %s562_s7, %s862_s9  ;;  %p865_p4 = scmp.lt.s32.totalorder %s863_s10, %s857_s20 }
 0x4ac   : > { %p860_p2 = pneg %p859_p1 }
 0x4ad   : > { %p866_p5 = por %p865_p4, %p864_p3 }
 0x4af   : > { %p867_p6 = pnand %p866_p5, %p860_p2 }
 0x4b1   : > { %870 = shalt.err (!%p867_p6)
}
 0x4b2   : > { %s871_s28 = scalar_lea.hbm %s1203_s15, 128  ;;  %s875_s24 = scalar_lea.hbm %s1272_s6, 512 }
 0x4b3   : > { %p872_p7 = scmp.ne.s32.totalorder %s1203_s15, %s871_s28  ;;  %p876_p11 = scmp.lt.u32.totalorder %s1203_s15, %s1272_s6 }
 0x4b4   : > { %p877_p12 = scmp.lt.u32.totalorder %s875_s24, %s871_s28  ;;  %p879_p1 = scmp.lt.u32.totalorder %s871_s28, %s1203_s15 }
 0x4b5   : > { %p873_p8 = pnand %p872_p7, %p1117_p10 }
 0x4b6   : > { %p878_p0 = por %p877_p12, %p876_p11 }
 0x4b7   : > { %p874_p9 = pneg %p873_p8 }
 0x4b8   : > { %p880_p2 = por %p879_p1, %p878_p0 }
 0x4ba   : > { %p881_p3 = pnand %p880_p2, %p874_p9 }
 0x4bc   : > { %884 = shalt.err (!%p881_p3)
}
 0x4bd   : > { %736 = dma.vmem_to_hbm [thread:$0]  (%p1117_p10), %s562_s7, 128, %s1203_s15, %s544_s16  }
 0x4be PF: > { %s1304_s3 = sld [smem:[#allocation15_spill]]  ;;  %s1305_s23 = sld [smem:[#allocation9_spill]] }
 0x4c4   : > { %p742_p4 = scmp.ge.s32.totalorder %s1304_s3, 2  ;;  %s585_s26 = sand.u32 1, %s1305_s23  }
 0x4c5   : > { %s586_s29 = scalar_lea.sflag [#allocation7], %s585_s26 }
 0x4c6   : > { %p739_p5 = pnand %p742_p4, %p1124_p13 }
 0x4c8   : > { %934 = dma.done.wait (!%p739_p5), %s586_s29, 128  }
 0x4c9   : > { %936 = vsyncadd (!%p739_p5), %s586_s29, 4294967168  ;;  %s20_s8 = sadd.s32 1, %s1304_s3   ;;  %s1307_s30 = sld [smem:[#allocation10_spill]] }
 0x4ca   : > { %p17_p6 = scmp.ge.s32.totalorder %s20_s8, 18   ;;  %s1308_s23 = sld [smem:[#allocation21_spill]] }
 0x4cb   : > { %s1309_s24 = sld [smem:[#allocation11_spill]]  ;;  %s1310_s25 = sld [smem:[#allocation18_spill]] }
 0x4cc   : > { %s1311_s26 = sld [smem:[#allocation12_spill]]  ;;  %s1312_s27 = sld [smem:[#allocation13_spill]] }
 0x4cd   : > { %s1313_s28 = sld [smem:[#allocation14_spill]]  ;;  %s1314_s29 = sld [smem:[#allocation16_spill]] }
 0x4ce   : > { %s1315_s18 = sld [smem:[#allocation17_spill]]  ;;  %s1316_s7 = sld [smem:[#allocation19_spill]] }
 0x4cf   : > { %s1317_s21 = smov %s943_s22  ;;  %s1318_s22 = smov %s1307_s30 }
 0x4d0   :  { %19 = sbr.rel (!%p17_p6) target bundleno = 9 (0x9), region = 151 }
 0x4d4   : > { %s1319_s30 = smov %s1315_s18 }
 0x4d7   :  { %591 = vsyncpa [#allocation7], 1 }
 0x4d8   :  { %593 = vsyncpa [#allocation7 + $0x1], 1 }

// kernel: tf_decoder_forward.9
= control target key start
LH: loop header
LB: loop body
LE: loop exit
PB: predicated region body
PF: predicated region fallthrough
CT: control target
= control target key end

     0   :  { %s1115_s0 = inlined_call_operand.vmem [shape: f32[32,32], index: 0, kind: input, shape index: {}]   ;;  %s1116_s1 = inlined_call_operand.vmem [shape: f32[1,32], index: 1, kind: input, shape index: {}]   ;;  %s1117_s2 = inlined_call_operand.vmem [shape: f32[1,32], index: 2, kind: input, shape index: {}]   ;;  %s1118_s3 = inlined_call_operand.vmem [shape: bf16[32,256], index: 3, kind: input, shape index: {}]   ;;  %s1119_s4 = inlined_call_operand.vmem [shape: f32[1,256], index: 4, kind: input, shape index: {}]   ;;  %s1120_s5 = inlined_call_operand.vmem [shape: bf16[256,32], index: 5, kind: input, shape index: {}]   ;;  %s1121_s6 = inlined_call_operand.vmem [shape: f32[1,32], index: 6, kind: input, shape index: {}]   ;;  %s1122_s7 = inlined_call_operand.vmem [shape: f32[32,32], index: 7, kind: output, shape index: {}]  }
   0x1   :  { %1124 = sst [smem:[#allocation6_spill]] %s1118_s3 }
   0x2   :  { %s971_s24 = smov 0   ;;  %s973_s25 = smov 0  }
   0x3   :  { %s975_s26 = smov 0   ;;  %s977_s27 = smov 0  }
   0x4   :  { %s979_s28 = smov 0   ;;  %s981_s29 = smov 0  }
   0x5   :  { %s983_s30 = smov 0  }
   0x6 LB: > { %s26_s8 = sadd.s32 1, %s919_s28  ;;  %s29_s9 = sadd.s32 1, %s923_s29  ;;  %s927_s30 = sphi %s983_s30, %s17_s30   ;;  %s923_s29 = sphi %s981_s29, %s1135_s29   ;;  %s919_s28 = sphi %s979_s28, %s1134_s28   ;;  %s915_s27 = sphi %s977_s27, %s1133_s27   ;;  %s911_s26 = sphi %s975_s26, %s1132_s26   ;;  %s907_s25 = sphi %s973_s25, %s1131_s25   ;;  %s903_s24 = sphi %s971_s24, %s1130_s24  }
   0x7   : > { %p27_p0 = scmp.ge.s32.totalorder %s26_s8, 2  ;;  %s104_s10 = sadd.s32 1, %s907_s25 }
   0x8   : > { %p111_p1 = scmp.ne.s32.totalorder %s907_s25, %s903_s24  ;;  %p112_p2 = scmp.eq.s32.totalorder %s927_s30, 0 }
   0x9   : > { %s1137_s8 = smov (%p27_p0, %s26_s8), 0  ;;  %s1139_s9 = smov (!%p27_p0, %s29_s9), %s923_s29 }
   0xa   : > { %1125 = sst [smem:[#allocation4_spill]] %s1137_s8  ;;  %s101_s11 = ssub.s32 %s919_s28, %s1137_s8 }
   0xb   : > { %p113_p3 = por %p112_p2, %p111_p1  ;;  %p31_p4 = scmp.ge.s32.totalorder %s1139_s9, 4 }
   0xc   : > { %p102_p5 = scmp.eq.s32.totalorder %s101_s11, 0  ;;  %p734_p6 = scmp.ge.s32.totalorder %s927_s30, 8 }
   0xd   : > { %s1141_s9 = smov (%p31_p4, %s1139_s9), 0 }
   0xe   : > { %1126 = sst [smem:[#allocation5_spill]] %s1141_s9  ;;  %245 = sbr.rel (%p734_p6) target bundleno = 33 (0x21), region = 28 }
   0xf   : > { %s1020_s12 = scalar_select %p102_p5, %s907_s25, %s104_s10  }
  0x15   : > { %255 = sbr.rel (!%p113_p3) target bundleno = 33 (0x21), region = 36  ;;  %s257_s13 = sand.u32 (%p113_p3), 1, %s907_s25  }
  0x16   : > { %s736_s14 = sshll.u32 (%p113_p3), %s919_s28, 2  ;;  %s735_s15 = sshll.u32 (%p113_p3), %s257_s13, 4 }
  0x17   : > { %s1127_s3 = sld [smem:[#allocation6_spill]] (%p113_p3)  ;;  %s259_s19 = scalar_lea.vmem (%p113_p3), [#allocation3], %s735_s15 }
  0x1d   : > { %s261_s18 = scalar_lea.vmem %s1127_s3, %s736_s14 }
  0x1e   : > { %v277_v0 = vld [vmem:[%s261_s18] sm:$0xf]  ;;  %v279_v1 = vld [vmem:[%s261_s18 + $0x8] sm:$0xf]  ;;  %v281_v2 = vld [vmem:[%s261_s18 + $0x10] sm:$0xf] }
  0x1f   : > { %278 = vst [vmem:[%s259_s19] sm:$0xf] %v277_v0  ;;  %280 = vst [vmem:[%s259_s19 + $0x4] sm:$0xf] %v279_v1  ;;  %v283_v3 = vld [vmem:[%s261_s18 + $0x18] sm:$0xf] }
  0x20   : > { %282 = vst [vmem:[%s259_s19 + $0x8] sm:$0xf] %v281_v2  ;;  %284 = vst [vmem:[%s259_s19 + $0xc] sm:$0xf] %v283_v3 }
  0x21 PF: > { %p737_p7 = scmp.ge.s32.totalorder %s927_s30, 1  ;;  %p329_p8 = scmp.lt.s32.totalorder %s927_s30, 9 }
  0x23   : > { %p330_p9 = pnand %p737_p7, %p329_p8 }
  0x24   : > { %s336_s20 = sand.u32 (!%p330_p9), 1, %s903_s24   ;;  %p378_p10 = scmp.lt.s32.totalorder (!%p330_p9), %s915_s27, 3 }
  0x25   : > { %333 = sbr.rel (%p330_p9) target bundleno = 828 (0x33c), region = 85  ;;  %s1032_s21 = sshll.u32 (!%p330_p9), %s336_s20, 4 }
  0x26   : > { %p382_p11 = scmp.lt.s32.totalorder (!%p330_p9), %s911_s26, 1  ;;  %s740_s22 = sshll.u32 (!%p330_p9), %s911_s26, 4 }
  0x27   : > { %p386_p12 = scmp.lt.s32.totalorder (!%p330_p9), %s740_s22, 31  ;;  %s338_s8 = scalar_lea.vmem (!%p330_p9), [#allocation3], %s1032_s21 }
  0x28   : > { %p743_p13 = scmp.ne.s32.totalorder (!%p330_p9), %s911_s26, 0 }
  0x2c   : > { %s1143_s27 = smov (!%p378_p10, %s915_s27), 3  ;;  %s1145_s22 = smov (!%p386_p12, %s740_s22), 31 }
  0x2d   : > { %s1038_s23 = scalar_select %p382_p11, %s911_s26, 1 }
  0x2e   : > { %s739_s10 = sshll.u32 %s1143_s27, 3  ;;  %s741_s20 = sshll.u32 %s1145_s22, 2  ;;  %vm403_vm0 = vcmask (!%p743_p13), 261120   ;;  %v746_v5 = vld [vmem:[%s1121_s6] ss:$0 sm:$0xff] (!%p743_p13) }
  0x2f   : > { %s381_s14 = scalar_lea.vmem %s1115_s0, %s739_s10  ;;  %s384_s24 = scalar_lea.vmem %s1119_s4, %s1038_s23  ;;  %v744_v17 = vld [vmem:[%s1116_s1] ss:$0 sm:$0xff] (!%p743_p13) }
  0x30   : > { %s1050_s19 = scalar_lea.vmem %s1122_s7, %s739_s10  ;;  %s1055_s27 = scalar_lea.vmem %s1120_s5, %s741_s20  ;;  %v400_v4 = vld [vmem:[%s381_s14] sm:$0xff] (!%p743_p13) }
  0x31   : > { %399 = sbr.rel (%p743_p13) target bundleno = 363 (0x16b), region = 93  ;;  %v404_v6 = vsel (!%p743_p13), %vm403_vm0, %v400_v4, 0.0  ;;  %v440_v7 = vadd.f32 (!%p743_p13), %v746_v5, %v400_v4  ;;  %v745_v19 = vld [vmem:[%s1117_s2] ss:$0 sm:$0xff] (!%p743_p13) }
  0x32   : > { %405 = vadd.xlane.f32.xlu0 (!%p743_p13), %v404_v6 }
  0x33   : > { %441 = vst.msk [vmem:[%s1050_s19] sm:$0xff] (!%p743_p13), %vm403_vm0, %v440_v7 }
  0xbf   : > { %v406_v8 = vpop.xlane.xlu0 %405 }
  0xc0   : > { %v408_v9 = vmul.f32 0.03125, %v406_v8 }
  0xc2   : > { %v409_v10 = vsub.f32 %v400_v4, %v408_v9 }
  0xc4   : > { %v410_v11 = vmul.f32 %v409_v10, %v409_v10 }
  0xc6   : > { %v411_v12 = vsel %vm403_vm0, %v410_v11, 0.0 }
  0xc7   : > { %412 = vadd.xlane.f32.xlu0 %v411_v12 }
 0x154   : > { %v413_v13 = vpop.xlane.xlu0 %412 }
 0x155   : > { %v414_v14 = vmul.f32 0.03125, %v413_v13 }
 0x157   : > { %v415_v15 = vadd.f32 1e-06, %v414_v14 }
 0x159   : > { %859 = vrsqrt.f32 %v415_v15 }
 0x163   : > { %v860_v16 = vpop.eup %859 }
 0x164   : > { %v417_v18 = vmul.f32 %v860_v16, %v409_v10 }
 0x166   : > { %v424_v20 = vmul.f32 %v744_v17, %v417_v18 }
 0x168   : > { %v431_v21 = vadd.f32 %v745_v19, %v424_v20 }
 0x16a   : > { %432 = vst.msk [vmem:[#allocation2] sm:$0xff] %vm403_vm0, %v431_v21 }
 0x16b PF: > { %v861_v22 = vld [vmem:[%s338_s8] sm:$0xff]   ;;  %v929_v23 = vmov 0.0   ;;  %v862_v24 = vld [vmem:[%s338_s8 + $0x8] sm:$0xff]   ;;  %vm930_vm1 = vmmov 0   ;;  %vm467_vm2 = vcmask 261120  }
 0x16c   : > { %773 = vmatprep.subr.bf16.mxu0 %v929_v23  ;;  %781 = vmatprep.subr.bf16.mxu1 %v929_v23  ;;  %v863_v26 = vld [vmem:[%s1055_s27] sm:$0xff]   ;;  %v864_v28 = vld [vmem:[%s1055_s27 + $0x8] sm:$0xff]   ;;  %v865_v29 = vld [vmem:[%s1055_s27 + $0x10] sm:$0xff]  }
 0x16d   : > { %774 = vmatpush3.bf16.msra.mxu0 %v861_v22  ;;  %777 = vmatprep.mubr.msk.bf16.mxu0 %vm930_vm1, %v929_v23  ;;  %v866_v30 = vld [vmem:[%s1055_s27 + $0x18] sm:$0xff]   ;;  %v867_v31 = vld [vmem:[%s1055_s27 + $0x20] sm:$0xff]   ;;  %v868_v32 = vld [vmem:[%s1055_s27 + $0x28] sm:$0xff]  }
 0x16e   : > { %775 = vmatprep.subr.bf16.mxu0 %v929_v23  ;;  %797 = vmatprep.mubr.msk.bf16.mxu1 %vm930_vm1, %v929_v23  ;;  %v869_v33 = vld [vmem:[%s1055_s27 + $0x30] sm:$0xff]   ;;  %v870_v34 = vld [vmem:[%s1055_s27 + $0x38] sm:$0xff]   ;;  %v747_v35 = vld [vmem:[%s384_s24] ss:$0 sm:$0xff] }
 0x16f   : > { %782 = vmatpush3.bf16.msra.mxu1 %v863_v26  ;;  %v520_v51 = vld [vmem:[%s1050_s19] sm:$0xff] }
 0x170   : > { %783 = vmatprep.subr.bf16.mxu1 %v929_v23 }
 0x171   : > { %v442_v25 = vld [vmem:[#allocation2] sm:$0xff]  ;;  %776 = vmatpush3.bf16.msra.mxu0 %v862_v24 }
 0x172   : > { %v447_v27 = vpack.c.bf16 %v442_v25, %v442_v25 }
 0x173   : > { %784 = vmatpush3.bf16.msra.mxu1 %v864_v28 }
 0x174   : > { %778 = vmatmul.mubr.msk.bf16.vlgmr.msra.gmra.mrb[0].mxu0 %vm467_vm2, %v447_v27  ;;  %785 = vmatprep.subr.bf16.mxu1 %v929_v23 }
 0x177   : > { %786 = vmatpush3.bf16.msra.mxu1 %v865_v29 }
 0x178   : > { %787 = vmatprep.subr.bf16.mxu1 %v929_v23 }
 0x17b   : > { %788 = vmatpush3.bf16.msra.mxu1 %v866_v30 }
 0x17c   : > { %789 = vmatprep.subr.bf16.mxu1 %v929_v23 }
 0x17f   : > { %790 = vmatpush3.bf16.msra.mxu1 %v867_v31 }
 0x180   : > { %791 = vmatprep.subr.bf16.mxu1 %v929_v23 }
 0x183   : > { %792 = vmatpush3.bf16.msra.mxu1 %v868_v32 }
 0x184   : > { %793 = vmatprep.subr.bf16.mxu1 %v929_v23 }
 0x187   : > { %794 = vmatpush3.bf16.msra.mxu1 %v869_v33 }
 0x188   : > { %795 = vmatprep.subr.bf16.mxu1 %v929_v23 }
 0x18b   : > { %796 = vmatpush3.bf16.msra.mxu1 %v870_v34 }
 0x247   : > { %v505_v36 = vpop.f32.mrb[0].mxu0 }
 0x248   : > { %v506_v37 = vadd.f32 %v747_v35, %v505_v36  ;;  %v779_v38 = vpop.f32.mrb[1].mxu0 }
 0x249   : > { %v508_v39 = vpop.f32.mrb[2].mxu0 }
 0x24a   : > { %v512_v40 = vmul.f32 0.044715, %v506_v37  ;;  %v780_v41 = vpop.f32.mrb[3].mxu0  ;;  %v511_v47 = vmul.f32 0.5, %v506_v37 }
 0x24c   : > { %v513_v42 = vmul.f32 %v512_v40, %v506_v37 }
 0x24e   : > { %v514_v43 = vmul.f32 %v513_v42, %v506_v37 }
 0x250   : > { %v515_v44 = vadd.f32 %v514_v43, %v506_v37 }
 0x252   : > { %v516_v45 = vmul.f32 0.7978846, %v515_v44 }
 0x254   : > { %871 = vtanh.f32 %v516_v45 }
 0x25e   : > { %v872_v46 = vpop.eup %871 }
 0x25f   : > { %v518_v48 = vadd.f32 1.0, %v872_v46 }
 0x261   : > { %v519_v49 = vmul.f32 %v518_v48, %v511_v47 }
 0x263   : > { %v537_v50 = vpack.c.bf16 %v519_v49, %v519_v49 }
 0x265   : > { %798 = vmatmul.mubr.bf16.vlgmr.msra.gmra.mrb[0].mxu1 %v537_v50 }
 0x338   : > { %v620_v52 = vpop.f32.mrb[0].mxu1 }
 0x339   : > { %v626_v53 = vadd.f32 %v620_v52, %v520_v51  ;;  %v799_v54 = vpop.f32.mrb[1].mxu1 }
 0x33a   : > { %v623_v55 = vpop.f32.mrb[2].mxu1 }
 0x33b   : > { %627 = vst.msk [vmem:[%s1050_s19] sm:$0xff] %vm467_vm2, %v626_v53  ;;  %v800_v56 = vpop.f32.mrb[3].mxu1 }
 0x33c PF: > { %s17_s30 = sadd.s32 1, %s927_s30   ;;  %s1128_s23 = sld [smem:[#allocation4_spill]] }
 0x33d   : > { %p14_p0 = scmp.ge.s32.totalorder %s17_s30, 10   ;;  %s1129_s10 = sld [smem:[#allocation5_spill]] }
 0x33e   : > { %s1130_s24 = smov %s907_s25  ;;  %s1131_s25 = smov %s1020_s12 }
 0x33f   : > { %s1132_s26 = smov %s919_s28  ;;  %s1133_s27 = smov %s923_s29 }
 0x340   :  { %16 = sbr.rel (!%p14_p0) target bundleno = 6 (0x6), region = 137 }
 0x342   : > { %s1134_s28 = smov %s1128_s23 }
 0x343   : > { %s1135_s29 = smov %s1129_s10 }

</bundles_post_ra>
